<compile_context>
chip_gen: v5e
topology: v5e:2x2
jax: 0.10.0
libtpu: 0.0.40
codegen_flags: <defaults>
</compile_context>

<pallas_src>
import functools

import jax
import jax.numpy as jnp
from jax import lax
from jax.experimental import pallas as pl
from jax.experimental.pallas import tpu as pltpu

# ---------------------------------------------------------------------------
# Model dimensions (d_token must be 192, per the module's m.repeat((1, 1, 192))).
# ---------------------------------------------------------------------------
D_TOKEN = 192
N_HEADS = 4
HEAD_DIM = D_TOKEN // N_HEADS          # 48
HEAD_PAD = 128                         # per-head lane padding -> 128-aligned slices
QKV_WIDTH = 3 * N_HEADS * HEAD_PAD     # 1536
D_FFN = 256
D_OUT = 8
OUT_PAD = 128                          # lane-dense output width (sliced to 8 outside)
LN_EPS = 1e-5

N_NUM = 4                              # numerical features
CAT_CARDS = (3, 5)                     # categorical cardinalities
N_CAT = len(CAT_CARDS)
N_FEAT = N_NUM + N_CAT                 # == input_dim (pi_logit / feat_mask width)
N_TOKENS = N_FEAT + 1                  # + CLS token

MAX_BATCH_TILE = 32                    # BB*T ~= 224 rows per grid step


def _round_up(x, m):
    return (x + m - 1) // m * m


# ---------------------------------------------------------------------------
# Fused pre-norm transformer block + head.  One grid step = BB batch elements
# presented as a flat (BB*T, 192) activation slab.
# ---------------------------------------------------------------------------
def _transformer_kernel(x_ref, bias_ref, wqkv_ref, wo_ref, w1_ref, w2_ref,
                        wh_ref, qkvb_ref, vecs_ref, b1_ref, bh_ref, out_ref):
    x = x_ref[...]                                      # (N, 192) f32, N = BB*T

    ln1_g = vecs_ref[0:1, :]; ln1_b = vecs_ref[1:2, :]
    ln2_g = vecs_ref[2:3, :]; ln2_b = vecs_ref[3:4, :]
    lnf_g = vecs_ref[4:5, :]; lnf_b = vecs_ref[5:6, :]
    bo = vecs_ref[6:7, :];    b2 = vecs_ref[7:8, :]

    def layer_norm(v, g, b):
        mu = jnp.mean(v, axis=-1, keepdims=True)
        var = jnp.mean(jnp.square(v - mu), axis=-1, keepdims=True)
        return (v - mu) * lax.rsqrt(var + LN_EPS) * g + b

    def mm(a, w_ref):                                   # bf16 MXU inputs, f32 accumulate
        return jnp.dot(a.astype(jnp.bfloat16), w_ref[...],
                       preferred_element_type=jnp.float32)

    # ---- multi-head self-attention (pre-norm) ----
    h = layer_norm(x, ln1_g, ln1_b)
    qkv = mm(h, wqkv_ref) + qkvb_ref[...]               # (N, 1536), one fused matmul
    hp = N_HEADS * HEAD_PAD                             # 512
    q = qkv[:, 0 * hp:1 * hp]
    k = qkv[:, 1 * hp:2 * hp]
    v = qkv[:, 2 * hp:3 * hp]

    scale = HEAD_DIM ** -0.5
    o_heads = []
    for hd in range(N_HEADS):                           # static unroll, 128-aligned slices
        lo = hd * HEAD_PAD
        qh = q[:, lo:lo + HEAD_PAD]
        kh = k[:, lo:lo + HEAD_PAD]
        vh = v[:, lo:lo + HEAD_PAD]
        s = lax.dot_general(qh, kh, (((1,), (1,)), ((), ())),
                            preferred_element_type=jnp.float32)
        s = s * scale + bias_ref[...]                   # block-diagonal batch mask
        s = s - jnp.max(s, axis=-1, keepdims=True)
        e = jnp.exp(s)
        p = e * pl.reciprocal(jnp.sum(e, axis=-1, keepdims=True), approx=True)
        o_heads.append(jnp.dot(p, vh, preferred_element_type=jnp.float32))
    o = jnp.concatenate(o_heads, axis=-1)               # (N, 512), 128-aligned concat
    x = x + mm(o, wo_ref) + bo                          # single Wo matmul

    # ---- feed-forward (pre-norm) ----
    h = layer_norm(x, ln2_g, ln2_b)
    f = jnp.maximum(mm(h, w1_ref) + b1_ref[...], 0.0)
    x = x + mm(f, w2_ref) + b2

    # ---- head (LN -> ReLU -> Linear) on every token; wrapper keeps the CLS row ----
    hf = jnp.maximum(layer_norm(x, lnf_g, lnf_b), 0.0)
    out_ref[...] = mm(hf, wh_ref) + bh_ref[...]         # (N, 128) lane-dense store


def ft_transformer(x_all, kp):
    """x_all: (B_total, N_TOKENS, 192) float32 -> (B_total, D_OUT) float32."""
    b_total, t, d = x_all.shape
    bb = min(MAX_BATCH_TILE, _round_up(b_total, 8))     # multiple of 8 -> BB*T % 8 == 0
    b_pad = _round_up(b_total, bb)
    if b_pad != b_total:
        x_all = jnp.concatenate(
            [x_all, jnp.zeros((b_pad - b_total, t, d), x_all.dtype)], axis=0)
    n = bb * t
    x_flat = x_all.reshape(b_pad * t, d).astype(jnp.float32)

    # Additive block-diagonal attention bias: tokens attend only within their own batch row.
    gid = jnp.arange(n, dtype=jnp.int32) // t
    attn_bias = jnp.where(gid[:, None] == gid[None, :],
                          jnp.float32(0.0), jnp.float32(-1e30))

    def _const(a):
        return pl.BlockSpec(a.shape, lambda i: (0, 0))

    weights = (kp["wqkv"], kp["wo"], kp["w1"], kp["w2"], kp["wh"],
               kp["qkvb"], kp["vecs"], kp["b1"], kp["bh"])
    out = pl.pallas_call(
        _transformer_kernel,
        out_shape=jax.ShapeDtypeStruct((b_pad * t, OUT_PAD), jnp.float32),
        grid=(b_pad // bb,),
        in_specs=[pl.BlockSpec((n, d), lambda i: (i, 0)),
                  _const(attn_bias)] + [_const(w) for w in weights],
        out_specs=pl.BlockSpec((n, OUT_PAD), lambda i: (i, 0)),
        compiler_params=pltpu.CompilerParams(dimension_semantics=("parallel",)),
    )(x_flat, attn_bias, *weights)
    return out.reshape(b_pad, t, OUT_PAD)[:b_total, t - 1, :D_OUT]


# ---------------------------------------------------------------------------
# Parameter packing for the kernel (head-padded / fused / bf16 weights).
# ---------------------------------------------------------------------------
def _pack_kernel_params(p):
    def pad_head_cols(w):      # (192, 192) -> (192, 512), heads at 128-lane strides
        w = w.reshape(D_TOKEN, N_HEADS, HEAD_DIM)
        w = jnp.pad(w, ((0, 0), (0, 0), (0, HEAD_PAD - HEAD_DIM)))
        return w.reshape(D_TOKEN, N_HEADS * HEAD_PAD)

    def pad_head_vec(b):       # (192,) -> (512,)
        b = b.reshape(N_HEADS, HEAD_DIM)
        b = jnp.pad(b, ((0, 0), (0, HEAD_PAD - HEAD_DIM)))
        return b.reshape(N_HEADS * HEAD_PAD)

    def pad_head_rows(w):      # (192, 192) -> (512, 192)
        w = w.reshape(N_HEADS, HEAD_DIM, D_TOKEN)
        w = jnp.pad(w, ((0, 0), (0, HEAD_PAD - HEAD_DIM), (0, 0)))
        return w.reshape(N_HEADS * HEAD_PAD, D_TOKEN)

    wqkv = jnp.concatenate([pad_head_cols(p["wq"]), pad_head_cols(p["wk"]),
                            pad_head_cols(p["wv"])], axis=1)          # (192, 1536)
    qkvb = jnp.concatenate([pad_head_vec(p["bq"]), pad_head_vec(p["bk"]),
                            pad_head_vec(p["bv"])])[None, :]          # (1, 1536)
    vecs = jnp.stack([p["ln1_g"], p["ln1_b"], p["ln2_g"], p["ln2_b"],
                      p["lnf_g"], p["lnf_b"], p["bo"], p["b2"]], axis=0)  # (8, 192)
    wh = jnp.pad(p["wh"], ((0, 0), (0, OUT_PAD - D_OUT)))              # (192, 128)
    bh = jnp.pad(p["bh"], (0, OUT_PAD - D_OUT))[None, :]               # (1, 128)
    return {
        "wqkv": wqkv.astype(jnp.bfloat16),
        "wo": pad_head_rows(p["wo"]).astype(jnp.bfloat16),
        "w1": p["w1"].astype(jnp.bfloat16),
        "w2": p["w2"].astype(jnp.bfloat16),
        "wh": wh.astype(jnp.bfloat16),
        "qkvb": qkvb.astype(jnp.float32),
        "vecs": vecs.astype(jnp.float32),
        "b1": p["b1"][None, :].astype(jnp.float32),
        "bh": bh.astype(jnp.float32),
    }


# ---------------------------------------------------------------------------
# JAX glue: feature tokenizer, CLS append, APAR gate, parameter init.
# ---------------------------------------------------------------------------
def feature_tokenizer(num_feat, cat_feat, p):
    num_tok = num_feat[:, :, None] * p["num_w"][None] + p["num_b"][None]
    idx = cat_feat + p["cat_offsets"][None, :]
    cat_tok = p["cat_emb"][idx] + p["cat_b"][None]      # embedding gather stays in JAX glue
    return jnp.concatenate([num_tok, cat_tok], axis=1)  # (B, N_FEAT, 192)


def cls_append(tokens, cls):
    b = tokens.shape[0]
    cls_b = jnp.broadcast_to(cls[None, None, :], (b, 1, D_TOKEN))
    return jnp.concatenate([tokens, cls_b], axis=1)      # (B, N_TOKENS, 192)


def apar_gate(feat_mask, pi_logit):
    pi = jax.nn.sigmoid(pi_logit)
    u = 0.5 * (1.0 + lax.erf(feat_mask / jnp.sqrt(jnp.float32(2.0))))
    lg = lambda t: jnp.log(t + 1e-8)
    return jax.nn.sigmoid(lg(pi)[None, :] - lg(1.0 - pi)[None, :]
                          + lg(u) - lg(1.0 - u))         # (B, N_FEAT)


def init_params(key):
    ks = jax.random.split(key, 12)
    rnd = lambda k, shape, s=0.02: (s * jax.random.normal(k, shape)).astype(jnp.float32)
    zeros = lambda shape: jnp.zeros(shape, jnp.float32)
    ones = lambda shape: jnp.ones(shape, jnp.float32)
    offsets = jnp.concatenate(
        [jnp.zeros((1,), jnp.int32),
         jnp.cumsum(jnp.array(CAT_CARDS, jnp.int32))[:-1]])
    return {
        # feature tokenizer
        "num_w": rnd(ks[0], (N_NUM, D_TOKEN), 0.1),
        "num_b": rnd(ks[1], (N_NUM, D_TOKEN), 0.1),
        "cat_emb": rnd(ks[2], (sum(CAT_CARDS), D_TOKEN), 0.1),
        "cat_b": rnd(ks[3], (N_CAT, D_TOKEN), 0.1),
        "cat_offsets": offsets,
        "cls": rnd(ks[4], (D_TOKEN,), 0.1),
        # APAR parameter (torch.zeros in the module)
        "pi_logit": zeros((N_FEAT,)),
        # transformer block + head (synthesized; injected in the PyTorch module)
        "wq": rnd(ks[5], (D_TOKEN, D_TOKEN)), "bq": zeros((D_TOKEN,)),
        "wk": rnd(ks[6], (D_TOKEN, D_TOKEN)), "bk": zeros((D_TOKEN,)),
        "wv": rnd(ks[7], (D_TOKEN, D_TOKEN)), "bv": zeros((D_TOKEN,)),
        "wo": rnd(ks[8], (D_TOKEN, D_TOKEN)), "bo": zeros((D_TOKEN,)),
        "ln1_g": ones((D_TOKEN,)), "ln1_b": zeros((D_TOKEN,)),
        "ln2_g": ones((D_TOKEN,)), "ln2_b": zeros((D_TOKEN,)),
        "w1": rnd(ks[9], (D_TOKEN, D_FFN)), "b1": zeros((D_FFN,)),
        "w2": rnd(ks[10], (D_FFN, D_TOKEN)), "b2": zeros((D_TOKEN,)),
        "lnf_g": ones((D_TOKEN,)), "lnf_b": zeros((D_TOKEN,)),
        "wh": rnd(ks[11], (D_TOKEN, D_OUT)), "bh": zeros((D_OUT,)),
    }


@functools.partial(jax.jit, static_argnames="inference")
def apar_forward(params, num_feat, cat_feat, feat_mask, inference=False):
    kp = _pack_kernel_params(params)
    tokens = feature_tokenizer(num_feat, cat_feat, params)
    x_plain = cls_append(tokens, params["cls"])
    if inference:
        return ft_transformer(x_plain, kp), None
    m = apar_gate(feat_mask, params["pi_logit"])         # tiny; XLA fuses it
    x_aug = cls_append(tokens * m[:, :, None], params["cls"])
    x_all = jnp.concatenate([x_plain, x_aug], axis=0)    # both branches, one launch
    out_all = ft_transformer(x_all, kp)
    b = tokens.shape[0]
    return out_all[:b], out_all[b:]


# ---------------------------------------------------------------------------
# Pure-JAX reference (same math, incl. bf16 matmul inputs) for correctness.
# ---------------------------------------------------------------------------
def _mm_ref(a, w):
    return jnp.dot(a.astype(jnp.bfloat16), w.astype(jnp.bfloat16),
                   preferred_element_type=jnp.float32)


def _reference_transformer(x, p):
    def ln(v, g, b):
        mu = v.mean(-1, keepdims=True)
        var = ((v - mu) ** 2).mean(-1, keepdims=True)
        return (v - mu) * lax.rsqrt(var + LN_EPS) * g + b

    b, t, _ = x.shape
    h = ln(x, p["ln1_g"], p["ln1_b"])
    q = _mm_ref(h, p["wq"]) + p["bq"]
    k = _mm_ref(h, p["wk"]) + p["bk"]
    v = _mm_ref(h, p["wv"]) + p["bv"]
    qh = q.reshape(b, t, N_HEADS, HEAD_DIM).transpose(0, 2, 1, 3)
    kh = k.reshape(b, t, N_HEADS, HEAD_DIM).transpose(0, 2, 1, 3)
    vh = v.reshape(b, t, N_HEADS, HEAD_DIM).transpose(0, 2, 1, 3)
    s = jnp.einsum("bhqd,bhkd->bhqk", qh, kh) * (HEAD_DIM ** -0.5)
    s = s - s.max(-1, keepdims=True)
    e = jnp.exp(s)
    pr = e / e.sum(-1, keepdims=True)
    o = jnp.einsum("bhqk,bhkd->bhqd", pr, vh).transpose(0, 2, 1, 3).reshape(b, t, D_TOKEN)
    x = x + _mm_ref(o, p["wo"]) + p["bo"]
    h = ln(x, p["ln2_g"], p["ln2_b"])
    x = x + _mm_ref(jnp.maximum(_mm_ref(h, p["w1"]) + p["b1"], 0.0), p["w2"]) + p["b2"]
    cls = jnp.maximum(ln(x[:, -1, :], p["lnf_g"], p["lnf_b"]), 0.0)
    return _mm_ref(cls, p["wh"]) + p["bh"]


def reference_forward(params, num_feat, cat_feat, feat_mask):
    tokens = feature_tokenizer(num_feat, cat_feat, params)
    m = apar_gate(feat_mask, params["pi_logit"])
    tokens_aug = tokens * m[:, :, None]
    out = _reference_transformer(cls_append(tokens, params["cls"]), params)
    out_aug = _reference_transformer(cls_append(tokens_aug, params["cls"]), params)
    return out, out_aug


# ---------------------------------------------------------------------------
if __name__ == "__main__":
    key = jax.random.PRNGKey(0)
    pkey, k1, k2, k3 = jax.random.split(key, 4)
    params = init_params(pkey)

    B = 2
    num_feat = jax.random.normal(k1, (B, N_NUM), jnp.float32)
    cat_feat = jax.random.randint(k2, (B, N_CAT), 0, jnp.array(CAT_CARDS, jnp.int32))
    feat_mask = jax.random.normal(k3, (B, N_FEAT), jnp.float32)

    out, out_aug = apar_forward(params, num_feat, cat_feat, feat_mask, inference=False)
    out = jax.block_until_ready(out)
    out_aug = jax.block_until_ready(out_aug)

    ref_out, ref_aug = reference_forward(params, num_feat, cat_feat, feat_mask)
    assert out.shape == (B, D_OUT) and out_aug.shape == (B, D_OUT)
    # Tolerance reflects bf16 MXU inputs + approx softmax reciprocal in the kernel.
    assert jnp.allclose(out, ref_out, rtol=2e-2, atol=5e-3)
    assert jnp.allclose(out_aug, ref_aug, rtol=2e-2, atol=5e-3)

    print("KERNEL_OK")
</pallas_src>

<mosaic_0001>
module attributes {stable_mosaic.version = 11 : i64} {
  func.func @_transformer_kernel(%arg0: i32, %arg1: memref<56x192xf32, #tpu.memory_space<vmem>>, %arg2: memref<56x56xf32, #tpu.memory_space<vmem>>, %arg3: memref<192x1536xbf16, #tpu.memory_space<vmem>>, %arg4: memref<512x192xbf16, #tpu.memory_space<vmem>>, %arg5: memref<192x256xbf16, #tpu.memory_space<vmem>>, %arg6: memref<256x192xbf16, #tpu.memory_space<vmem>>, %arg7: memref<192x128xbf16, #tpu.memory_space<vmem>>, %arg8: memref<1x1536xf32, #tpu.memory_space<vmem>>, %arg9: memref<8x192xf32, #tpu.memory_space<vmem>>, %arg10: memref<1x256xf32, #tpu.memory_space<vmem>>, %arg11: memref<1x128xf32, #tpu.memory_space<vmem>>, %arg12: memref<56x128xf32, #tpu.memory_space<vmem>>) attributes {dimension_semantics = [#tpu.dimension_semantics<parallel>], iteration_bounds = array<i64: 1>, scalar_prefetch = 0 : i64, scratch_operands = 0 : i64, tpu.core_type = #tpu.core_type<tc>, window_params = [{transform_indices = @transform_0, window_bounds = array<i64: 56, 192>}, {pipeline_mode = #tpu.pipeline_mode<synchronous>, transform_indices = @transform_1, window_bounds = array<i64: 56, 56>}, {pipeline_mode = #tpu.pipeline_mode<synchronous>, transform_indices = @transform_2, window_bounds = array<i64: 192, 1536>}, {pipeline_mode = #tpu.pipeline_mode<synchronous>, transform_indices = @transform_3, window_bounds = array<i64: 512, 192>}, {pipeline_mode = #tpu.pipeline_mode<synchronous>, transform_indices = @transform_4, window_bounds = array<i64: 192, 256>}, {pipeline_mode = #tpu.pipeline_mode<synchronous>, transform_indices = @transform_5, window_bounds = array<i64: 256, 192>}, {pipeline_mode = #tpu.pipeline_mode<synchronous>, transform_indices = @transform_6, window_bounds = array<i64: 192, 128>}, {pipeline_mode = #tpu.pipeline_mode<synchronous>, transform_indices = @transform_7, window_bounds = array<i64: 1, 1536>}, {pipeline_mode = #tpu.pipeline_mode<synchronous>, transform_indices = @transform_8, window_bounds = array<i64: 8, 192>}, {pipeline_mode = #tpu.pipeline_mode<synchronous>, transform_indices = @transform_9, window_bounds = array<i64: 1, 256>}, {pipeline_mode = #tpu.pipeline_mode<synchronous>, transform_indices = @transform_10, window_bounds = array<i64: 1, 128>}, {transform_indices = @transform_11, window_bounds = array<i64: 56, 128>}]} {
    %c0 = arith.constant 0 : index
    %c0_0 = arith.constant 0 : index
    %0 = vector.load %arg1[%c0, %c0_0] : memref<56x192xf32, #tpu.memory_space<vmem>>, vector<56x192xf32>
    %c0_1 = arith.constant 0 : index
    %c0_2 = arith.constant 0 : index
    %1 = vector.load %arg9[%c0_1, %c0_2] : memref<8x192xf32, #tpu.memory_space<vmem>>, vector<1x192xf32>
    %c1 = arith.constant 1 : index
    %c0_3 = arith.constant 0 : index
    %2 = vector.load %arg9[%c1, %c0_3] : memref<8x192xf32, #tpu.memory_space<vmem>>, vector<1x192xf32>
    %c2 = arith.constant 2 : index
    %c0_4 = arith.constant 0 : index
    %3 = vector.load %arg9[%c2, %c0_4] : memref<8x192xf32, #tpu.memory_space<vmem>>, vector<1x192xf32>
    %c3 = arith.constant 3 : index
    %c0_5 = arith.constant 0 : index
    %4 = vector.load %arg9[%c3, %c0_5] : memref<8x192xf32, #tpu.memory_space<vmem>>, vector<1x192xf32>
    %c4 = arith.constant 4 : index
    %c0_6 = arith.constant 0 : index
    %5 = vector.load %arg9[%c4, %c0_6] : memref<8x192xf32, #tpu.memory_space<vmem>>, vector<1x192xf32>
    %c5 = arith.constant 5 : index
    %c0_7 = arith.constant 0 : index
    %6 = vector.load %arg9[%c5, %c0_7] : memref<8x192xf32, #tpu.memory_space<vmem>>, vector<1x192xf32>
    %c6 = arith.constant 6 : index
    %c0_8 = arith.constant 0 : index
    %7 = vector.load %arg9[%c6, %c0_8] : memref<8x192xf32, #tpu.memory_space<vmem>>, vector<1x192xf32>
    %c7 = arith.constant 7 : index
    %c0_9 = arith.constant 0 : index
    %8 = vector.load %arg9[%c7, %c0_9] : memref<8x192xf32, #tpu.memory_space<vmem>>, vector<1x192xf32>
    %cst = arith.constant dense<0.000000e+00> : vector<56xf32>
    %9 = vector.multi_reduction <add>, %0, %cst [1] : vector<56x192xf32> to vector<56xf32>
    %10 = vector.shape_cast %9 : vector<56xf32> to vector<56x1xf32>
    %cst_10 = arith.constant 1.920000e+02 : f32
    %11 = vector.broadcast %cst_10 : f32 to vector<56x1xf32>
    %12 = arith.divf %10, %11 : vector<56x1xf32>
    %13 = vector.broadcast %12 : vector<56x1xf32> to vector<56x192xf32>
    %14 = arith.subf %0, %13 : vector<56x192xf32>
    %15 = arith.mulf %14, %14 : vector<56x192xf32>
    %cst_11 = arith.constant dense<0.000000e+00> : vector<56xf32>
    %16 = vector.multi_reduction <add>, %15, %cst_11 [1] : vector<56x192xf32> to vector<56xf32>
    %17 = vector.shape_cast %16 : vector<56xf32> to vector<56x1xf32>
    %cst_12 = arith.constant 1.920000e+02 : f32
    %18 = vector.broadcast %cst_12 : f32 to vector<56x1xf32>
    %19 = arith.divf %17, %18 : vector<56x1xf32>
    %20 = vector.broadcast %12 : vector<56x1xf32> to vector<56x192xf32>
    %21 = arith.subf %0, %20 : vector<56x192xf32>
    %cst_13 = arith.constant 9.99999974E-6 : f32
    %22 = vector.broadcast %cst_13 : f32 to vector<56x1xf32>
    %23 = arith.addf %19, %22 : vector<56x1xf32>
    %24 = math.rsqrt %23 : vector<56x1xf32>
    %25 = vector.broadcast %24 : vector<56x1xf32> to vector<56x192xf32>
    %26 = arith.mulf %21, %25 : vector<56x192xf32>
    %27 = vector.broadcast %1 : vector<1x192xf32> to vector<56x192xf32>
    %28 = arith.mulf %26, %27 : vector<56x192xf32>
    %29 = vector.broadcast %2 : vector<1x192xf32> to vector<56x192xf32>
    %30 = arith.addf %28, %29 : vector<56x192xf32>
    %31 = arith.truncf %30 : vector<56x192xf32> to vector<56x192xbf16>
    %c0_14 = arith.constant 0 : index
    %c0_15 = arith.constant 0 : index
    %32 = vector.load %arg3[%c0_14, %c0_15] : memref<192x1536xbf16, #tpu.memory_space<vmem>>, vector<192x1536xbf16>
    %cst_16 = arith.constant dense<0.000000e+00> : vector<56x1536xf32>
    %33 = tpu.matmul %31, %32, %cst_16 {dimension_numbers = #tpu.dot_dimension_numbers<[1], [0], [0], [1], [0, 0, 1, 1], [], []>} : vector<56x192xbf16>, vector<192x1536xbf16>, vector<56x1536xf32> -> vector<56x1536xf32>
    %c0_17 = arith.constant 0 : index
    %c0_18 = arith.constant 0 : index
    %34 = vector.load %arg8[%c0_17, %c0_18] : memref<1x1536xf32, #tpu.memory_space<vmem>>, vector<1x1536xf32>
    %35 = vector.broadcast %34 : vector<1x1536xf32> to vector<56x1536xf32>
    %36 = arith.addf %33, %35 : vector<56x1536xf32>
    %37 = vector.extract_strided_slice %36 {offsets = [0, 0], sizes = [56, 512], strides = [1, 1]} : vector<56x1536xf32> to vector<56x512xf32>
    %38 = vector.extract_strided_slice %36 {offsets = [0, 512], sizes = [56, 512], strides = [1, 1]} : vector<56x1536xf32> to vector<56x512xf32>
    %39 = vector.extract_strided_slice %36 {offsets = [0, 1024], sizes = [56, 512], strides = [1, 1]} : vector<56x1536xf32> to vector<56x512xf32>
    %40 = vector.extract_strided_slice %37 {offsets = [0, 0], sizes = [56, 128], strides = [1, 1]} : vector<56x512xf32> to vector<56x128xf32>
    %41 = vector.extract_strided_slice %38 {offsets = [0, 0], sizes = [56, 128], strides = [1, 1]} : vector<56x512xf32> to vector<56x128xf32>
    %42 = vector.extract_strided_slice %39 {offsets = [0, 0], sizes = [56, 128], strides = [1, 1]} : vector<56x512xf32> to vector<56x128xf32>
    %cst_19 = arith.constant dense<0.000000e+00> : vector<56x56xf32>
    %43 = tpu.matmul %40, %41, %cst_19 {dimension_numbers = #tpu.dot_dimension_numbers<[1], [1], [0], [0], [0, 0, 1, 0], [], []>} : vector<56x128xf32>, vector<56x128xf32>, vector<56x56xf32> -> vector<56x56xf32>
    %cst_20 = arith.constant 0.144337565 : f32
    %44 = vector.broadcast %cst_20 : f32 to vector<56x56xf32>
    %45 = arith.mulf %43, %44 : vector<56x56xf32>
    %c0_21 = arith.constant 0 : index
    %c0_22 = arith.constant 0 : index
    %46 = vector.load %arg2[%c0_21, %c0_22] : memref<56x56xf32, #tpu.memory_space<vmem>>, vector<56x56xf32>
    %47 = arith.addf %45, %46 : vector<56x56xf32>
    %cst_23 = arith.constant dense<0xFF800000> : vector<56xf32>
    %48 = vector.multi_reduction <maximumf>, %47, %cst_23 [1] : vector<56x56xf32> to vector<56xf32>
    %49 = vector.shape_cast %48 : vector<56xf32> to vector<56x1xf32>
    %50 = vector.broadcast %49 : vector<56x1xf32> to vector<56x56xf32>
    %51 = arith.subf %47, %50 : vector<56x56xf32>
    %52 = math.exp %51 : vector<56x56xf32>
    %cst_24 = arith.constant dense<0.000000e+00> : vector<56xf32>
    %53 = vector.multi_reduction <add>, %52, %cst_24 [1] : vector<56x56xf32> to vector<56xf32>
    %54 = vector.shape_cast %53 : vector<56xf32> to vector<56x1xf32>
    %55 = tpu.reciprocal %54 {approx = true} : vector<56x1xf32> -> vector<56x1xf32>
    %56 = vector.broadcast %55 : vector<56x1xf32> to vector<56x56xf32>
    %57 = arith.mulf %52, %56 : vector<56x56xf32>
    %cst_25 = arith.constant dense<0.000000e+00> : vector<56x128xf32>
    %58 = tpu.matmul %57, %42, %cst_25 {dimension_numbers = #tpu.dot_dimension_numbers<[1], [0], [0], [1], [0, 0, 1, 1], [], []>} : vector<56x56xf32>, vector<56x128xf32>, vector<56x128xf32> -> vector<56x128xf32>
    %59 = vector.extract_strided_slice %37 {offsets = [0, 128], sizes = [56, 128], strides = [1, 1]} : vector<56x512xf32> to vector<56x128xf32>
    %60 = vector.extract_strided_slice %38 {offsets = [0, 128], sizes = [56, 128], strides = [1, 1]} : vector<56x512xf32> to vector<56x128xf32>
    %61 = vector.extract_strided_slice %39 {offsets = [0, 128], sizes = [56, 128], strides = [1, 1]} : vector<56x512xf32> to vector<56x128xf32>
    %cst_26 = arith.constant dense<0.000000e+00> : vector<56x56xf32>
    %62 = tpu.matmul %59, %60, %cst_26 {dimension_numbers = #tpu.dot_dimension_numbers<[1], [1], [0], [0], [0, 0, 1, 0], [], []>} : vector<56x128xf32>, vector<56x128xf32>, vector<56x56xf32> -> vector<56x56xf32>
    %cst_27 = arith.constant 0.144337565 : f32
    %63 = vector.broadcast %cst_27 : f32 to vector<56x56xf32>
    %64 = arith.mulf %62, %63 : vector<56x56xf32>
    %c0_28 = arith.constant 0 : index
    %c0_29 = arith.constant 0 : index
    %65 = vector.load %arg2[%c0_28, %c0_29] : memref<56x56xf32, #tpu.memory_space<vmem>>, vector<56x56xf32>
    %66 = arith.addf %64, %65 : vector<56x56xf32>
    %cst_30 = arith.constant dense<0xFF800000> : vector<56xf32>
    %67 = vector.multi_reduction <maximumf>, %66, %cst_30 [1] : vector<56x56xf32> to vector<56xf32>
    %68 = vector.shape_cast %67 : vector<56xf32> to vector<56x1xf32>
    %69 = vector.broadcast %68 : vector<56x1xf32> to vector<56x56xf32>
    %70 = arith.subf %66, %69 : vector<56x56xf32>
    %71 = math.exp %70 : vector<56x56xf32>
    %cst_31 = arith.constant dense<0.000000e+00> : vector<56xf32>
    %72 = vector.multi_reduction <add>, %71, %cst_31 [1] : vector<56x56xf32> to vector<56xf32>
    %73 = vector.shape_cast %72 : vector<56xf32> to vector<56x1xf32>
    %74 = tpu.reciprocal %73 {approx = true} : vector<56x1xf32> -> vector<56x1xf32>
    %75 = vector.broadcast %74 : vector<56x1xf32> to vector<56x56xf32>
    %76 = arith.mulf %71, %75 : vector<56x56xf32>
    %cst_32 = arith.constant dense<0.000000e+00> : vector<56x128xf32>
    %77 = tpu.matmul %76, %61, %cst_32 {dimension_numbers = #tpu.dot_dimension_numbers<[1], [0], [0], [1], [0, 0, 1, 1], [], []>} : vector<56x56xf32>, vector<56x128xf32>, vector<56x128xf32> -> vector<56x128xf32>
    %78 = vector.extract_strided_slice %37 {offsets = [0, 256], sizes = [56, 128], strides = [1, 1]} : vector<56x512xf32> to vector<56x128xf32>
    %79 = vector.extract_strided_slice %38 {offsets = [0, 256], sizes = [56, 128], strides = [1, 1]} : vector<56x512xf32> to vector<56x128xf32>
    %80 = vector.extract_strided_slice %39 {offsets = [0, 256], sizes = [56, 128], strides = [1, 1]} : vector<56x512xf32> to vector<56x128xf32>
    %cst_33 = arith.constant dense<0.000000e+00> : vector<56x56xf32>
    %81 = tpu.matmul %78, %79, %cst_33 {dimension_numbers = #tpu.dot_dimension_numbers<[1], [1], [0], [0], [0, 0, 1, 0], [], []>} : vector<56x128xf32>, vector<56x128xf32>, vector<56x56xf32> -> vector<56x56xf32>
    %cst_34 = arith.constant 0.144337565 : f32
    %82 = vector.broadcast %cst_34 : f32 to vector<56x56xf32>
    %83 = arith.mulf %81, %82 : vector<56x56xf32>
    %c0_35 = arith.constant 0 : index
    %c0_36 = arith.constant 0 : index
    %84 = vector.load %arg2[%c0_35, %c0_36] : memref<56x56xf32, #tpu.memory_space<vmem>>, vector<56x56xf32>
    %85 = arith.addf %83, %84 : vector<56x56xf32>
    %cst_37 = arith.constant dense<0xFF800000> : vector<56xf32>
    %86 = vector.multi_reduction <maximumf>, %85, %cst_37 [1] : vector<56x56xf32> to vector<56xf32>
    %87 = vector.shape_cast %86 : vector<56xf32> to vector<56x1xf32>
    %88 = vector.broadcast %87 : vector<56x1xf32> to vector<56x56xf32>
    %89 = arith.subf %85, %88 : vector<56x56xf32>
    %90 = math.exp %89 : vector<56x56xf32>
    %cst_38 = arith.constant dense<0.000000e+00> : vector<56xf32>
    %91 = vector.multi_reduction <add>, %90, %cst_38 [1] : vector<56x56xf32> to vector<56xf32>
    %92 = vector.shape_cast %91 : vector<56xf32> to vector<56x1xf32>
    %93 = tpu.reciprocal %92 {approx = true} : vector<56x1xf32> -> vector<56x1xf32>
    %94 = vector.broadcast %93 : vector<56x1xf32> to vector<56x56xf32>
    %95 = arith.mulf %90, %94 : vector<56x56xf32>
    %cst_39 = arith.constant dense<0.000000e+00> : vector<56x128xf32>
    %96 = tpu.matmul %95, %80, %cst_39 {dimension_numbers = #tpu.dot_dimension_numbers<[1], [0], [0], [1], [0, 0, 1, 1], [], []>} : vector<56x56xf32>, vector<56x128xf32>, vector<56x128xf32> -> vector<56x128xf32>
    %97 = vector.extract_strided_slice %37 {offsets = [0, 384], sizes = [56, 128], strides = [1, 1]} : vector<56x512xf32> to vector<56x128xf32>
    %98 = vector.extract_strided_slice %38 {offsets = [0, 384], sizes = [56, 128], strides = [1, 1]} : vector<56x512xf32> to vector<56x128xf32>
    %99 = vector.extract_strided_slice %39 {offsets = [0, 384], sizes = [56, 128], strides = [1, 1]} : vector<56x512xf32> to vector<56x128xf32>
    %cst_40 = arith.constant dense<0.000000e+00> : vector<56x56xf32>
    %100 = tpu.matmul %97, %98, %cst_40 {dimension_numbers = #tpu.dot_dimension_numbers<[1], [1], [0], [0], [0, 0, 1, 0], [], []>} : vector<56x128xf32>, vector<56x128xf32>, vector<56x56xf32> -> vector<56x56xf32>
    %cst_41 = arith.constant 0.144337565 : f32
    %101 = vector.broadcast %cst_41 : f32 to vector<56x56xf32>
    %102 = arith.mulf %100, %101 : vector<56x56xf32>
    %c0_42 = arith.constant 0 : index
    %c0_43 = arith.constant 0 : index
    %103 = vector.load %arg2[%c0_42, %c0_43] : memref<56x56xf32, #tpu.memory_space<vmem>>, vector<56x56xf32>
    %104 = arith.addf %102, %103 : vector<56x56xf32>
    %cst_44 = arith.constant dense<0xFF800000> : vector<56xf32>
    %105 = vector.multi_reduction <maximumf>, %104, %cst_44 [1] : vector<56x56xf32> to vector<56xf32>
    %106 = vector.shape_cast %105 : vector<56xf32> to vector<56x1xf32>
    %107 = vector.broadcast %106 : vector<56x1xf32> to vector<56x56xf32>
    %108 = arith.subf %104, %107 : vector<56x56xf32>
    %109 = math.exp %108 : vector<56x56xf32>
    %cst_45 = arith.constant dense<0.000000e+00> : vector<56xf32>
    %110 = vector.multi_reduction <add>, %109, %cst_45 [1] : vector<56x56xf32> to vector<56xf32>
    %111 = vector.shape_cast %110 : vector<56xf32> to vector<56x1xf32>
    %112 = tpu.reciprocal %111 {approx = true} : vector<56x1xf32> -> vector<56x1xf32>
    %113 = vector.broadcast %112 : vector<56x1xf32> to vector<56x56xf32>
    %114 = arith.mulf %109, %113 : vector<56x56xf32>
    %cst_46 = arith.constant dense<0.000000e+00> : vector<56x128xf32>
    %115 = tpu.matmul %114, %99, %cst_46 {dimension_numbers = #tpu.dot_dimension_numbers<[1], [0], [0], [1], [0, 0, 1, 1], [], []>} : vector<56x56xf32>, vector<56x128xf32>, vector<56x128xf32> -> vector<56x128xf32>
    %116 = tpu.concatenate %58, %77, %96, %115 in 1 : vector<56x128xf32>, vector<56x128xf32>, vector<56x128xf32>, vector<56x128xf32> -> vector<56x512xf32>
    %117 = arith.truncf %116 : vector<56x512xf32> to vector<56x512xbf16>
    %c0_47 = arith.constant 0 : index
    %c0_48 = arith.constant 0 : index
    %118 = vector.load %arg4[%c0_47, %c0_48] : memref<512x192xbf16, #tpu.memory_space<vmem>>, vector<512x192xbf16>
    %cst_49 = arith.constant dense<0.000000e+00> : vector<56x192xf32>
    %119 = tpu.matmul %117, %118, %cst_49 {dimension_numbers = #tpu.dot_dimension_numbers<[1], [0], [0], [1], [0, 0, 1, 1], [], []>} : vector<56x512xbf16>, vector<512x192xbf16>, vector<56x192xf32> -> vector<56x192xf32>
    %120 = arith.addf %0, %119 : vector<56x192xf32>
    %121 = vector.broadcast %7 : vector<1x192xf32> to vector<56x192xf32>
    %122 = arith.addf %120, %121 : vector<56x192xf32>
    %cst_50 = arith.constant dense<0.000000e+00> : vector<56xf32>
    %123 = vector.multi_reduction <add>, %122, %cst_50 [1] : vector<56x192xf32> to vector<56xf32>
    %124 = vector.shape_cast %123 : vector<56xf32> to vector<56x1xf32>
    %cst_51 = arith.constant 1.920000e+02 : f32
    %125 = vector.broadcast %cst_51 : f32 to vector<56x1xf32>
    %126 = arith.divf %124, %125 : vector<56x1xf32>
    %127 = vector.broadcast %126 : vector<56x1xf32> to vector<56x192xf32>
    %128 = arith.subf %122, %127 : vector<56x192xf32>
    %129 = arith.mulf %128, %128 : vector<56x192xf32>
    %cst_52 = arith.constant dense<0.000000e+00> : vector<56xf32>
    %130 = vector.multi_reduction <add>, %129, %cst_52 [1] : vector<56x192xf32> to vector<56xf32>
    %131 = vector.shape_cast %130 : vector<56xf32> to vector<56x1xf32>
    %cst_53 = arith.constant 1.920000e+02 : f32
    %132 = vector.broadcast %cst_53 : f32 to vector<56x1xf32>
    %133 = arith.divf %131, %132 : vector<56x1xf32>
    %134 = vector.broadcast %126 : vector<56x1xf32> to vector<56x192xf32>
    %135 = arith.subf %122, %134 : vector<56x192xf32>
    %cst_54 = arith.constant 9.99999974E-6 : f32
    %136 = vector.broadcast %cst_54 : f32 to vector<56x1xf32>
    %137 = arith.addf %133, %136 : vector<56x1xf32>
    %138 = math.rsqrt %137 : vector<56x1xf32>
    %139 = vector.broadcast %138 : vector<56x1xf32> to vector<56x192xf32>
    %140 = arith.mulf %135, %139 : vector<56x192xf32>
    %141 = vector.broadcast %3 : vector<1x192xf32> to vector<56x192xf32>
    %142 = arith.mulf %140, %141 : vector<56x192xf32>
    %143 = vector.broadcast %4 : vector<1x192xf32> to vector<56x192xf32>
    %144 = arith.addf %142, %143 : vector<56x192xf32>
    %145 = arith.truncf %144 : vector<56x192xf32> to vector<56x192xbf16>
    %c0_55 = arith.constant 0 : index
    %c0_56 = arith.constant 0 : index
    %146 = vector.load %arg5[%c0_55, %c0_56] : memref<192x256xbf16, #tpu.memory_space<vmem>>, vector<192x256xbf16>
    %cst_57 = arith.constant dense<0.000000e+00> : vector<56x256xf32>
    %147 = tpu.matmul %145, %146, %cst_57 {dimension_numbers = #tpu.dot_dimension_numbers<[1], [0], [0], [1], [0, 0, 1, 1], [], []>} : vector<56x192xbf16>, vector<192x256xbf16>, vector<56x256xf32> -> vector<56x256xf32>
    %c0_58 = arith.constant 0 : index
    %c0_59 = arith.constant 0 : index
    %148 = vector.load %arg10[%c0_58, %c0_59] : memref<1x256xf32, #tpu.memory_space<vmem>>, vector<1x256xf32>
    %149 = vector.broadcast %148 : vector<1x256xf32> to vector<56x256xf32>
    %150 = arith.addf %147, %149 : vector<56x256xf32>
    %cst_60 = arith.constant 0.000000e+00 : f32
    %151 = vector.broadcast %cst_60 : f32 to vector<56x256xf32>
    %152 = arith.maximumf %150, %151 : vector<56x256xf32>
    %153 = arith.truncf %152 : vector<56x256xf32> to vector<56x256xbf16>
    %c0_61 = arith.constant 0 : index
    %c0_62 = arith.constant 0 : index
    %154 = vector.load %arg6[%c0_61, %c0_62] : memref<256x192xbf16, #tpu.memory_space<vmem>>, vector<256x192xbf16>
    %cst_63 = arith.constant dense<0.000000e+00> : vector<56x192xf32>
    %155 = tpu.matmul %153, %154, %cst_63 {dimension_numbers = #tpu.dot_dimension_numbers<[1], [0], [0], [1], [0, 0, 1, 1], [], []>} : vector<56x256xbf16>, vector<256x192xbf16>, vector<56x192xf32> -> vector<56x192xf32>
    %156 = arith.addf %122, %155 : vector<56x192xf32>
    %157 = vector.broadcast %8 : vector<1x192xf32> to vector<56x192xf32>
    %158 = arith.addf %156, %157 : vector<56x192xf32>
    %cst_64 = arith.constant dense<0.000000e+00> : vector<56xf32>
    %159 = vector.multi_reduction <add>, %158, %cst_64 [1] : vector<56x192xf32> to vector<56xf32>
    %160 = vector.shape_cast %159 : vector<56xf32> to vector<56x1xf32>
    %cst_65 = arith.constant 1.920000e+02 : f32
    %161 = vector.broadcast %cst_65 : f32 to vector<56x1xf32>
    %162 = arith.divf %160, %161 : vector<56x1xf32>
    %163 = vector.broadcast %162 : vector<56x1xf32> to vector<56x192xf32>
    %164 = arith.subf %158, %163 : vector<56x192xf32>
    %165 = arith.mulf %164, %164 : vector<56x192xf32>
    %cst_66 = arith.constant dense<0.000000e+00> : vector<56xf32>
    %166 = vector.multi_reduction <add>, %165, %cst_66 [1] : vector<56x192xf32> to vector<56xf32>
    %167 = vector.shape_cast %166 : vector<56xf32> to vector<56x1xf32>
    %cst_67 = arith.constant 1.920000e+02 : f32
    %168 = vector.broadcast %cst_67 : f32 to vector<56x1xf32>
    %169 = arith.divf %167, %168 : vector<56x1xf32>
    %170 = vector.broadcast %162 : vector<56x1xf32> to vector<56x192xf32>
    %171 = arith.subf %158, %170 : vector<56x192xf32>
    %cst_68 = arith.constant 9.99999974E-6 : f32
    %172 = vector.broadcast %cst_68 : f32 to vector<56x1xf32>
    %173 = arith.addf %169, %172 : vector<56x1xf32>
    %174 = math.rsqrt %173 : vector<56x1xf32>
    %175 = vector.broadcast %174 : vector<56x1xf32> to vector<56x192xf32>
    %176 = arith.mulf %171, %175 : vector<56x192xf32>
    %177 = vector.broadcast %5 : vector<1x192xf32> to vector<56x192xf32>
    %178 = arith.mulf %176, %177 : vector<56x192xf32>
    %179 = vector.broadcast %6 : vector<1x192xf32> to vector<56x192xf32>
    %180 = arith.addf %178, %179 : vector<56x192xf32>
    %cst_69 = arith.constant 0.000000e+00 : f32
    %181 = vector.broadcast %cst_69 : f32 to vector<56x192xf32>
    %182 = arith.maximumf %180, %181 : vector<56x192xf32>
    %183 = arith.truncf %182 : vector<56x192xf32> to vector<56x192xbf16>
    %c0_70 = arith.constant 0 : index
    %c0_71 = arith.constant 0 : index
    %184 = vector.load %arg7[%c0_70, %c0_71] : memref<192x128xbf16, #tpu.memory_space<vmem>>, vector<192x128xbf16>
    %cst_72 = arith.constant dense<0.000000e+00> : vector<56x128xf32>
    %185 = tpu.matmul %183, %184, %cst_72 {dimension_numbers = #tpu.dot_dimension_numbers<[1], [0], [0], [1], [0, 0, 1, 1], [], []>} : vector<56x192xbf16>, vector<192x128xbf16>, vector<56x128xf32> -> vector<56x128xf32>
    %c0_73 = arith.constant 0 : index
    %c0_74 = arith.constant 0 : index
    %186 = vector.load %arg11[%c0_73, %c0_74] : memref<1x128xf32, #tpu.memory_space<vmem>>, vector<1x128xf32>
    %187 = vector.broadcast %186 : vector<1x128xf32> to vector<56x128xf32>
    %188 = arith.addf %185, %187 : vector<56x128xf32>
    %c0_75 = arith.constant 0 : index
    %c0_76 = arith.constant 0 : index
    %189 = vector.load %arg12[%c0_75, %c0_76] : memref<56x128xf32, #tpu.memory_space<vmem>>, vector<56x128xf32>
    tpu.vector_store %arg12[%c0_75, %c0_76], %188 {strides = array<i32>} : memref<56x128xf32, #tpu.memory_space<vmem>>, vector<56x128xf32>,
    return
  }
  func.func @transform_0(%arg0: i32) -> (i32, i32) {
    %c0_i32 = arith.constant 0 : i32
    %c0_i32_0 = arith.constant 0 : i32
    return %arg0, %c0_i32 : i32, i32
  }
  func.func @transform_1(%arg0: i32) -> (i32, i32) {
    %c0_i32 = arith.constant 0 : i32
    %c0_i32_0 = arith.constant 0 : i32
    %c0_i32_1 = arith.constant 0 : i32
    return %c0_i32, %c0_i32_0 : i32, i32
  }
  func.func @transform_2(%arg0: i32) -> (i32, i32) {
    %c0_i32 = arith.constant 0 : i32
    %c0_i32_0 = arith.constant 0 : i32
    %c0_i32_1 = arith.constant 0 : i32
    return %c0_i32, %c0_i32_0 : i32, i32
  }
  func.func @transform_3(%arg0: i32) -> (i32, i32) {
    %c0_i32 = arith.constant 0 : i32
    %c0_i32_0 = arith.constant 0 : i32
    %c0_i32_1 = arith.constant 0 : i32
    return %c0_i32, %c0_i32_0 : i32, i32
  }
  func.func @transform_4(%arg0: i32) -> (i32, i32) {
    %c0_i32 = arith.constant 0 : i32
    %c0_i32_0 = arith.constant 0 : i32
    %c0_i32_1 = arith.constant 0 : i32
    return %c0_i32, %c0_i32_0 : i32, i32
  }
  func.func @transform_5(%arg0: i32) -> (i32, i32) {
    %c0_i32 = arith.constant 0 : i32
    %c0_i32_0 = arith.constant 0 : i32
    %c0_i32_1 = arith.constant 0 : i32
    return %c0_i32, %c0_i32_0 : i32, i32
  }
  func.func @transform_6(%arg0: i32) -> (i32, i32) {
    %c0_i32 = arith.constant 0 : i32
    %c0_i32_0 = arith.constant 0 : i32
    %c0_i32_1 = arith.constant 0 : i32
    return %c0_i32, %c0_i32_0 : i32, i32
  }
  func.func @transform_7(%arg0: i32) -> (i32, i32) {
    %c0_i32 = arith.constant 0 : i32
    %c0_i32_0 = arith.constant 0 : i32
    %c0_i32_1 = arith.constant 0 : i32
    return %c0_i32, %c0_i32_0 : i32, i32
  }
  func.func @transform_8(%arg0: i32) -> (i32, i32) {
    %c0_i32 = arith.constant 0 : i32
    %c0_i32_0 = arith.constant 0 : i32
    %c0_i32_1 = arith.constant 0 : i32
    return %c0_i32, %c0_i32_0 : i32, i32
  }
  func.func @transform_9(%arg0: i32) -> (i32, i32) {
    %c0_i32 = arith.constant 0 : i32
    %c0_i32_0 = arith.constant 0 : i32
    %c0_i32_1 = arith.constant 0 : i32
    return %c0_i32, %c0_i32_0 : i32, i32
  }
  func.func @transform_10(%arg0: i32) -> (i32, i32) {
    %c0_i32 = arith.constant 0 : i32
    %c0_i32_0 = arith.constant 0 : i32
    %c0_i32_1 = arith.constant 0 : i32
    return %c0_i32, %c0_i32_0 : i32, i32
  }
  func.func @transform_11(%arg0: i32) -> (i32, i32) {
    %c0_i32 = arith.constant 0 : i32
    %c0_i32_0 = arith.constant 0 : i32
    return %arg0, %c0_i32 : i32, i32
  }
}

</mosaic_0001>

<bundles_post_ra>
// kernel: apar_forward.1
= control target key start
LH: loop header
LB: loop body
LE: loop exit
PB: predicated region body
PF: predicated region fallthrough
CT: control target
= control target key end

     0   :  { %vm68_vm0 = vcmask 523264   ;;  %v6262_v28 = vmov 192.0   ;;  %s9790_s0 = inlined_call_operand.vmem [shape: f32[56,192], index: 0, kind: input, shape index: {}]   ;;  %s9791_s2 = inlined_call_operand.vmem [shape: bf16[192,1536], index: 2, kind: input, shape index: {}]   ;;  %s9792_s8 = inlined_call_operand.vmem [shape: f32[8,192], index: 8, kind: input, shape index: {}]   ;;  %s9793_s7 = inlined_call_operand.vmem [shape: f32[1,1536], index: 7, kind: input, shape index: {}]   ;;  %s9794_s1 = inlined_call_operand.vmem [shape: f32[56,56], index: 1, kind: input, shape index: {}]   ;;  %s9795_s3 = inlined_call_operand.vmem [shape: bf16[512,192], index: 3, kind: input, shape index: {}]   ;;  %s9796_s4 = inlined_call_operand.vmem [shape: bf16[192,256], index: 4, kind: input, shape index: {}]   ;;  %s9797_s5 = inlined_call_operand.vmem [shape: bf16[256,192], index: 5, kind: input, shape index: {}]   ;;  %s9798_s9 = inlined_call_operand.vmem [shape: f32[1,256], index: 9, kind: input, shape index: {}]   ;;  %s9799_s6 = inlined_call_operand.vmem [shape: bf16[192,128], index: 6, kind: input, shape index: {}]   ;;  %s9800_s10 = inlined_call_operand.vmem [shape: f32[1,128], index: 10, kind: input, shape index: {}]   ;;  %s9801_s11 = inlined_call_operand.vmem [shape: f32[56,128], index: 11, kind: output, shape index: {}]  }
   0x1   :  { %v6326_v0 = vld [vmem:[%s9790_s0 + $0x40] sm:$0xff]  ;;  %v6331_v1 = vld [vmem:[%s9790_s0 + $0x48] sm:$0xff]  ;;  %v50_v10 = vld [vmem:[%s9790_s0 + $0x58] sm:$0xff]  ;;  %6091 = vrcp.f32 %v6262_v28 }
   0x2   :  { %v43_v2 = vld [vmem:[%s9790_s0 + $0x20] sm:$0xff]  ;;  %v85_v3 = vsel %vm68_vm0, %v6331_v1, 0.0  ;;  %v44_v4 = vld [vmem:[%s9790_s0 + $0x28] sm:$0xff]  ;;  %v46_v13 = vld [vmem:[%s9790_s0 + $0x38] sm:$0xff]  ;;  %v89_v16 = vsel %vm68_vm0, %v50_v10, 0.0 }
   0x3   :  { %v39_v5 = vld [vmem:[%s9790_s0] sm:$0xff]  ;;  %v40_v6 = vld [vmem:[%s9790_s0 + $0x8] sm:$0xff]  ;;  %v86_v7 = vadd.f32 %v85_v3, %v6326_v0  ;;  %v77_v8 = vsel %vm68_vm0, %v44_v4, 0.0  ;;  %v42_v14 = vld [vmem:[%s9790_s0 + $0x18] sm:$0xff]  ;;  %v81_v18 = vsel %vm68_vm0, %v46_v13, 0.0 }
   0x4   :  { %v69_v9 = vsel %vm68_vm0, %v40_v6, 0.0  ;;  %v78_v11 = vadd.f32 %v77_v8, %v43_v2  ;;  %v49_v15 = vld [vmem:[%s9790_s0 + $0x50] sm:$0xff]  ;;  %v73_v20 = vsel %vm68_vm0, %v42_v14, 0.0  ;;  %v6374_v24 = vld [vmem:[%s9790_s0 + $0x68] sm:$0xff]  ;;  %v6379_v25 = vld [vmem:[%s9790_s0 + $0x60] sm:$0xff] }
   0x5   :  { %v70_v12 = vadd.f32 %v69_v9, %v39_v5  ;;  %87 = vadd.xlane.f32.xlu2 %v86_v7  ;;  %v45_v17 = vld [vmem:[%s9790_s0 + $0x30] sm:$0xff]  ;;  %v90_v21 = vadd.f32 %v89_v16, %v49_v15  ;;  %v93_v26 = vsel %vm68_vm0, %v6374_v24, 0.0 }
   0x6   :  { %79 = vadd.xlane.f32.xlu1 %v78_v11  ;;  %v41_v19 = vld [vmem:[%s9790_s0 + $0x10] sm:$0xff]  ;;  %v82_v22 = vadd.f32 %v81_v18, %v45_v17  ;;  %v94_v27 = vadd.f32 %v93_v26, %v6379_v25 }
   0x7   :  { %71 = vadd.xlane.f32.xlu0 %v70_v12  ;;  %v74_v23 = vadd.f32 %v73_v20, %v41_v19  ;;  %v6092_v29 = vpop.eup %6091  ;;  %v5889_v28 = vld [vmem:[%s9791_s2 + $0x2cc] sm:$0xf0] }
   0x8   :  { %v98_v30 = vmul.f32 192.0, %v6092_v29  ;;  %vm102_vm1 = vweird.f32 %v6092_v29 }
   0xa   :  { %v99_v31 = vsub.f32 1.0, %v98_v30 }
   0xc   :  { %v100_v32 = vmul.f32 %v6092_v29, %v99_v31  ;;  %v4947_v31 = vld [vmem:[%s9791_s2 + $0x2d0] sm:$0xf0] }
   0xd   :  { %91 = vadd.xlane.f32.xlu2 %v90_v21 }
   0xe   :  { %83 = vadd.xlane.f32.xlu1 %v82_v22  ;;  %v101_v33 = vadd.f32 %v6092_v29, %v100_v32 }
   0xf   :  { %75 = vadd.xlane.f32.xlu0 %v74_v23 }
  0x10   :  { %v6384_v34 = vsel %vm102_vm1, %v6092_v29, %v101_v33  ;;  %v5883_v29 = vld [vmem:[%s9791_s2 + $0x2a4] sm:$0xf]  ;;  %v4897_v33 = vld [vmem:[%s9791_s2 + $0x240] sm:$0xf] }
  0x11   :  { %9804 = vst [vmem:[#allocation2_spill] sm:$0xff] %v6384_v34  ;;  %v4950_v32 = vor.u32 %v5883_v29, %v4947_v31  ;;  %v5817_v31 = vld [vmem:[%s9791_s2 + $0x8c] sm:$0xf0] }
  0x13   :  { %1271 = vmatpush.bf16.msra.mxu2 %v4950_v32  ;;  %v5041_v32 = vld [vmem:[%s9791_s2 + $0x360] sm:$0xf] }
  0x17   :  { %95 = vadd.xlane.f32.xlu0 %v94_v27 }
  0x78   :  { %v88_v35 = vpop.xlane.xlu2 %87 }
  0x79   :  { %v80_v36 = vpop.xlane.xlu1 %79  ;;  %v108_v51 = vmul.f32 %v6384_v34, %v88_v35  ;;  %v5877_v35 = vld [vmem:[%s9791_s2 + $0x26c] sm:$0xf0] }
  0x7a   :  { %v72_v37 = vpop.xlane.xlu0 %71  ;;  %v106_v38 = vmul.f32 %v6384_v34, %v80_v36  ;;  %v5871_v36 = vld [vmem:[%s9791_s2 + $0x244] sm:$0xf] }
  0x7b   :  { %v104_v39 = vmul.f32 %v6384_v34, %v72_v37  ;;  %v6423_v3 = vsub.f32 %v6331_v1, %v108_v51  ;;  %v4898_v37 = vor.u32 %v5877_v35, %v4897_v33  ;;  %v5913_v35 = vld [vmem:[%s9791_s2 + $0x38c] sm:$0xf0] }
  0x7c   :  { %v6388_v40 = vsub.f32 %v43_v2, %v106_v38  ;;  %v6390_v41 = vsub.f32 %v44_v4, %v106_v38  ;;  %v4899_v38 = vld [vmem:[%s9791_s2 + $0x270] sm:$0xf0] }
  0x7d   :  { %v6392_v42 = vsub.f32 %v39_v5, %v104_v39  ;;  %v6394_v43 = vsub.f32 %v40_v6, %v104_v39  ;;  %v4902_v39 = vor.u32 %v5871_v36, %v4899_v38  ;;  %v5811_v36 = vld [vmem:[%s9791_s2 + $0x64] sm:$0xf] }
  0x7e   :  { %v129_v44 = vmul.f32 %v6388_v40, %v6388_v40  ;;  %v130_v45 = vmul.f32 %v6390_v41, %v6390_v41 }
  0x7f   :  { %v125_v46 = vmul.f32 %v6392_v42, %v6392_v42  ;;  %v126_v47 = vmul.f32 %v6394_v43, %v6394_v43  ;;  %1272 = vmatpush.bf16.msra.mxu2 %v4902_v39  ;;  %v5042_v39 = vor.u32 %v5913_v35, %v5041_v32 }
  0x80   :  { %v92_v48 = vpop.xlane.xlu2 %91  ;;  %v147_v49 = vsel %vm68_vm0, %v130_v45, 0.0  ;;  %v5865_v45 = vld [vmem:[%s9791_s2 + $0x20c] sm:$0xf0] }
  0x81   :  { %v139_v50 = vsel %vm68_vm0, %v126_v47, 0.0  ;;  %v109_v52 = vmul.f32 %v6384_v34, %v92_v48  ;;  %v84_v53 = vpop.xlane.xlu1 %83  ;;  %v148_v55 = vadd.f32 %v147_v49, %v129_v44  ;;  %v4849_v44 = vld [vmem:[%s9791_s2 + $0x1e0] sm:$0xf]  ;;  %v4851_v48 = vld [vmem:[%s9791_s2 + $0x210] sm:$0xf0] }
  0x82   :  { %v76_v54 = vpop.xlane.xlu0 %75  ;;  %v140_v56 = vadd.f32 %v139_v50, %v125_v46  ;;  %v107_v57 = vmul.f32 %v6384_v34, %v84_v53  ;;  %v5859_v46 = vld [vmem:[%s9791_s2 + $0x1e4] sm:$0xf]  ;;  %v4850_v47 = vor.u32 %v5865_v45, %v4849_v44  ;;  %v4801_v50 = vld [vmem:[%s9791_s2 + $0x180] sm:$0xf] }
  0x83   :  { %v105_v58 = vmul.f32 %v6384_v34, %v76_v54  ;;  %v6410_v59 = vsub.f32 %v49_v15, %v109_v52  ;;  %v6412_v60 = vsub.f32 %v50_v10, %v109_v52  ;;  %149 = vadd.xlane.f32.xlu0 %v148_v55  ;;  %v6439_v10 = vsub.f32 %v6326_v0, %v108_v51  ;;  %v5853_v51 = vld [vmem:[%s9791_s2 + $0x1ac] sm:$0xf0]  ;;  %v5847_v52 = vld [vmem:[%s9791_s2 + $0x184] sm:$0xf]  ;;  %v4803_v54 = vld [vmem:[%s9791_s2 + $0x1b0] sm:$0xf0] }
  0x84   :  { %141 = vadd.xlane.f32.xlu1 %v140_v56  ;;  %v6414_v61 = vsub.f32 %v45_v17, %v107_v57  ;;  %v6416_v62 = vsub.f32 %v46_v13, %v107_v57  ;;  %v134_v17 = vmul.f32 %v6423_v3, %v6423_v3  ;;  %v4854_v49 = vor.u32 %v5859_v46, %v4851_v48  ;;  %v4753_v56 = vld [vmem:[%s9791_s2 + $0x120] sm:$0xf]  ;;  %v5841_v57 = vld [vmem:[%s9791_s2 + $0x14c] sm:$0xf0]  ;;  %v5907_v45 = vld [vmem:[%s9791_s2 + $0x364] sm:$0xf] }
  0x85   :  { %v6418_v63 = vsub.f32 %v41_v19, %v105_v58  ;;  %v6420_v2 = vsub.f32 %v42_v14, %v105_v58  ;;  %v135_v4 = vmul.f32 %v6410_v59, %v6410_v59  ;;  %v136_v5 = vmul.f32 %v6412_v60, %v6412_v60  ;;  %v5137_v58 = vld [vmem:[%s9791_s2 + $0x420] sm:$0xf] }
  0x86   :  { %v131_v6 = vmul.f32 %v6414_v61, %v6414_v61  ;;  %v132_v7 = vmul.f32 %v6416_v62, %v6416_v62  ;;  %v133_v20 = vmul.f32 %v6439_v10, %v6439_v10  ;;  %v155_v21 = vsel %vm68_vm0, %v134_v17, 0.0  ;;  %1273 = vmatpush.bf16.msra.mxu2 %v4854_v49  ;;  %v5925_v17 = vld [vmem:[%s9791_s2 + $0x3ec] sm:$0xf0]  ;;  %v4609_v49 = vld [vmem:[%s9791_s2] sm:$0xf] }
  0x87   :  { %v127_v8 = vmul.f32 %v6418_v63, %v6418_v63  ;;  %v128_v9 = vmul.f32 %v6420_v2, %v6420_v2  ;;  %v159_v1 = vsel %vm68_vm0, %v136_v5, 0.0  ;;  %v4802_v53 = vor.u32 %v5853_v51, %v4801_v50  ;;  %v5937_v5 = vld [vmem:[%s9791_s2 + $0x44c] sm:$0xf0]  ;;  %v4993_v51 = vld [vmem:[%s9791_s2 + $0x300] sm:$0xf] }
  0x88   :  { %v160_v11 = vadd.f32 %v159_v1, %v135_v4  ;;  %v151_v12 = vsel %vm68_vm0, %v132_v7, 0.0  ;;  %v156_v26 = vadd.f32 %v155_v21, %v133_v20  ;;  %v4806_v55 = vor.u32 %v5847_v52, %v4803_v54  ;;  %v4755_v7 = vld [vmem:[%s9791_s2 + $0x150] sm:$0xf0]  ;;  %v5931_v1 = vld [vmem:[%s9791_s2 + $0x424] sm:$0xf] }
  0x89   :  { %v143_v13 = vsel %vm68_vm0, %v128_v9, 0.0  ;;  %v152_v15 = vadd.f32 %v151_v12, %v131_v6  ;;  %v4754_v4 = vor.u32 %v5841_v57, %v4753_v56  ;;  %v5835_v6 = vld [vmem:[%s9791_s2 + $0x124] sm:$0xf]  ;;  %v4707_v20 = vld [vmem:[%s9791_s2 + $0xf0] sm:$0xf0] }
  0x8a   :  { %v96_v14 = vpop.xlane.xlu0 %95  ;;  %v144_v16 = vadd.f32 %v143_v13, %v127_v8  ;;  %1274 = vmatpush.bf16.msra.mxu2 %v4806_v55  ;;  %v5138_v8 = vor.u32 %v5937_v5, %v5137_v58  ;;  %v4758_v9 = vor.u32 %v5835_v6, %v4755_v7  ;;  %v4705_v13 = vld [vmem:[%s9791_s2 + $0xc0] sm:$0xf]  ;;  %v5805_v50 = vld [vmem:[%s9791_s2 + $0x2c] sm:$0xf0]  ;;  %v5799_v54 = vld [vmem:[%s9791_s2 + $0x4] sm:$0xf] }
  0x8b   :  { %v110_v18 = vmul.f32 %v6384_v34, %v96_v14  ;;  %161 = vadd.xlane.f32.xlu0 %v160_v11  ;;  %v5139_v11 = vld [vmem:[%s9791_s2 + $0x450] sm:$0xf0]  ;;  %v5829_v14 = vld [vmem:[%s9791_s2 + $0xec] sm:$0xf0]  ;;  %v4610_v52 = vor.u32 %v5805_v50, %v4609_v49  ;;  %v5895_v58 = vld [vmem:[%s9791_s2 + $0x304] sm:$0xf] }
  0x8c   :  { %153 = vadd.xlane.f32.xlu1 %v152_v15  ;;  %145 = vadd.xlane.f32.xlu2 %v144_v16  ;;  %v5142_v12 = vor.u32 %v5931_v1, %v5139_v11  ;;  %v5089_v15 = vld [vmem:[%s9791_s2 + $0x3c0] sm:$0xf]  ;;  %v4706_v16 = vor.u32 %v5829_v14, %v4705_v13  ;;  %v4611_v55 = vld [vmem:[%s9791_s2 + $0x30] sm:$0xf0] }
  0x8d   :  { %v6447_v19 = vsub.f32 %v6379_v25, %v110_v18  ;;  %v6450_v0 = vsub.f32 %v6374_v24, %v110_v18  ;;  %v4945_v24 = vld [vmem:[%s9791_s2 + $0x2a0] sm:$0xf]  ;;  %1247 = vmatpush.bf16.msra.mxu1 %v5138_v8  ;;  %v5823_v18 = vld [vmem:[%s9791_s2 + $0xc4] sm:$0xf]  ;;  %v5090_v21 = vor.u32 %v5925_v17, %v5089_v15  ;;  %v4614_v57 = vor.u32 %v5799_v54, %v4611_v55 }
  0x8e   :  { %v4946_v30 = vor.u32 %v5889_v28, %v4945_v24  ;;  %1275 = vmatpush.bf16.msra.mxu2 %v4758_v9  ;;  %1303 = vmatpush.bf16.msra.mxu3 %v5142_v12 }
  0x8f   :  { %v137_v22 = vmul.f32 %v6447_v19, %v6447_v19  ;;  %v138_v23 = vmul.f32 %v6450_v0, %v6450_v0 }
  0x90   :  { %1215 = vmatpush.bf16.msra.mxu0 %v4946_v30  ;;  %v4657_v30 = vld [vmem:[%s9791_s2 + $0x60] sm:$0xf] }
  0x91   :  { %v163_v27 = vsel %vm68_vm0, %v138_v23, 0.0  ;;  %v5919_v23 = vld [vmem:[%s9791_s2 + $0x3c4] sm:$0xf]  ;;  %1248 = vmatpush.bf16.msra.mxu1 %v5090_v21  ;;  %v4658_v33 = vor.u32 %v5817_v31, %v4657_v30  ;;  %v5884_v21 = vld [vmem:[%s9791_s2 + $0x2ac] sm:$0xf] }
  0x92   :  { %v164_v25 = vadd.f32 %v163_v27, %v137_v22  ;;  %v4710_v22 = vor.u32 %v5823_v18, %v4707_v20 }
  0x94   :  { %165 = vadd.xlane.f32.xlu1 %v164_v25  ;;  %157 = vadd.xlane.f32.xlu2 %v156_v26  ;;  %v5091_v26 = vld [vmem:[%s9791_s2 + $0x3f0] sm:$0xf0] }
  0x95   :  { %1216 = vmatpush.bf16.msra.mxu0 %v4898_v37  ;;  %v5094_v24 = vor.u32 %v5919_v23, %v5091_v26  ;;  %1276 = vmatpush.bf16.msra.mxu2 %v4710_v22  ;;  %v4659_v37 = vld [vmem:[%s9791_s2 + $0x90] sm:$0xf0]  ;;  %v4955_v22 = vld [vmem:[%s9791_s2 + $0x2d8] sm:$0xf0] }
  0x96   :  { %v4662_v44 = vor.u32 %v5811_v36, %v4659_v37  ;;  %1249 = vmatpush.bf16.msra.mxu1 %v5042_v39 }
  0x97   :  { %1304 = vmatpush.bf16.msra.mxu3 %v5094_v24  ;;  %v5872_v24 = vld [vmem:[%s9791_s2 + $0x24c] sm:$0xf] }
  0x99   :  { %1217 = vmatpush.bf16.msra.mxu0 %v4850_v47  ;;  %v5043_v47 = vld [vmem:[%s9791_s2 + $0x390] sm:$0xf0]  ;;  %1277 = vmatpush.bf16.msra.mxu2 %v4662_v44  ;;  %v53_v44 = vld [vmem:[%s9792_s8] ss:$8 sm:$0x3] }
  0x9a   :  { %v5046_v48 = vor.u32 %v5907_v45, %v5043_v47  ;;  %v6654_v50 = vperm.slane %v53_v44, 0 }
  0x9c   :  { %1305 = vmatpush.bf16.msra.mxu3 %v5046_v48 }
  0x9d   :  { %1218 = vmatpush.bf16.msra.mxu0 %v4802_v53  ;;  %v5901_v53 = vld [vmem:[%s9791_s2 + $0x32c] sm:$0xf0]  ;;  %1278 = vmatpush.bf16.msra.mxu2 %v4614_v57  ;;  %v4859_v57 = vld [vmem:[%s9791_s2 + $0x218] sm:$0xf0] }
  0x9e   :  { %v4994_v56 = vor.u32 %v5901_v53, %v4993_v51 }
  0xa0   :  { %1250 = vmatpush.bf16.msra.mxu1 %v4994_v56  ;;  %v5860_v56 = vld [vmem:[%s9791_s2 + $0x1ec] sm:$0xf] }
  0xa1   :  { %1219 = vmatpush.bf16.msra.mxu0 %v4754_v4  ;;  %v4995_v4 = vld [vmem:[%s9791_s2 + $0x330] sm:$0xf0] }
  0xa2   :  { %v4998_v6 = vor.u32 %v5895_v58, %v4995_v4  ;;  %v6664_v58 = vperm.slane %v53_v44, 1 }
  0xa4   :  { %1306 = vmatpush.bf16.msra.mxu3 %v4998_v6  ;;  %v4811_v6 = vld [vmem:[%s9791_s2 + $0x1b8] sm:$0xf0] }
  0xa5   :  { %1220 = vmatpush.bf16.msra.mxu0 %v4706_v16 }
  0xa9   :  { %1221 = vmatpush.bf16.msra.mxu0 %v4658_v33 }
  0xad   :  { %1222 = vmatpush.bf16.msra.mxu0 %v4610_v52 }
  0xf6   :  { %v150_v25 = vpop.xlane.xlu0 %149 }
  0xf7   :  { %v142_v27 = vpop.xlane.xlu1 %141  ;;  %v169_v29 = vmul.f32 %v150_v25, %v6384_v34  ;;  %v4958_v25 = vor.u32 %v5884_v21, %v4955_v22 }
  0xf8   :  { %v167_v28 = vmul.f32 %v142_v27, %v6384_v34 }
  0xf9   :  { %v6581_v46 = vadd.f32 1e-05, %v169_v29  ;;  %1383 = vmatpush.bf16.msrb.mxu0 %v4958_v25 }
  0xfa   :  { %v6576_v38 = vadd.f32 1e-05, %v167_v28  ;;  %v4907_v28 = vld [vmem:[%s9791_s2 + $0x278] sm:$0xf0] }
  0xfb   :  { %v4910_v33 = vor.u32 %v5872_v24, %v4907_v28  ;;  %vm207_vm8 = vweird.f32 %v6581_v46 }
  0xfc   :  { %6093 = vrsqrt.f32 %v6576_v38  ;;  %vm187_vm3 = vweird.f32 %v6576_v38 }
  0xfd   :  { %6095 = vrsqrt.f32 %v6581_v46  ;;  %1384 = vmatpush.bf16.msrb.mxu0 %v4910_v33 }
  0xfe   :  { %v162_v15 = vpop.xlane.xlu0 %161 }
  0xff   :  { %v154_v5 = vpop.xlane.xlu1 %153  ;;  %v146_v8 = vpop.xlane.xlu2 %145  ;;  %v172_v18 = vmul.f32 %v162_v15, %v6384_v34 }
 0x100   :  { %v170_v7 = vmul.f32 %v154_v5, %v6384_v34  ;;  %v168_v9 = vmul.f32 %v146_v8, %v6384_v34 }
 0x101   :  { %v6640_v36 = vadd.f32 1e-05, %v172_v18 }
 0x102   :  { %v6094_v1 = vpop.eup %6093  ;;  %v6614_v11 = vadd.f32 1e-05, %v170_v7  ;;  %v175_v13 = vadd.f32 1e-05, %v168_v9 }
 0x103   :  { %v182_v12 = vmul.f32 %v6094_v1, %v6576_v38  ;;  %v6618_v16 = vpop.eup %6095  ;;  %vm188_vm2 = vweird.f32 %v6094_v1  ;;  %v4600_v38 = vld [vmem:[%s9792_s8 + $0x1] ss:$8 sm:$0x3]  ;;  %vm237_vm1 = vweird.f32 %v6640_v36 }
 0x104   :  { %6097 = vrsqrt.f32 %v6614_v11  ;;  %v202_v26 = vmul.f32 %v6618_v16, %v6581_v46  ;;  %vm189_vm4 = vmor %vm187_vm3, %vm188_vm2  ;;  %vm197_vm6 = vweird.f32 %v175_v13  ;;  %v6673_v7 = vperm.slane %v4600_v38, 0  ;;  %v4953_v46 = vld [vmem:[%s9791_s2 + $0x2a8] sm:$0xf] }
 0x105   :  { %v183_v14 = vmul.f32 %v6094_v1, %v182_v12  ;;  %6099 = vrsqrt.f32 %v175_v13  ;;  %v6675_v8 = vperm.slane %v4600_v38, 1  ;;  %vm217_vm9 = vweird.f32 %v6614_v11  ;;  %v4763_v38 = vld [vmem:[%s9791_s2 + $0x158] sm:$0xf0] }
 0x106   :  { %v203_v37 = vmul.f32 %v6618_v16, %v202_v26  ;;  %6101 = vrsqrt.f32 %v6640_v36  ;;  %vm208_vm11 = vweird.f32 %v6618_v16 }
 0x107   :  { %v184_v17 = vmul.f32 0.5, %v183_v14  ;;  %v158_v20 = vpop.xlane.xlu2 %157  ;;  %v166_v55 = vpop.xlane.xlu1 %165  ;;  %vm209_vm13 = vmor %vm207_vm8, %vm208_vm11  ;;  %vm1946_vm8 = vcmask 457728  }
 0x108   :  { %v171_v27 = vmul.f32 %v158_v20, %v6384_v34  ;;  %v204_v51 = vmul.f32 0.5, %v203_v37  ;;  %v173_v9 = vmul.f32 %v166_v55, %v6384_v34 }
 0x109   :  { %v185_v23 = vsub.f32 1.5, %v184_v17 }
 0x10a   :  { %v6636_v29 = vpop.eup %6097  ;;  %v6644_v39 = vadd.f32 1e-05, %v171_v27  ;;  %v6692_v27 = vadd.f32 1e-05, %v173_v9 }
 0x10b   :  { %v6100_v30 = vpop.eup %6099  ;;  %v186_v31 = vmul.f32 %v6094_v1, %v185_v23  ;;  %v212_v32 = vmul.f32 %v6636_v29, %v6614_v11  ;;  %vm218_vm10 = vweird.f32 %v6636_v29 }
 0x10c   :  { %v192_v35 = vmul.f32 %v6100_v30, %v175_v13  ;;  %6103 = vrsqrt.f32 %v6644_v39  ;;  %vm198_vm5 = vweird.f32 %v6100_v30  ;;  %v6678_v12 = vpop.eup %6101  ;;  %v205_v13 = vsub.f32 1.5, %v204_v51  ;;  %vm219_vm12 = vmor %vm217_vm9, %vm218_vm10  ;;  %v4905_v51 = vld [vmem:[%s9791_s2 + $0x248] sm:$0xf] }
 0x10d   :  { %v213_v45 = vmul.f32 %v6636_v29, %v212_v32  ;;  %v190_v48 = vsel %vm189_vm4, %v6094_v1, %v186_v31  ;;  %vm199_vm7 = vmor %vm197_vm6, %vm198_vm5  ;;  %v4862_v1 = vor.u32 %v5860_v56, %v4859_v57  ;;  %v232_v25 = vmul.f32 %v6678_v12, %v6640_v36 }
 0x10e   :  { %v193_v47 = vmul.f32 %v6100_v30, %v192_v35  ;;  %v251_v52 = vmul.f32 %v190_v48, %v6392_v42  ;;  %v252_v4 = vmul.f32 %v190_v48, %v6394_v43  ;;  %v5848_v42 = vld [vmem:[%s9791_s2 + $0x18c] sm:$0xf]  ;;  %6105 = vrsqrt.f32 %v6692_v27 }
 0x10f   :  { %v214_v53 = vmul.f32 0.5, %v213_v45  ;;  %1385 = vmatpush.bf16.msrb.mxu0 %v4862_v1  ;;  %v4814_v22 = vor.u32 %v5848_v42, %v4811_v6  ;;  %v233_v45 = vmul.f32 %v6678_v12, %v232_v25  ;;  %v5866_v42 = vld [vmem:[%s9791_s2 + $0x214] sm:$0xf0]  ;;  %v5145_v6 = vld [vmem:[%s9791_s2 + $0x428] sm:$0xf]  ;;  %vm227_vm14 = vweird.f32 %v6644_v39 }
 0x110   :  { %v194_v49 = vmul.f32 0.5, %v193_v47  ;;  %v270_v43 = vmul.f32 %v6654_v50, %v251_v52  ;;  %v271_v18 = vmul.f32 %v6664_v58, %v252_v4  ;;  %v5878_v52 = vld [vmem:[%s9791_s2 + $0x274] sm:$0xf0]  ;;  %vm238_vm2 = vweird.f32 %v6678_v12 }
 0x111   :  { %v215_v14 = vsub.f32 1.5, %v214_v53  ;;  %v234_v56 = vmul.f32 0.5, %v233_v45  ;;  %v4906_v4 = vor.u32 %v5878_v52, %v4905_v51  ;;  %vm239_vm4 = vmor %vm237_vm1, %vm238_vm2  ;;  %v5812_v45 = vld [vmem:[%s9791_s2 + $0x6c] sm:$0xf]  ;;  %v5097_v52 = vld [vmem:[%s9791_s2 + $0x3c8] sm:$0xf]  ;;  %vm247_vm5 = vweird.f32 %v6692_v27 }
 0x112   :  { %v195_v54 = vsub.f32 1.5, %v194_v49  ;;  %v6681_v17 = vpop.eup %6103  ;;  %v289_v24 = vadd.f32 %v6673_v7, %v270_v43  ;;  %v290_v28 = vadd.f32 %v6675_v8, %v271_v18 }
 0x113   :  { %v222_v11 = vmul.f32 %v6681_v17, %v6644_v39  ;;  %1386 = vmatpush.bf16.msrb.mxu0 %v4814_v22  ;;  %v235_v22 = vsub.f32 1.5, %v234_v56  ;;  %vm228_vm15 = vweird.f32 %v6681_v17  ;;  %v5854_v39 = vld [vmem:[%s9791_s2 + $0x1b4] sm:$0xf0] }
 0x114   :  { %v196_v5 = vmul.f32 %v6100_v30, %v195_v54  ;;  %vm229_vm3 = vmor %vm227_vm14, %vm228_vm15 }
 0x115   :  { %v223_v37 = vmul.f32 %v6681_v17, %v222_v11  ;;  %v236_v36 = vmul.f32 %v6678_v12, %v235_v22  ;;  %v5001_v22 = vld [vmem:[%s9791_s2 + $0x308] sm:$0xf] }
 0x116   :  { %v200_v15 = vsel %vm199_vm7, %v6100_v30, %v196_v5  ;;  %v4857_v5 = vld [vmem:[%s9791_s2 + $0x1e8] sm:$0xf] }
 0x117   :  { %v253_v20 = vmul.f32 %v200_v15, %v6418_v63  ;;  %v254_v21 = vmul.f32 %v200_v15, %v6420_v2  ;;  %v206_v63 = vmul.f32 %v6618_v16, %v205_v13  ;;  %v216_v2 = vmul.f32 %v6636_v29, %v215_v14 }
 0x118   :  { %v224_v54 = vmul.f32 0.5, %v223_v37 }
 0x119   :  { %v272_v23 = vmul.f32 %v6654_v50, %v253_v20  ;;  %v273_v26 = vmul.f32 %v6664_v58, %v254_v21  ;;  %v220_v35 = vsel %vm219_vm12, %v6636_v29, %v216_v2  ;;  %v210_v44 = vsel %vm209_vm13, %v6618_v16, %v206_v63  ;;  %v5890_v16 = vld [vmem:[%s9791_s2 + $0x2d4] sm:$0xf0]  ;;  %v5836_v29 = vld [vmem:[%s9791_s2 + $0x12c] sm:$0xf]  ;;  %v4809_v2 = vld [vmem:[%s9791_s2 + $0x188] sm:$0xf] }
 0x11a   :  { %v257_v47 = vmul.f32 %v220_v35, %v6414_v61  ;;  %v258_v48 = vmul.f32 %v220_v35, %v6416_v62  ;;  %v4954_v49 = vor.u32 %v5890_v16, %v4953_v46  ;;  %v255_v53 = vmul.f32 %v210_v44, %v6388_v40  ;;  %v5824_v61 = vld [vmem:[%s9791_s2 + $0xcc] sm:$0xf]  ;;  %v4715_v62 = vld [vmem:[%s9791_s2 + $0xf8] sm:$0xf0]  ;;  %v6752_v40 = vpop.eup %6105  ;;  %v4761_v46 = vld [vmem:[%s9791_s2 + $0x128] sm:$0xf] }
 0x11b   :  { %v291_v30 = vadd.f32 %v6673_v7, %v272_v23  ;;  %v292_v31 = vadd.f32 %v6675_v8, %v273_v26  ;;  %v256_v55 = vmul.f32 %v210_v44, %v6390_v41  ;;  %v4766_v57 = vor.u32 %v5836_v29, %v4763_v38  ;;  %v5938_v41 = vld [vmem:[%s9791_s2 + $0x454] sm:$0xf0] }
 0x11c   :  { %1327 = vmatpush.bf16.msrb.mxu1 %v4954_v49  ;;  %v276_v9 = vmul.f32 %v6654_v50, %v257_v47  ;;  %v277_v1 = vmul.f32 %v6664_v58, %v258_v48  ;;  %v4718_v43 = vor.u32 %v5824_v61, %v4715_v62  ;;  %v5146_v13 = vor.u32 %v5938_v41, %v5145_v6  ;;  %v5842_v47 = vld [vmem:[%s9791_s2 + $0x154] sm:$0xf0]  ;;  %v5932_v48 = vld [vmem:[%s9791_s2 + $0x42c] sm:$0xf]  ;;  %v5147_v49 = vld [vmem:[%s9791_s2 + $0x458] sm:$0xf0] }
 0x11d   :  { %v6706_v32 = vpack.c.bf16 %v291_v30, %v289_v24  ;;  %v6708_v33 = vpack.c.bf16 %v292_v31, %v290_v28  ;;  %1387 = vmatpush.bf16.msrb.mxu0 %v4766_v57  ;;  %v274_v14 = vmul.f32 %v6654_v50, %v255_v53  ;;  %v225_v15 = vsub.f32 1.5, %v224_v54  ;;  %v5926_v61 = vld [vmem:[%s9791_s2 + $0x3f4] sm:$0xf0]  ;;  %v5920_v62 = vld [vmem:[%s9791_s2 + $0x3cc] sm:$0xf] }
 0x11e   :  { %v275_v18 = vmul.f32 %v6664_v58, %v256_v55  ;;  %v242_v20 = vmul.f32 %v6752_v40, %v6692_v27  ;;  %v4858_v21 = vor.u32 %v5866_v42, %v4857_v5  ;;  %1359 = vmatpush.bf16.msrb.mxu3 %v5146_v13  ;;  %v295_v23 = vadd.f32 %v6673_v7, %v276_v9  ;;  %v5099_v55 = vld [vmem:[%s9791_s2 + $0x3f8] sm:$0xf0]  ;;  %v4665_v9 = vld [vmem:[%s9791_s2 + $0x68] sm:$0xf]  ;;  %v5818_v13 = vld [vmem:[%s9791_s2 + $0x94] sm:$0xf0] }
 0x11f   :  { %1223 = vmatmul.bf16.vlgmr.msra.gmra.mxu0 %v6706_v32  ;;  %5183 = vmatmul.msk.bf16.vlgmr.msra.gmra.mxu1 %vm68_vm0, %v6708_v33  ;;  %v296_v26 = vadd.f32 %v6675_v8, %v277_v1  ;;  %v226_v63 = vmul.f32 %v6681_v17, %v225_v15  ;;  %v293_v25 = vadd.f32 %v6673_v7, %v274_v14  ;;  %v5049_v1 = vld [vmem:[%s9791_s2 + $0x368] sm:$0xf]  ;;  %v5908_v15 = vld [vmem:[%s9791_s2 + $0x36c] sm:$0xf]  ;;  %vm248_vm6 = vweird.f32 %v6752_v40  ;;  %v5885_v27 = vld [vmem:[%s9791_s2 + $0x2b4] sm:$0xf] }
 0x120   :  { %1279 = vmatmul.bf16.vlgmr.msra.gmra.mxu2 %v6706_v32  ;;  %5187 = vmatmul.msk.bf16.vlgmr.msra.gmra.mxu3 %vm68_vm0, %v6708_v33  ;;  %v294_v11 = vadd.f32 %v6675_v8, %v275_v18  ;;  %v243_v24 = vmul.f32 %v6752_v40, %v242_v20  ;;  %v4810_v31 = vor.u32 %v5854_v39, %v4809_v2  ;;  %v5051_v18 = vld [vmem:[%s9791_s2 + $0x398] sm:$0xf0]  ;;  %vm249_vm7 = vmor %vm247_vm5, %vm248_vm6 }
 0x121   :  { %1328 = vmatpush.bf16.msrb.mxu1 %v4906_v4  ;;  %1388 = vmatpush.bf16.msrb.mxu0 %v4718_v43  ;;  %v6786_v28 = vpack.c.bf16 %v295_v23, %v293_v25  ;;  %v230_v35 = vsel %vm229_vm3, %v6681_v17, %v226_v63  ;;  %v240_v44 = vsel %vm239_vm4, %v6678_v12, %v236_v36  ;;  %v4667_v17 = vld [vmem:[%s9791_s2 + $0x98] sm:$0xf0]  ;;  %v5914_v43 = vld [vmem:[%s9791_s2 + $0x394] sm:$0xf0]  ;;  %v4617_v25 = vld [vmem:[%s9791_s2 + $0x8] sm:$0xf] }
 0x122   :  { %v6788_v30 = vpack.c.bf16 %v296_v26, %v294_v11  ;;  %v244_v37 = vmul.f32 0.5, %v243_v24  ;;  %v259_v16 = vmul.f32 %v230_v35, %v6439_v10  ;;  %v260_v12 = vmul.f32 %v230_v35, %v6423_v3  ;;  %v4713_v3 = vld [vmem:[%s9791_s2 + $0xc8] sm:$0xf]  ;;  %v5830_v10 = vld [vmem:[%s9791_s2 + $0xf4] sm:$0xf0] }
 0x123   :  { %v4670_v29 = vor.u32 %v5812_v45, %v4667_v17  ;;  %v4762_v38 = vor.u32 %v5842_v47, %v4761_v46  ;;  %v5150_v51 = vor.u32 %v5932_v48, %v5147_v49  ;;  %v261_v53 = vmul.f32 %v240_v44, %v6410_v59  ;;  %v5800_v59 = vld [vmem:[%s9791_s2 + $0xc] sm:$0xf]  ;;  %v5902_v23 = vld [vmem:[%s9791_s2 + $0x334] sm:$0xf0]  ;;  %v5003_v35 = vld [vmem:[%s9791_s2 + $0x338] sm:$0xf0] }
 0x124   :  { %v262_v54 = vmul.f32 %v240_v44, %v6412_v60  ;;  %v245_v56 = vsub.f32 1.5, %v244_v37  ;;  %v5098_v57 = vor.u32 %v5926_v61, %v5097_v52  ;;  %v5102_v4 = vor.u32 %v5920_v62, %v5099_v55  ;;  %v4619_v60 = vld [vmem:[%s9791_s2 + $0x38] sm:$0xf0]  ;;  %v5806_v24 = vld [vmem:[%s9791_s2 + $0x34] sm:$0xf0] }
 0x125   :  { %1329 = vmatpush.bf16.msrb.mxu1 %v4858_v21  ;;  %1389 = vmatpush.bf16.msrb.mxu0 %v4670_v29  ;;  %v278_v5 = vmul.f32 %v6654_v50, %v259_v16  ;;  %v279_v42 = vmul.f32 %v6664_v58, %v260_v12  ;;  %v4714_v6 = vor.u32 %v5830_v10, %v4713_v3  ;;  %v4963_v29 = vld [vmem:[%s9791_s2 + $0x2e0] sm:$0xf0]  ;;  %v4961_v62 = vld [vmem:[%s9791_s2 + $0x2b0] sm:$0xf]  ;;  %v5891_v55 = vld [vmem:[%s9791_s2 + $0x2dc] sm:$0xf0] }
 0x126   :  { %1415 = vmatpush.bf16.msrb.mxu2 %v5150_v51  ;;  %v4622_v41 = vor.u32 %v5800_v59, %v4619_v60  ;;  %1360 = vmatpush.bf16.msrb.mxu3 %v5098_v57  ;;  %v5050_v14 = vor.u32 %v5914_v43, %v5049_v1  ;;  %v280_v20 = vmul.f32 %v6654_v50, %v261_v53  ;;  %v4913_v59 = vld [vmem:[%s9791_s2 + $0x250] sm:$0xf]  ;;  %v5879_v60 = vld [vmem:[%s9791_s2 + $0x27c] sm:$0xf0] }
 0x127   :  { %v281_v21 = vmul.f32 %v6664_v58, %v262_v54  ;;  %v5054_v26 = vor.u32 %v5908_v15, %v5051_v18  ;;  %v297_v63 = vadd.f32 %v6673_v7, %v278_v5  ;;  %v298_v2 = vadd.f32 %v6675_v8, %v279_v42  ;;  %v4819_v54 = vld [vmem:[%s9791_s2 + $0x1c0] sm:$0xf0]  ;;  %v5825_v42 = vld [vmem:[%s9791_s2 + $0xd4] sm:$0xf]  ;;  %v5867_v43 = vld [vmem:[%s9791_s2 + $0x21c] sm:$0xf0] }
 0x128   :  { %v4666_v39 = vor.u32 %v5818_v13, %v4665_v9  ;;  %v246_v11 = vmul.f32 %v6752_v40, %v245_v56  ;;  %v5002_v36 = vor.u32 %v5902_v23, %v5001_v22  ;;  %v299_v37 = vadd.f32 %v6673_v7, %v280_v20  ;;  %v5837_v56 = vld [vmem:[%s9791_s2 + $0x134] sm:$0xf]  ;;  %v4865_v9 = vld [vmem:[%s9791_s2 + $0x1f0] sm:$0xf] }
 0x129   :  { %1330 = vmatpush.bf16.msrb.mxu1 %v4810_v31  ;;  %1390 = vmatpush.bf16.msrb.mxu0 %v4622_v41  ;;  %v5896_v31 = vld [vmem:[%s9791_s2 + $0x30c] sm:$0xf]  ;;  %v300_v44 = vadd.f32 %v6675_v8, %v281_v21  ;;  %v4618_v46 = vor.u32 %v5806_v24, %v4617_v25  ;;  %v4966_v49 = vor.u32 %v5885_v27, %v4963_v29  ;;  %v5153_v13 = vld [vmem:[%s9791_s2 + $0x430] sm:$0xf]  ;;  %v5855_v21 = vld [vmem:[%s9791_s2 + $0x1bc] sm:$0xf0] }
 0x12a   :  { %1416 = vmatpush.bf16.msrb.mxu2 %v5102_v4  ;;  %1361 = vmatpush.bf16.msrb.mxu3 %v5050_v14  ;;  %v6895_v45 = vpack.c.bf16 %v299_v37, %v297_v63  ;;  %v5006_v16 = vor.u32 %v5896_v31, %v5003_v35  ;;  %v250_v12 = vsel %vm249_vm7, %v6752_v40, %v246_v11  ;;  %v5873_v40 = vld [vmem:[%s9791_s2 + $0x254] sm:$0xf]  ;;  %v4771_v4 = vld [vmem:[%s9791_s2 + $0x160] sm:$0xf0]  ;;  %v5939_v14 = vld [vmem:[%s9791_s2 + $0x45c] sm:$0xf0] }
 0x12b   :  { %v6897_v17 = vpack.c.bf16 %v300_v44, %v298_v2  ;;  %v263_v47 = vmul.f32 %v250_v12, %v6447_v19  ;;  %v264_v48 = vmul.f32 %v250_v12, %v6450_v0  ;;  %v4962_v57 = vor.u32 %v5891_v55, %v4961_v62  ;;  %v4817_v20 = vld [vmem:[%s9791_s2 + $0x190] sm:$0xf]  ;;  %v5813_v23 = vld [vmem:[%s9791_s2 + $0x74] sm:$0xf]  ;;  %v5155_v11 = vld [vmem:[%s9791_s2 + $0x460] sm:$0xf0] }
 0x12c   :  { %v4774_v5 = vor.u32 %v5837_v56, %v4771_v4  ;;  %v4914_v41 = vor.u32 %v5879_v60, %v4913_v59  ;;  %v5154_v15 = vor.u32 %v5939_v14, %v5153_v13  ;;  %v4866_v18 = vor.u32 %v5867_v43, %v4865_v9  ;;  %v4769_v63 = vld [vmem:[%s9791_s2 + $0x130] sm:$0xf]  ;;  %v5933_v25 = vld [vmem:[%s9791_s2 + $0x434] sm:$0xf]  ;;  %v5831_v35 = vld [vmem:[%s9791_s2 + $0xfc] sm:$0xf0] }
 0x12d   :  { %1331 = vmatpush.bf16.msrb.mxu1 %v4762_v38  ;;  %v4915_v38 = vld [vmem:[%s9791_s2 + $0x280] sm:$0xf0]  ;;  %1495 = vmatpush.bf16.msra.mxu0 %v4966_v49  ;;  %v282_v3 = vmul.f32 %v6654_v50, %v263_v47  ;;  %v283_v10 = vmul.f32 %v6664_v58, %v264_v48  ;;  %v5861_v50 = vld [vmem:[%s9791_s2 + $0x1f4] sm:$0xf]  ;;  %v4818_v22 = vor.u32 %v5855_v21, %v4817_v20  ;;  %v4721_v31 = vld [vmem:[%s9791_s2 + $0xd0] sm:$0xf] }
 0x12e   :  { %1417 = vmatpush.bf16.msrb.mxu2 %v5054_v26  ;;  %1362 = vmatpush.bf16.msrb.mxu3 %v5002_v36  ;;  %v4918_v51 = vor.u32 %v5873_v40, %v4915_v38  ;;  %v4867_v58 = vld [vmem:[%s9791_s2 + $0x220] sm:$0xf0]  ;;  %v5158_v36 = vor.u32 %v5933_v25, %v5155_v11  ;;  %v5105_v37 = vld [vmem:[%s9791_s2 + $0x3d0] sm:$0xf]  ;;  %v5927_v44 = vld [vmem:[%s9791_s2 + $0x3fc] sm:$0xf0]  ;;  %v4722_v47 = vor.u32 %v5831_v35, %v4721_v31 }
 0x12f   :  { %1228 = vmatmul.bf16.gmra.mxu0 %v6786_v28  ;;  %5184 = vmatmul.msk.bf16.gmra.mxu1 %vm68_vm0, %v6788_v30  ;;  %v301_v52 = vadd.f32 %v6673_v7, %v282_v3  ;;  %v302_v19 = vadd.f32 %v6675_v8, %v283_v10  ;;  %v5849_v7 = vld [vmem:[%s9791_s2 + $0x194] sm:$0xf]  ;;  %v4870_v8 = vor.u32 %v5861_v50, %v4867_v58  ;;  %v4675_v26 = vld [vmem:[%s9791_s2 + $0xa0] sm:$0xf0]  ;;  %v4673_v49 = vld [vmem:[%s9791_s2 + $0x70] sm:$0xf] }
 0x130   :  { %1284 = vmatmul.bf16.gmra.mxu2 %v6786_v28  ;;  %5188 = vmatmul.msk.bf16.gmra.mxu3 %vm68_vm0, %v6788_v30  ;;  %v4822_v61 = vor.u32 %v5849_v7, %v4819_v54  ;;  %v4678_v2 = vor.u32 %v5813_v23, %v4675_v26  ;;  %v5106_v12 = vor.u32 %v5927_v44, %v5105_v37  ;;  %v5801_v29 = vld [vmem:[%s9791_s2 + $0x14] sm:$0xf]  ;;  %v4627_v40 = vld [vmem:[%s9791_s2 + $0x40] sm:$0xf0]  ;;  %v5057_v38 = vld [vmem:[%s9791_s2 + $0x370] sm:$0xf] }
 0x131   :  { %1332 = vmatpush.bf16.msrb.mxu1 %v4714_v6  ;;  %1496 = vmatpush.bf16.msra.mxu0 %v4918_v51  ;;  %v6924_v53 = vpack.c.bf16 %v301_v52, %v301_v52  ;;  %v6926_v0 = vpack.c.bf16 %v302_v19, %v302_v19  ;;  %v4723_v6 = vld [vmem:[%s9791_s2 + $0x100] sm:$0xf0]  ;;  %v4630_v48 = vor.u32 %v5801_v29, %v4627_v40  ;;  %v5915_v51 = vld [vmem:[%s9791_s2 + $0x39c] sm:$0xf0]  ;;  %v5909_v52 = vld [vmem:[%s9791_s2 + $0x374] sm:$0xf] }
 0x132   :  { %1418 = vmatpush.bf16.msrb.mxu2 %v5006_v16  ;;  %v4726_v1 = vor.u32 %v5825_v42, %v4723_v6  ;;  %1471 = vmatpush.bf16.msra.mxu3 %v5154_v15  ;;  %v5107_v16 = vld [vmem:[%s9791_s2 + $0x400] sm:$0xf0]  ;;  %v5819_v3 = vld [vmem:[%s9791_s2 + $0x9c] sm:$0xf0]  ;;  %v5058_v10 = vor.u32 %v5915_v51, %v5057_v38  ;;  %v4625_v7 = vld [vmem:[%s9791_s2 + $0x10] sm:$0xf] }
 0x133   :  { %v5059_v19 = vld [vmem:[%s9791_s2 + $0x3a0] sm:$0xf0]  ;;  %v4674_v58 = vor.u32 %v5819_v3, %v4673_v49  ;;  %v5009_v54 = vld [vmem:[%s9791_s2 + $0x310] sm:$0xf]  ;;  %v5903_v62 = vld [vmem:[%s9791_s2 + $0x33c] sm:$0xf0] }
 0x134   :  { %v5062_v50 = vor.u32 %v5909_v52, %v5059_v19  ;;  %v5897_v55 = vld [vmem:[%s9791_s2 + $0x314] sm:$0xf]  ;;  %v5011_v56 = vld [vmem:[%s9791_s2 + $0x340] sm:$0xf0]  ;;  %v5886_v59 = vld [vmem:[%s9791_s2 + $0x2bc] sm:$0xf] }
 0x135   :  { %1333 = vmatpush.bf16.msrb.mxu1 %v4666_v39  ;;  %1497 = vmatpush.bf16.msra.mxu0 %v4870_v8  ;;  %v5843_v39 = vld [vmem:[%s9791_s2 + $0x15c] sm:$0xf0]  ;;  %v5014_v4 = vor.u32 %v5897_v55, %v5011_v56  ;;  %v4971_v60 = vld [vmem:[%s9791_s2 + $0x2e8] sm:$0xf0]  ;;  %v5874_v42 = vld [vmem:[%s9791_s2 + $0x25c] sm:$0xf] }
 0x136   :  { %v4770_v24 = vor.u32 %v5843_v39, %v4769_v63  ;;  %1527 = vmatpush.bf16.msra.mxu2 %v5158_v36  ;;  %1472 = vmatpush.bf16.msra.mxu3 %v5106_v12  ;;  %v5807_v8 = vld [vmem:[%s9791_s2 + $0x3c] sm:$0xf0]  ;;  %v4923_v6 = vld [vmem:[%s9791_s2 + $0x288] sm:$0xf0]  ;;  %v5862_v9 = vld [vmem:[%s9791_s2 + $0x1fc] sm:$0xf] }
 0x137   :  { %v7111_v13 = vld [vmem:[%s9793_s7] sm:$0xff]  ;;  %v5850_v14 = vld [vmem:[%s9791_s2 + $0x19c] sm:$0xf]  ;;  %v4827_v15 = vld [vmem:[%s9791_s2 + $0x1c8] sm:$0xf0] }
 0x138   :  { %v7120_v20 = vperm.slane %v7111_v13, 0  ;;  %v7128_v63 = vperm.slane %v7111_v13, 1  ;;  %v5892_v39 = vld [vmem:[%s9791_s2 + $0x2e4] sm:$0xf0]  ;;  %v5838_v25 = vld [vmem:[%s9791_s2 + $0x13c] sm:$0xf] }
 0x139   :  { %1334 = vmatpush.bf16.msrb.mxu1 %v4618_v46  ;;  %1498 = vmatpush.bf16.msra.mxu0 %v4822_v61  ;;  %v5921_v46 = vld [vmem:[%s9791_s2 + $0x3d4] sm:$0xf]  ;;  %v4626_v61 = vor.u32 %v5807_v8, %v4625_v7  ;;  %v5880_v12 = vld [vmem:[%s9791_s2 + $0x284] sm:$0xf0]  ;;  %v4731_v49 = vld [vmem:[%s9791_s2 + $0x108] sm:$0xf0] }
 0x13a   :  { %v5110_v27 = vor.u32 %v5921_v46, %v5107_v16  ;;  %1473 = vmatpush.bf16.msra.mxu3 %v5058_v10  ;;  %v4921_v16 = vld [vmem:[%s9791_s2 + $0x258] sm:$0xf]  ;;  %v5868_v3 = vld [vmem:[%s9791_s2 + $0x224] sm:$0xf0] }
 0x13b   :  { %v4922_v29 = vor.u32 %v5880_v12, %v4921_v16  ;;  %v4873_v38 = vld [vmem:[%s9791_s2 + $0x1f8] sm:$0xf]  ;;  %v5802_v16 = vld [vmem:[%s9791_s2 + $0x1c] sm:$0xf]  ;;  %v4635_v12 = vld [vmem:[%s9791_s2 + $0x48] sm:$0xf0] }
 0x13c   :  { %1528 = vmatpush.bf16.msra.mxu2 %v5110_v27  ;;  %v4874_v10 = vor.u32 %v5868_v3, %v4873_v38  ;;  %v4825_v8 = vld [vmem:[%s9791_s2 + $0x198] sm:$0xf] }
 0x13d   :  { %1439 = vmatpush.bf16.msra.mxu1 %v4962_v57  ;;  %1499 = vmatpush.bf16.msra.mxu0 %v4774_v5  ;;  %v5010_v57 = vor.u32 %v5903_v62, %v5009_v54  ;;  %v4974_v5 = vor.u32 %v5886_v59, %v4971_v60  ;;  %v5856_v54 = vld [vmem:[%s9791_s2 + $0x1c4] sm:$0xf0]  ;;  %v5814_v60 = vld [vmem:[%s9791_s2 + $0x7c] sm:$0xf]  ;;  %v5065_v38 = vld [vmem:[%s9791_s2 + $0x378] sm:$0xf] }
 0x13e   :  { %v4826_v62 = vor.u32 %v5856_v54, %v4825_v8 }
 0x13f   :  { %1233 = vmatmul.bf16.gmra.mxu0 %v6895_v45  ;;  %5185 = vmatmul.msk.bf16.gmra.mxu1 %vm68_vm0, %v6897_v17 }
 0x140   :  { %1289 = vmatmul.bf16.gmra.mxu2 %v6895_v45  ;;  %5189 = vmatmul.msk.bf16.gmra.mxu3 %vm68_vm0, %v6897_v17 }
 0x141   :  { %1440 = vmatpush.bf16.msra.mxu1 %v4914_v41  ;;  %1500 = vmatpush.bf16.msra.mxu0 %v4726_v1  ;;  %v4926_v41 = vor.u32 %v5874_v42, %v4923_v6  ;;  %v4875_v1 = vld [vmem:[%s9791_s2 + $0x228] sm:$0xf0]  ;;  %v4777_v42 = vld [vmem:[%s9791_s2 + $0x138] sm:$0xf] }
 0x142   :  { %1529 = vmatpush.bf16.msra.mxu2 %v5062_v50  ;;  %1474 = vmatpush.bf16.msra.mxu3 %v5010_v57  ;;  %v4878_v43 = vor.u32 %v5862_v9, %v4875_v1  ;;  %v5161_v57 = vld [vmem:[%s9791_s2 + $0x438] sm:$0xf]  ;;  %v5934_v9 = vld [vmem:[%s9791_s2 + $0x43c] sm:$0xf]  ;;  %v5163_v1 = vld [vmem:[%s9791_s2 + $0x468] sm:$0xf0] }
 0x145   :  { %1441 = vmatpush.bf16.msra.mxu1 %v4866_v18  ;;  %1501 = vmatpush.bf16.msra.mxu0 %v4678_v2  ;;  %v4830_v18 = vor.u32 %v5850_v14, %v4827_v15  ;;  %v4969_v2 = vld [vmem:[%s9791_s2 + $0x2b8] sm:$0xf]  ;;  %v5166_v14 = vor.u32 %v5934_v9, %v5163_v1  ;;  %v5019_v9 = vld [vmem:[%s9791_s2 + $0x348] sm:$0xf0] }
 0x146   :  { %1530 = vmatpush.bf16.msra.mxu2 %v5014_v4  ;;  %v4970_v11 = vor.u32 %v5892_v39, %v4969_v2  ;;  %v5940_v4 = vld [vmem:[%s9791_s2 + $0x464] sm:$0xf0]  ;;  %v4729_v2 = vld [vmem:[%s9791_s2 + $0xd8] sm:$0xf] }
 0x147   :  { %v5162_v59 = vor.u32 %v5940_v4, %v5161_v57  ;;  %v5832_v39 = vld [vmem:[%s9791_s2 + $0x104] sm:$0xf0]  ;;  %v5017_v4 = vld [vmem:[%s9791_s2 + $0x318] sm:$0xf] }
 0x148   :  { %v5808_v57 = vld [vmem:[%s9791_s2 + $0x44] sm:$0xf0] }
 0x149   :  { %1442 = vmatpush.bf16.msra.mxu1 %v4818_v22  ;;  %1502 = vmatpush.bf16.msra.mxu0 %v4630_v48  ;;  %v5826_v48 = vld [vmem:[%s9791_s2 + $0xdc] sm:$0xf] }
 0x14a   :  { %v4734_v51 = vor.u32 %v5826_v48, %v4731_v49  ;;  %v4638_v48 = vor.u32 %v5802_v16, %v4635_v12  ;;  %v5820_v49 = vld [vmem:[%s9791_s2 + $0xa4] sm:$0xf0] }
 0x14d   :  { %1443 = vmatpush.bf16.msra.mxu1 %v4770_v24  ;;  %v4779_v24 = vld [vmem:[%s9791_s2 + $0x168] sm:$0xf0] }
 0x14e   :  { %v4782_v36 = vor.u32 %v5838_v25, %v4779_v24  ;;  %v5113_v25 = vld [vmem:[%s9791_s2 + $0x3d8] sm:$0xf]  ;;  %v4730_v24 = vor.u32 %v5832_v39, %v4729_v2 }
 0x14f   :  { %1238 = vmatmul.bf16.gmra.mxu0 %v6924_v53  ;;  %5186 = vmatmul.msk.bf16.gmra.mxu1 %vm68_vm0, %v6926_v0 }
 0x150   :  { %1294 = vmatmul.bf16.gmra.mxu2 %v6924_v53  ;;  %5190 = vmatmul.msk.bf16.gmra.mxu3 %vm68_vm0, %v6926_v0 }
 0x151   :  { %1444 = vmatpush.bf16.msra.mxu1 %v4722_v47 }
 0x155   :  { %1445 = vmatpush.bf16.msra.mxu1 %v4674_v58 }
 0x159   :  { %1446 = vmatpush.bf16.msra.mxu1 %v4626_v61 }
 0x15f   :  { %1335 = vmatmul.bf16.vlgmr.msrb.gmra.mxu1 %v6706_v32  ;;  %1391 = vmatmul.bf16.vlgmr.msrb.gmra.mxu0 %v6706_v32 }
 0x160   :  { %5191 = vmatmul.msk.bf16.vlgmr.msrb.gmra.mxu3 %vm68_vm0, %v6708_v33  ;;  %5195 = vmatmul.msk.bf16.vlgmr.msrb.gmra.mxu2 %vm68_vm0, %v6708_v33 }
 0x161   :  { %1607 = vmatpush.bf16.msrb.mxu0 %v4974_v5  ;;  %1551 = vmatpush.bf16.msrb.mxu1 %v4970_v11  ;;  %v4683_v5 = vld [vmem:[%s9791_s2 + $0xa8] sm:$0xf0] }
 0x162   :  { %v4686_v6 = vor.u32 %v5814_v60, %v4683_v5  ;;  %1583 = vmatpush.bf16.msrb.mxu3 %v5162_v59  ;;  %1639 = vmatpush.bf16.msrb.mxu2 %v5166_v14  ;;  %v5904_v5 = vld [vmem:[%s9791_s2 + $0x344] sm:$0xf0]  ;;  %v5887_v14 = vld [vmem:[%s9791_s2 + $0x2c4] sm:$0xf] }
 0x165   :  { %1608 = vmatpush.bf16.msrb.mxu0 %v4926_v41  ;;  %1552 = vmatpush.bf16.msrb.mxu1 %v4922_v29  ;;  %v5844_v41 = vld [vmem:[%s9791_s2 + $0x164] sm:$0xf0] }
 0x169   :  { %1609 = vmatpush.bf16.msrb.mxu0 %v4878_v43  ;;  %1553 = vmatpush.bf16.msrb.mxu1 %v4874_v10  ;;  %v4778_v43 = vor.u32 %v5844_v41, %v4777_v42  ;;  %v5910_v10 = vld [vmem:[%s9791_s2 + $0x37c] sm:$0xf]  ;;  %v5018_v41 = vor.u32 %v5904_v5, %v5017_v4  ;;  %v4977_v5 = vld [vmem:[%s9791_s2 + $0x2c0] sm:$0xf] }
 0x16a   :  { %v5898_v42 = vld [vmem:[%s9791_s2 + $0x31c] sm:$0xf] }
 0x16d   :  { %1610 = vmatpush.bf16.msrb.mxu0 %v4830_v18  ;;  %1554 = vmatpush.bf16.msrb.mxu1 %v4826_v62  ;;  %v4633_v62 = vld [vmem:[%s9791_s2 + $0x18] sm:$0xf] }
 0x16e   :  { %v4634_v60 = vor.u32 %v5808_v57, %v4633_v62 }
 0x16f   :  { %1340 = vmatmul.bf16.gmra.mxu1 %v6786_v28  ;;  %1396 = vmatmul.bf16.gmra.mxu0 %v6786_v28 }
 0x170   :  { %5192 = vmatmul.msk.bf16.gmra.mxu3 %vm68_vm0, %v6788_v30  ;;  %5196 = vmatmul.msk.bf16.gmra.mxu2 %vm68_vm0, %v6788_v30 }
 0x171   :  { %1611 = vmatpush.bf16.msrb.mxu0 %v4782_v36  ;;  %1555 = vmatpush.bf16.msrb.mxu1 %v4778_v43  ;;  %v5928_v36 = vld [vmem:[%s9791_s2 + $0x404] sm:$0xf0]  ;;  %v5022_v43 = vor.u32 %v5898_v42, %v5019_v9  ;;  %v5893_v42 = vld [vmem:[%s9791_s2 + $0x2ec] sm:$0xf0] }
 0x172   :  { %v4978_v9 = vor.u32 %v5893_v42, %v4977_v5  ;;  %v5845_v5 = vld [vmem:[%s9791_s2 + $0x16c] sm:$0xf0]  ;;  %v5169_v42 = vld [vmem:[%s9791_s2 + $0x440] sm:$0xf] }
 0x175   :  { %1612 = vmatpush.bf16.msrb.mxu0 %v4734_v51  ;;  %v5916_v51 = vld [vmem:[%s9791_s2 + $0x3a4] sm:$0xf0]  ;;  %1556 = vmatpush.bf16.msrb.mxu1 %v4730_v24  ;;  %v4931_v24 = vld [vmem:[%s9791_s2 + $0x290] sm:$0xf0] }
 0x176   :  { %v5066_v3 = vor.u32 %v5916_v51, %v5065_v38  ;;  %v5863_v51 = vld [vmem:[%s9791_s2 + $0x204] sm:$0xf] }
 0x179   :  { %1613 = vmatpush.bf16.msrb.mxu0 %v4686_v6 }
 0x17d   :  { %1614 = vmatpush.bf16.msrb.mxu0 %v4638_v48 }
 0x17f   :  { %1345 = vmatmul.bf16.gmra.mxu1 %v6895_v45  ;;  %1401 = vmatmul.bf16.gmra.mxu0 %v6895_v45 }
 0x180   :  { %5193 = vmatmul.msk.bf16.gmra.mxu3 %vm68_vm0, %v6897_v17  ;;  %5197 = vmatmul.msk.bf16.gmra.mxu2 %vm68_vm0, %v6897_v17 }
 0x18f   :  { %1350 = vmatmul.bf16.gmra.mxu1 %v6924_v53  ;;  %1406 = vmatmul.bf16.gmra.mxu0 %v6924_v53 }
 0x190   :  { %5194 = vmatmul.msk.bf16.gmra.mxu3 %vm68_vm0, %v6926_v0  ;;  %5198 = vmatmul.msk.bf16.gmra.mxu2 %vm68_vm0, %v6926_v0 }
 0x19c   :  { %v1224_v21 = vpop.f32.mrf.mxu0  ;;  %v1252_v22 = vpop.f32.mrf.mxu1 }
 0x19d   :  { %v1225_v23 = vadd.f32 %v1224_v21, %v7120_v20 }
 0x19f   :  { %v7123_v26 = vadd.f32 %v1252_v22, %v1225_v23  ;;  %1447 = vmatmul.bf16.vlgmr.msra.gmra.mxu1 %v6706_v32  ;;  %1503 = vmatmul.bf16.vlgmr.msra.gmra.mxu0 %v6706_v32 }
 0x1a0   :  { %5199 = vmatmul.msk.bf16.vlgmr.msra.gmra.mxu3 %vm68_vm0, %v6708_v33  ;;  %5203 = vmatmul.msk.bf16.vlgmr.msra.gmra.mxu2 %vm68_vm0, %v6708_v33 }
 0x1a3   :  { %v1280_v31 = vpop.f32.mrf.mxu2  ;;  %v1308_v35 = vpop.f32.mrf.mxu3 }
 0x1a4   :  { %v1281_v37 = vadd.f32 %v1280_v31, %v7128_v63  ;;  %v1226_v44 = vpop.f32.mrf.mxu0  ;;  %v1254_v46 = vpop.f32.mrf.mxu1  ;;  %v5922_v31 = vld [vmem:[%s9791_s2 + $0x3dc] sm:$0xf] }
 0x1a5   :  { %v1227_v27 = vadd.f32 %v1226_v44, %v7120_v20  ;;  %v5114_v44 = vor.u32 %v5928_v36, %v5113_v25 }
 0x1a6   :  { %v7154_v40 = vadd.f32 %v1308_v35, %v1281_v37  ;;  %v5115_v35 = vld [vmem:[%s9791_s2 + $0x408] sm:$0xf0] }
 0x1a7   :  { %v7156_v47 = vadd.f32 %v1254_v46, %v1227_v27  ;;  %v5118_v46 = vor.u32 %v5922_v31, %v5115_v35  ;;  %v4681_v27 = vld [vmem:[%s9791_s2 + $0x78] sm:$0xf]  ;;  %1584 = vmatpush.bf16.msrb.mxu3 %v5114_v44 }
 0x1a9   :  { %1640 = vmatpush.bf16.msrb.mxu2 %v5118_v46 }
 0x1ab   :  { %v1282_v52 = vpop.f32.mrf.mxu2  ;;  %v1310_v19 = vpop.f32.mrf.mxu3  ;;  %1585 = vmatpush.bf16.msrb.mxu3 %v5066_v3 }
 0x1ac   :  { %v1283_v50 = vadd.f32 %v1282_v52, %v7128_v63  ;;  %v1229_v58 = vpop.f32.mrf.mxu0  ;;  %v1257_v7 = vpop.f32.mrf.mxu1  ;;  %v5067_v52 = vld [vmem:[%s9791_s2 + $0x3a8] sm:$0xf0] }
 0x1ad   :  { %v1230_v61 = vadd.f32 %v1229_v58, %v7120_v20 }
 0x1ae   :  { %v7178_v55 = vadd.f32 %v1310_v19, %v1283_v50  ;;  %v4682_v19 = vor.u32 %v5820_v49, %v4681_v27  ;;  %v5070_v50 = vor.u32 %v5910_v10, %v5067_v52 }
 0x1af   :  { %v7180_v56 = vadd.f32 %v1257_v7, %v1230_v61  ;;  %1452 = vmatmul.bf16.gmra.mxu1 %v6786_v28  ;;  %1508 = vmatmul.bf16.gmra.mxu0 %v6786_v28 }
 0x1b0   :  { %5200 = vmatmul.msk.bf16.gmra.mxu3 %vm68_vm0, %v6788_v30  ;;  %5204 = vmatmul.msk.bf16.gmra.mxu2 %vm68_vm0, %v6788_v30 }
 0x1b1   :  { %1641 = vmatpush.bf16.msrb.mxu2 %v5070_v50  ;;  %1557 = vmatpush.bf16.msrb.mxu1 %v4682_v19 }
 0x1b2   :  { %1586 = vmatpush.bf16.msrb.mxu3 %v5018_v41  ;;  %v5839_v41 = vld [vmem:[%s9791_s2 + $0x144] sm:$0xf] }
 0x1b3   :  { %v1285_v15 = vpop.f32.mrf.mxu2  ;;  %v1313_v18 = vpop.f32.mrf.mxu3 }
 0x1b4   :  { %v1286_v21 = vadd.f32 %v1285_v15, %v7128_v63  ;;  %v1231_v22 = vpop.f32.mrf.mxu0  ;;  %v1259_v23 = vpop.f32.mrf.mxu1  ;;  %v4979_v15 = vld [vmem:[%s9791_s2 + $0x2f0] sm:$0xf0] }
 0x1b5   :  { %v1232_v11 = vadd.f32 %v1231_v22, %v7120_v20  ;;  %1558 = vmatpush.bf16.msrb.mxu1 %v4634_v60  ;;  %1642 = vmatpush.bf16.msrb.mxu2 %v5022_v43  ;;  %v7339_v60 = vperm.slane %v7111_v13, 3  ;;  %v4787_v43 = vld [vmem:[%s9791_s2 + $0x170] sm:$0xf0] }
 0x1b6   :  { %v7232_v37 = vadd.f32 %v1313_v18, %v1286_v21  ;;  %v4982_v18 = vor.u32 %v5887_v14, %v4979_v15 }
 0x1b7   :  { %v7243_v29 = vadd.f32 %v1259_v23, %v1232_v11  ;;  %v5875_v11 = vld [vmem:[%s9791_s2 + $0x264] sm:$0xf] }
 0x1b8   :  { %1719 = vmatpush.bf16.msra.mxu0 %v4982_v18  ;;  %v4934_v31 = vor.u32 %v5875_v11, %v4931_v24  ;;  %v4790_v18 = vor.u32 %v5839_v41, %v4787_v43  ;;  %v4929_v11 = vld [vmem:[%s9791_s2 + $0x260] sm:$0xf]  ;;  %v5881_v24 = vld [vmem:[%s9791_s2 + $0x28c] sm:$0xf0] }
 0x1b9   :  { %1663 = vmatpush.bf16.msra.mxu1 %v4978_v9  ;;  %v5941_v41 = vld [vmem:[%s9791_s2 + $0x46c] sm:$0xf0] }
 0x1bb   :  { %v1287_v58 = vpop.f32.mrf.mxu2  ;;  %v1315_v7 = vpop.f32.mrf.mxu3 }
 0x1bc   :  { %v1288_v8 = vadd.f32 %v1287_v58, %v7128_v63  ;;  %v1234_v54 = vpop.f32.mrf.mxu0  ;;  %v1262_v61 = vpop.f32.mrf.mxu1  ;;  %1720 = vmatpush.bf16.msra.mxu0 %v4934_v31  ;;  %v4930_v31 = vor.u32 %v5881_v24, %v4929_v11 }
 0x1bd   :  { %v1235_v59 = vadd.f32 %v1234_v54, %v7120_v20 }
 0x1be   :  { %v7277_v6 = vadd.f32 %v1315_v7, %v1288_v8  ;;  %v5851_v7 = vld [vmem:[%s9791_s2 + $0x1a4] sm:$0xf]  ;;  %v4835_v8 = vld [vmem:[%s9791_s2 + $0x1d0] sm:$0xf0]  ;;  %1664 = vmatpush.bf16.msra.mxu1 %v4930_v31 }
 0x1bf   :  { %v7282_v1 = vadd.f32 %v1262_v61, %v1235_v59  ;;  %1457 = vmatmul.bf16.gmra.mxu1 %v6895_v45  ;;  %1513 = vmatmul.bf16.gmra.mxu0 %v6895_v45  ;;  %v4838_v61 = vor.u32 %v5851_v7, %v4835_v8  ;;  %v4833_v7 = vld [vmem:[%s9791_s2 + $0x1a0] sm:$0xf]  ;;  %v5857_v8 = vld [vmem:[%s9791_s2 + $0x1cc] sm:$0xf0] }
 0x1c0   :  { %5201 = vmatmul.msk.bf16.gmra.mxu3 %vm68_vm0, %v6897_v17  ;;  %5205 = vmatmul.msk.bf16.gmra.mxu2 %vm68_vm0, %v6897_v17 }
 0x1c3   :  { %v1290_v21 = vpop.f32.mrf.mxu2  ;;  %v1318_v22 = vpop.f32.mrf.mxu3 }
 0x1c4   :  { %v1291_v23 = vadd.f32 %v1290_v21, %v7128_v63  ;;  %v1236_v2 = vpop.f32.mrf.mxu0  ;;  %v1264_v39 = vpop.f32.mrf.mxu1 }
 0x1c5   :  { %v1237_v25 = vadd.f32 %v1236_v2, %v7120_v20 }
 0x1c6   :  { %v7304_v36 = vadd.f32 %v1318_v22, %v1291_v23 }
 0x1c7   :  { %v7306_v35 = vadd.f32 %v1264_v39, %v1237_v25 }
 0x1cb   :  { %v1292_v44 = vpop.f32.mrf.mxu2  ;;  %v1320_v46 = vpop.f32.mrf.mxu3 }
 0x1cc   :  { %v1293_v16 = vadd.f32 %v1292_v44, %v7128_v63  ;;  %v1239_v12 = vpop.f32.mrf.mxu0  ;;  %v1267_v27 = vpop.f32.mrf.mxu1  ;;  %v5827_v44 = vld [vmem:[%s9791_s2 + $0xe4] sm:$0xf] }
 0x1cd   :  { %v1240_v48 = vadd.f32 %v1239_v12, %v7120_v20  ;;  %v4883_v20 = vld [vmem:[%s9791_s2 + $0x230] sm:$0xf0] }
 0x1ce   :  { %v7310_v49 = vadd.f32 %v1320_v46, %v1293_v16  ;;  %v4886_v3 = vor.u32 %v5863_v51, %v4883_v20  ;;  %v4739_v46 = vld [vmem:[%s9791_s2 + $0x110] sm:$0xf0]  ;;  %v4881_v16 = vld [vmem:[%s9791_s2 + $0x200] sm:$0xf] }
 0x1cf   :  { %v7312_v38 = vadd.f32 %v1267_v27, %v1240_v48  ;;  %1462 = vmatmul.bf16.gmra.mxu1 %v6924_v53  ;;  %1518 = vmatmul.bf16.gmra.mxu0 %v6924_v53  ;;  %v4742_v12 = vor.u32 %v5827_v44, %v4739_v46  ;;  %v5869_v27 = vld [vmem:[%s9791_s2 + $0x22c] sm:$0xf0]  ;;  %v4737_v46 = vld [vmem:[%s9791_s2 + $0xe0] sm:$0xf] }
 0x1d0   :  { %5202 = vmatmul.msk.bf16.gmra.mxu3 %vm68_vm0, %v6926_v0  ;;  %5206 = vmatmul.msk.bf16.gmra.mxu2 %vm68_vm0, %v6926_v0  ;;  %v4882_v48 = vor.u32 %v5869_v27, %v4881_v16  ;;  %v5833_v16 = vld [vmem:[%s9791_s2 + $0x10c] sm:$0xf0] }
 0x1d1   :  { %1721 = vmatpush.bf16.msra.mxu0 %v4886_v3  ;;  %v4738_v27 = vor.u32 %v5833_v16, %v4737_v46  ;;  %v5905_v16 = vld [vmem:[%s9791_s2 + $0x34c] sm:$0xf0] }
 0x1d2   :  { %1665 = vmatpush.bf16.msra.mxu1 %v4882_v48  ;;  %v5929_v48 = vld [vmem:[%s9791_s2 + $0x40c] sm:$0xf0] }
 0x1d3   :  { %v1295_v10 = vpop.f32.mrf.mxu2  ;;  %v1323_v52 = vpop.f32.mrf.mxu3 }
 0x1d4   :  { %v1296_v19 = vadd.f32 %v1295_v10, %v7128_v63  ;;  %v1241_v50 = vpop.f32.mrf.mxu0  ;;  %v1269_v58 = vpop.f32.mrf.mxu1  ;;  %v7336_v63 = vperm.slane %v7111_v13, 2 }
 0x1d5   :  { %1722 = vmatpush.bf16.msra.mxu0 %v4838_v61  ;;  %v4834_v61 = vor.u32 %v5857_v8, %v4833_v7  ;;  %v4689_v7 = vld [vmem:[%s9791_s2 + $0x80] sm:$0xf] }
 0x1d6   :  { %v7333_v54 = vadd.f32 %v1323_v52, %v1296_v19 }
 0x1d7   :  { %1666 = vmatpush.bf16.msra.mxu1 %v4834_v61  ;;  %v5821_v61 = vld [vmem:[%s9791_s2 + $0xac] sm:$0xf0] }
 0x1d8   :  { %9805 = vst [vmem:[#allocation3_spill] sm:$0xff] %v7333_v54 }
 0x1d9   :  { %1723 = vmatpush.bf16.msra.mxu0 %v4790_v18  ;;  %v5935_v18 = vld [vmem:[%s9791_s2 + $0x444] sm:$0xf] }
 0x1db   :  { %v1297_v62 = vpop.f32.mrf.mxu2  ;;  %v1325_v57 = vpop.f32.mrf.mxu3 }
 0x1dc   :  { %v1336_v4 = vpop.f32.mrf.mxu1  ;;  %v1392_v59 = vpop.f32.mrf.mxu0  ;;  %v5815_v62 = vld [vmem:[%s9791_s2 + $0x84] sm:$0xf]  ;;  %v4691_v57 = vld [vmem:[%s9791_s2 + $0xb0] sm:$0xf0] }
 0x1dd   :  { %v1337_v14 = vadd.f32 %v1336_v4, %v7336_v63  ;;  %v1393_v15 = vadd.f32 %v1392_v59, %v7339_v60  ;;  %1724 = vmatpush.bf16.msra.mxu0 %v4742_v12  ;;  %v4785_v4 = vld [vmem:[%s9791_s2 + $0x140] sm:$0xf]  ;;  %v4694_v59 = vor.u32 %v5815_v62, %v4691_v57  ;;  %v5917_v57 = vld [vmem:[%s9791_s2 + $0x3ac] sm:$0xf0] }
 0x1de   :  { %v5121_v12 = vld [vmem:[%s9791_s2 + $0x3e0] sm:$0xf] }
 0x1df   :  { %1559 = vmatmul.bf16.vlgmr.msrb.gmra.mxu1 %v6706_v32  ;;  %1615 = vmatmul.bf16.vlgmr.msrb.gmra.mxu0 %v6706_v32  ;;  %v5073_v62 = vld [vmem:[%s9791_s2 + $0x380] sm:$0xf] }
 0x1e0   :  { %5207 = vmatmul.msk.bf16.vlgmr.msrb.gmra.mxu3 %vm68_vm0, %v6708_v33  ;;  %5211 = vmatmul.msk.bf16.vlgmr.msrb.gmra.mxu2 %vm68_vm0, %v6708_v33 }
 0x1e1   :  { %1725 = vmatpush.bf16.msra.mxu0 %v4694_v59  ;;  %v5911_v59 = vld [vmem:[%s9791_s2 + $0x384] sm:$0xf] }
 0x1e3   :  { %v1364_v21 = vpop.f32.mrf.mxu3  ;;  %v1420_v22 = vpop.f32.mrf.mxu2 }
 0x1e4   :  { %v7361_v23 = vadd.f32 %v1364_v21, %v1337_v14  ;;  %v7363_v2 = vadd.f32 %v1420_v22, %v1393_v15  ;;  %v1338_v39 = vpop.f32.mrf.mxu1  ;;  %v1394_v25 = vpop.f32.mrf.mxu0  ;;  %v4786_v14 = vor.u32 %v5845_v5, %v4785_v4  ;;  %v5170_v15 = vor.u32 %v5941_v41, %v5169_v42  ;;  %v5171_v21 = vld [vmem:[%s9791_s2 + $0x470] sm:$0xf0] }
 0x1e5   :  { %v1339_v51 = vadd.f32 %v1338_v39, %v7336_v63  ;;  %v1395_v20 = vadd.f32 %v1394_v25, %v7339_v60  ;;  %v5174_v25 = vor.u32 %v5935_v18, %v5171_v21  ;;  %v5074_v4 = vor.u32 %v5917_v57, %v5073_v62  ;;  %v5075_v5 = vld [vmem:[%s9791_s2 + $0x3b0] sm:$0xf0] }
 0x1e6   :  { %9806 = vst [vmem:[#allocation4_spill] sm:$0xff] %v7363_v2  ;;  %1695 = vmatpush.bf16.msra.mxu3 %v5170_v15  ;;  %1667 = vmatpush.bf16.msra.mxu1 %v4786_v14  ;;  %v4690_v42 = vor.u32 %v5821_v61, %v4689_v7  ;;  %v5078_v41 = vor.u32 %v5911_v59, %v5075_v5  ;;  %v5876_v59 = vld [vmem:[%s9791_s2 + $0x26c] sm:$0xf]  ;;  %v4939_v5 = vld [vmem:[%s9791_s2 + $0x298] sm:$0xf0] }
 0x1e7   :  { %1751 = vmatpush.bf16.msra.mxu2 %v5174_v25  ;;  %v4641_v25 = vld [vmem:[%s9791_s2 + $0x20] sm:$0xf] }
 0x1ea   :  { %1668 = vmatpush.bf16.msra.mxu1 %v4738_v27 }
 0x1eb   :  { %v1366_v3 = vpop.f32.mrf.mxu3  ;;  %v1422_v10 = vpop.f32.mrf.mxu2 }
 0x1ec   :  { %v7385_v52 = vadd.f32 %v1366_v3, %v1339_v51  ;;  %v7387_v19 = vadd.f32 %v1422_v10, %v1395_v20  ;;  %v1341_v50 = vpop.f32.mrf.mxu1  ;;  %v1397_v58 = vpop.f32.mrf.mxu0  ;;  %v5923_v51 = vld [vmem:[%s9791_s2 + $0x3e4] sm:$0xf]  ;;  %v5123_v20 = vld [vmem:[%s9791_s2 + $0x410] sm:$0xf0]  ;;  %v5122_v3 = vor.u32 %v5929_v48, %v5121_v12 }
 0x1ed   :  { %v1342_v9 = vadd.f32 %v1341_v50, %v7336_v63  ;;  %v1398_v43 = vadd.f32 %v1397_v58, %v7339_v60  ;;  %v5126_v10 = vor.u32 %v5923_v51, %v5123_v20  ;;  %v5803_v50 = vld [vmem:[%s9791_s2 + $0x24] sm:$0xf]  ;;  %v4643_v58 = vld [vmem:[%s9791_s2 + $0x50] sm:$0xf0]  ;;  %v5888_v20 = vld [vmem:[%s9791_s2 + $0x2cc] sm:$0xf] }
 0x1ee   :  { %9807 = vst [vmem:[#allocation5_spill] sm:$0xff] %v7387_v19  ;;  %v4646_v8 = vor.u32 %v5803_v50, %v4643_v58  ;;  %1696 = vmatpush.bf16.msra.mxu3 %v5122_v3  ;;  %1669 = vmatpush.bf16.msra.mxu1 %v4690_v42  ;;  %v5899_v12 = vld [vmem:[%s9791_s2 + $0x324] sm:$0xf]  ;;  %v5027_v48 = vld [vmem:[%s9791_s2 + $0x350] sm:$0xf0]  ;;  %v4942_v42 = vor.u32 %v5876_v59, %v4939_v5 }
 0x1ef   :  { %1564 = vmatmul.bf16.gmra.mxu1 %v6786_v28  ;;  %1620 = vmatmul.bf16.gmra.mxu0 %v6786_v28  ;;  %v5030_v51 = vor.u32 %v5899_v12, %v5027_v48  ;;  %v4987_v3 = vld [vmem:[%s9791_s2 + $0x2f8] sm:$0xf0] }
 0x1f0   :  { %5208 = vmatmul.msk.bf16.gmra.mxu3 %vm68_vm0, %v6788_v30  ;;  %5212 = vmatmul.msk.bf16.gmra.mxu2 %vm68_vm0, %v6788_v30 }
 0x1f1   :  { %1752 = vmatpush.bf16.msra.mxu2 %v5126_v10  ;;  %1726 = vmatpush.bf16.msra.mxu0 %v4646_v8  ;;  %v4990_v10 = vor.u32 %v5888_v20, %v4987_v3 }
 0x1f2   :  { %1697 = vmatpush.bf16.msra.mxu3 %v5074_v4 }
 0x1f3   :  { %v1369_v22 = vpop.f32.mrf.mxu3  ;;  %v1425_v39 = vpop.f32.mrf.mxu2 }
 0x1f4   :  { %v7427_v11 = vadd.f32 %v1369_v22, %v1342_v9  ;;  %v7429_v24 = vadd.f32 %v1425_v39, %v1398_v43  ;;  %v1343_v31 = vpop.f32.mrf.mxu1  ;;  %v1399_v44 = vpop.f32.mrf.mxu0 }
 0x1f5   :  { %v1344_v9 = vadd.f32 %v1343_v31, %v7336_v63  ;;  %v1400_v43 = vadd.f32 %v1399_v44, %v7339_v60  ;;  %v5809_v31 = vld [vmem:[%s9791_s2 + $0x4c] sm:$0xf0]  ;;  %v5025_v44 = vld [vmem:[%s9791_s2 + $0x320] sm:$0xf]  ;;  %1753 = vmatpush.bf16.msra.mxu2 %v5078_v41  ;;  %1831 = vmatpush.bf16.msrb.mxu0 %v4990_v10 }
 0x1f6   :  { %9808 = vst [vmem:[#allocation6_spill] sm:$0xff] %v7429_v24  ;;  %v4642_v46 = vor.u32 %v5809_v31, %v4641_v25  ;;  %v5026_v27 = vor.u32 %v5905_v16, %v5025_v44  ;;  %v5864_v31 = vld [vmem:[%s9791_s2 + $0x20c] sm:$0xf]  ;;  %v4891_v44 = vld [vmem:[%s9791_s2 + $0x238] sm:$0xf0] }
 0x1f8   :  { %1670 = vmatpush.bf16.msra.mxu1 %v4642_v46  ;;  %1698 = vmatpush.bf16.msra.mxu3 %v5026_v27  ;;  %v4894_v46 = vor.u32 %v5864_v31, %v4891_v44  ;;  %v5870_v44 = vld [vmem:[%s9791_s2 + $0x234] sm:$0xf0] }
 0x1f9   :  { %1754 = vmatpush.bf16.msra.mxu2 %v5030_v51  ;;  %1832 = vmatpush.bf16.msrb.mxu0 %v4942_v42  ;;  %v4937_v42 = vld [vmem:[%s9791_s2 + $0x268] sm:$0xf] }
 0x1fb   :  { %v1371_v14 = vpop.f32.mrf.mxu3  ;;  %v1427_v15 = vpop.f32.mrf.mxu2 }
 0x1fc   :  { %v7475_v18 = vadd.f32 %v1371_v14, %v1344_v9  ;;  %v7477_v21 = vadd.f32 %v1427_v15, %v1400_v43  ;;  %v1346_v22 = vpop.f32.mrf.mxu1  ;;  %v1402_v39 = vpop.f32.mrf.mxu0 }
 0x1fd   :  { %v1347_v50 = vadd.f32 %v1346_v22, %v7336_v63  ;;  %v1403_v58 = vadd.f32 %v1402_v39, %v7339_v60  ;;  %1833 = vmatpush.bf16.msrb.mxu0 %v4894_v46 }
 0x1fe   :  { %9809 = vst [vmem:[#allocation7_spill] sm:$0xff] %v7477_v21 }
 0x1ff   :  { %1569 = vmatmul.bf16.gmra.mxu1 %v6895_v45  ;;  %1625 = vmatmul.bf16.gmra.mxu0 %v6895_v45 }
 0x200   :  { %5209 = vmatmul.msk.bf16.gmra.mxu3 %vm68_vm0, %v6897_v17  ;;  %5213 = vmatmul.msk.bf16.gmra.mxu2 %vm68_vm0, %v6897_v17 }
 0x203   :  { %v1374_v7 = vpop.f32.mrf.mxu3  ;;  %v1430_v8 = vpop.f32.mrf.mxu2 }
 0x204   :  { %v7511_v61 = vadd.f32 %v1374_v7, %v1347_v50  ;;  %v7513_v62 = vadd.f32 %v1430_v8, %v1403_v58  ;;  %v1348_v57 = vpop.f32.mrf.mxu1  ;;  %v1404_v4 = vpop.f32.mrf.mxu0  ;;  %v5852_v50 = vld [vmem:[%s9791_s2 + $0x1ac] sm:$0xf]  ;;  %v4843_v58 = vld [vmem:[%s9791_s2 + $0x1d8] sm:$0xf0]  ;;  %v5894_v7 = vld [vmem:[%s9791_s2 + $0x2f4] sm:$0xf0] }
 0x205   :  { %v1349_v41 = vadd.f32 %v1348_v57, %v7336_v63  ;;  %v1405_v9 = vadd.f32 %v1404_v4, %v7339_v60 }
 0x206   :  { %9810 = vst [vmem:[#allocation8_spill] sm:$0xff] %v7513_v62 }
 0x20b   :  { %v1376_v43 = vpop.f32.mrf.mxu3  ;;  %v1432_v14 = vpop.f32.mrf.mxu2 }
 0x20c   :  { %v7523_v15 = vadd.f32 %v1376_v43, %v1349_v41  ;;  %v7525_v22 = vadd.f32 %v1432_v14, %v1405_v9  ;;  %v1351_v39 = vpop.f32.mrf.mxu1  ;;  %v1407_v25 = vpop.f32.mrf.mxu0  ;;  %v5882_v41 = vld [vmem:[%s9791_s2 + $0x294] sm:$0xf0]  ;;  %v7564_v43 = vperm.slane %v7111_v13, 4  ;;  %v7567_v14 = vperm.slane %v7111_v13, 5  ;;  %v4889_v13 = vld [vmem:[%s9791_s2 + $0x208] sm:$0xf] }
 0x20d   :  { %v1352_v16 = vadd.f32 %v1351_v39, %v7336_v63  ;;  %v1408_v12 = vadd.f32 %v1407_v25, %v7339_v60  ;;  %v4985_v63 = vld [vmem:[%s9791_s2 + $0x2c8] sm:$0xf]  ;;  %v4846_v60 = vor.u32 %v5852_v50, %v4843_v58  ;;  %v4938_v9 = vor.u32 %v5882_v41, %v4937_v42  ;;  %v5840_v39 = vld [vmem:[%s9791_s2 + $0x14c] sm:$0xf]  ;;  %v4795_v25 = vld [vmem:[%s9791_s2 + $0x178] sm:$0xf0] }
 0x20e   :  { %9811 = vst [vmem:[#allocation9_spill] sm:$0xff] %v7525_v22  ;;  %v4986_v8 = vor.u32 %v5894_v7, %v4985_v63  ;;  %v4798_v31 = vor.u32 %v5840_v39, %v4795_v25  ;;  %v4841_v63 = vld [vmem:[%s9791_s2 + $0x1a8] sm:$0xf] }
 0x20f   :  { %1574 = vmatmul.bf16.gmra.mxu1 %v6924_v53  ;;  %1630 = vmatmul.bf16.gmra.mxu0 %v6924_v53 }
 0x210   :  { %5210 = vmatmul.msk.bf16.gmra.mxu3 %vm68_vm0, %v6926_v0  ;;  %5214 = vmatmul.msk.bf16.gmra.mxu2 %vm68_vm0, %v6926_v0 }
 0x211   :  { %1834 = vmatpush.bf16.msrb.mxu0 %v4846_v60  ;;  %1775 = vmatpush.bf16.msrb.mxu1 %v4986_v8  ;;  %v5858_v60 = vld [vmem:[%s9791_s2 + $0x1d4] sm:$0xf0]  ;;  %v5828_v8 = vld [vmem:[%s9791_s2 + $0xec] sm:$0xf] }
 0x212   :  { %v4842_v7 = vor.u32 %v5858_v60, %v4841_v63  ;;  %v5822_v63 = vld [vmem:[%s9791_s2 + $0xb4] sm:$0xf0]  ;;  %v5177_v60 = vld [vmem:[%s9791_s2 + $0x448] sm:$0xf] }
 0x213   :  { %v1379_v27 = vpop.f32.mrf.mxu3  ;;  %v1435_v48 = vpop.f32.mrf.mxu2 }
 0x214   :  { %v7541_v51 = vadd.f32 %v1379_v27, %v1352_v16  ;;  %v7543_v20 = vadd.f32 %v1435_v48, %v1408_v12  ;;  %v1353_v3 = vpop.f32.mrf.mxu1  ;;  %v1409_v10 = vpop.f32.mrf.mxu0  ;;  %v4890_v12 = vor.u32 %v5870_v44, %v4889_v13  ;;  %v4745_v44 = vld [vmem:[%s9791_s2 + $0xe8] sm:$0xf] }
 0x215   :  { %1776 = vmatpush.bf16.msrb.mxu1 %v4938_v9  ;;  %1835 = vmatpush.bf16.msrb.mxu0 %v4798_v31 }
 0x216   :  { %9812 = vst [vmem:[#allocation10_spill] sm:$0xff] %v7541_v51 }
 0x217   :  { %9813 = vst [vmem:[#allocation11_spill] sm:$0xff] %v7543_v20 }
 0x219   :  { %1777 = vmatpush.bf16.msrb.mxu1 %v4890_v12  ;;  %v5816_v12 = vld [vmem:[%s9791_s2 + $0x8c] sm:$0xf] }
 0x21b   :  { %v1381_v57 = vpop.f32.mrf.mxu3  ;;  %v1437_v4 = vpop.f32.mrf.mxu2 }
 0x21c   :  { %v1448_v59 = vpop.f32.mrf.mxu1  ;;  %v1504_v5 = vpop.f32.mrf.mxu0  ;;  %v4747_v57 = vld [vmem:[%s9791_s2 + $0x118] sm:$0xf0] }
 0x21d   :  { %v1449_v46 = vadd.f32 %v1448_v59, %v7564_v43  ;;  %v1505_v16 = vadd.f32 %v1504_v5, %v7567_v14  ;;  %v4750_v4 = vor.u32 %v5828_v8, %v4747_v57  ;;  %v4793_v59 = vld [vmem:[%s9791_s2 + $0x148] sm:$0xf]  ;;  %v5846_v5 = vld [vmem:[%s9791_s2 + $0x174] sm:$0xf0]  ;;  %1778 = vmatpush.bf16.msrb.mxu1 %v4842_v7 }
 0x21e   :  { %v4794_v42 = vor.u32 %v5846_v5, %v4793_v59  ;;  %v5942_v7 = vld [vmem:[%s9791_s2 + $0x474] sm:$0xf0]  ;;  %v5936_v59 = vld [vmem:[%s9791_s2 + $0x44c] sm:$0xf]  ;;  %v5179_v5 = vld [vmem:[%s9791_s2 + $0x478] sm:$0xf0] }
 0x21f   :  { %1671 = vmatmul.bf16.vlgmr.msra.gmra.mxu1 %v6706_v32  ;;  %1727 = vmatmul.bf16.vlgmr.msra.gmra.mxu0 %v6706_v32 }
 0x220   :  { %5215 = vmatmul.msk.bf16.vlgmr.msra.gmra.mxu3 %vm68_vm0, %v6708_v33  ;;  %5219 = vmatmul.msk.bf16.vlgmr.msra.gmra.mxu2 %vm68_vm0, %v6708_v33 }
 0x221   :  { %1836 = vmatpush.bf16.msrb.mxu0 %v4750_v4  ;;  %1779 = vmatpush.bf16.msrb.mxu1 %v4794_v42  ;;  %v5178_v4 = vor.u32 %v5942_v7, %v5177_v60  ;;  %v4651_v60 = vld [vmem:[%s9791_s2 + $0x58] sm:$0xf0] }
 0x223   :  { %v1476_v27 = vpop.f32.mrf.mxu3  ;;  %v1532_v48 = vpop.f32.mrf.mxu2  ;;  %1807 = vmatpush.bf16.msrb.mxu3 %v5178_v4  ;;  %v5131_v4 = vld [vmem:[%s9791_s2 + $0x418] sm:$0xf0] }
 0x224   :  { %v7589_v3 = vadd.f32 %v1476_v27, %v1449_v46  ;;  %v7591_v10 = vadd.f32 %v1532_v48, %v1505_v16  ;;  %v7593_v50 = vpop.f32.mrf.mxu1  ;;  %v1506_v58 = vpop.f32.mrf.mxu0  ;;  %v5834_v46 = vld [vmem:[%s9791_s2 + $0x114] sm:$0xf0]  ;;  %v4699_v27 = vld [vmem:[%s9791_s2 + $0xb8] sm:$0xf0]  ;;  %v4697_v48 = vld [vmem:[%s9791_s2 + $0x88] sm:$0xf] }
 0x225   :  { %v1507_v41 = vadd.f32 %v1506_v58, %v7567_v14  ;;  %v4746_v16 = vor.u32 %v5834_v46, %v4745_v44  ;;  %v4702_v58 = vor.u32 %v5816_v12, %v4699_v27  ;;  %v4698_v57 = vor.u32 %v5822_v63, %v4697_v48  ;;  %v5810_v12 = vld [vmem:[%s9791_s2 + $0x54] sm:$0xf0]  ;;  %v5129_v27 = vld [vmem:[%s9791_s2 + $0x3e8] sm:$0xf]  ;;  %v5804_v63 = vld [vmem:[%s9791_s2 + $0x2c] sm:$0xf] }
 0x227   :  { %1780 = vmatpush.bf16.msrb.mxu1 %v4746_v16  ;;  %1837 = vmatpush.bf16.msrb.mxu0 %v4702_v58  ;;  %v4649_v16 = vld [vmem:[%s9791_s2 + $0x28] sm:$0xf]  ;;  %v5930_v58 = vld [vmem:[%s9791_s2 + $0x414] sm:$0xf0] }
 0x228   :  { %v4650_v48 = vor.u32 %v5810_v12, %v4649_v16  ;;  %v5130_v7 = vor.u32 %v5930_v58, %v5129_v27  ;;  %v5083_v16 = vld [vmem:[%s9791_s2 + $0x3b8] sm:$0xf0] }
 0x22a   :  { %1808 = vmatpush.bf16.msrb.mxu3 %v5130_v7  ;;  %v5906_v7 = vld [vmem:[%s9791_s2 + $0x354] sm:$0xf0] }
 0x22b   :  { %v7614_v9 = vpop.f32.mrf.mxu3  ;;  %v1534_v39 = vpop.f32.mrf.mxu2  ;;  %1781 = vmatpush.bf16.msrb.mxu1 %v4698_v57  ;;  %v5924_v57 = vld [vmem:[%s9791_s2 + $0x3ec] sm:$0xf] }
 0x22c   :  { %v7616_v25 = vadd.f32 %v1534_v39, %v1507_v41  ;;  %v7618_v13 = vpop.f32.mrf.mxu1  ;;  %v1509_v31 = vpop.f32.mrf.mxu0  ;;  %v5182_v39 = vor.u32 %v5936_v59, %v5179_v5  ;;  %v5081_v59 = vld [vmem:[%s9791_s2 + $0x388] sm:$0xf]  ;;  %v5134_v5 = vor.u32 %v5924_v57, %v5131_v4 }
 0x22d   :  { %v1510_v8 = vadd.f32 %v1509_v31, %v7567_v14  ;;  %v5033_v4 = vld [vmem:[%s9791_s2 + $0x328] sm:$0xf] }
 0x22e   :  { %1863 = vmatpush.bf16.msrb.mxu2 %v5182_v39  ;;  %v5912_v39 = vld [vmem:[%s9791_s2 + $0x38c] sm:$0xf] }
 0x22f   :  { %1676 = vmatmul.bf16.gmra.mxu1 %v6786_v28  ;;  %1732 = vmatmul.bf16.gmra.mxu0 %v6786_v28  ;;  %v5086_v27 = vor.u32 %v5912_v39, %v5083_v16 }
 0x230   :  { %5216 = vmatmul.msk.bf16.gmra.mxu3 %vm68_vm0, %v6788_v30  ;;  %5220 = vmatmul.msk.bf16.gmra.mxu2 %vm68_vm0, %v6788_v30 }
 0x231   :  { %1782 = vmatpush.bf16.msrb.mxu1 %v4650_v48  ;;  %v5900_v48 = vld [vmem:[%s9791_s2 + $0x32c] sm:$0xf] }
 0x232   :  { %1864 = vmatpush.bf16.msrb.mxu2 %v5134_v5 }
 0x233   :  { %v7657_v42 = vpop.f32.mrf.mxu3  ;;  %v1537_v41 = vpop.f32.mrf.mxu2 }
 0x234   :  { %v7659_v44 = vadd.f32 %v1537_v41, %v1510_v8  ;;  %v7661_v46 = vpop.f32.mrf.mxu1  ;;  %v7663_v31 = vpop.f32.mrf.mxu0  ;;  %v4654_v8 = vor.u32 %v5804_v63, %v4651_v60  ;;  %v5918_v41 = vld [vmem:[%s9791_s2 + $0x3b4] sm:$0xf0] }
 0x235   :  { %v5082_v12 = vor.u32 %v5918_v41, %v5081_v59  ;;  %v5035_v59 = vld [vmem:[%s9791_s2 + $0x358] sm:$0xf0] }
 0x236   :  { %1838 = vmatpush.bf16.msrb.mxu0 %v4654_v8  ;;  %1865 = vmatpush.bf16.msrb.mxu2 %v5086_v27  ;;  %v5034_v8 = vor.u32 %v5906_v7, %v5033_v4  ;;  %v5038_v5 = vor.u32 %v5900_v48, %v5035_v59 }
 0x237   :  { %1809 = vmatpush.bf16.msrb.mxu3 %v5082_v12 }
 0x23a   :  { %1866 = vmatpush.bf16.msrb.mxu2 %v5038_v5 }
 0x23b   :  { %v1483_v58 = vpop.f32.mrf.mxu3  ;;  %v7701_v63 = vpop.f32.mrf.mxu2  ;;  %1810 = vmatpush.bf16.msrb.mxu3 %v5034_v8 }
 0x23c   :  { %v1458_v60 = vpop.f32.mrf.mxu1  ;;  %v7703_v57 = vpop.f32.mrf.mxu0 }
 0x23d   :  { %v1459_v24 = vadd.f32 %v1458_v60, %v7564_v43 }
 0x23f   :  { %1681 = vmatmul.bf16.gmra.mxu1 %v6895_v45  ;;  %1737 = vmatmul.bf16.gmra.mxu0 %v6895_v45 }
 0x240   :  { %5217 = vmatmul.msk.bf16.gmra.mxu3 %vm68_vm0, %v6897_v17  ;;  %5221 = vmatmul.msk.bf16.gmra.mxu2 %vm68_vm0, %v6897_v17 }
 0x243   :  { %v1486_v41 = vpop.f32.mrf.mxu3  ;;  %v7723_v39 = vpop.f32.mrf.mxu2 }
 0x244   :  { %v1460_v16 = vpop.f32.mrf.mxu1  ;;  %v1516_v12 = vpop.f32.mrf.mxu0  ;;  %v1487_v51 = vadd.f32 %v1486_v41, %v1459_v24 }
 0x245   :  { %v1461_v62 = vadd.f32 %v1460_v16, %v7564_v43 }
 0x24b   :  { %v1488_v27 = vpop.f32.mrf.mxu3  ;;  %v1544_v4 = vpop.f32.mrf.mxu2 }
 0x24c   :  { %v1463_v7 = vpop.f32.mrf.mxu1  ;;  %v1519_v48 = vpop.f32.mrf.mxu0  ;;  %v1489_v21 = vadd.f32 %v1488_v27, %v1461_v62 }
 0x24d   :  { %v1464_v8 = vadd.f32 %v1463_v7, %v7564_v43 }
 0x24f   :  { %1686 = vmatmul.bf16.gmra.mxu1 %v6924_v53  ;;  %1742 = vmatmul.bf16.gmra.mxu0 %v6924_v53 }
 0x250   :  { %5218 = vmatmul.msk.bf16.gmra.mxu3 %vm68_vm0, %v6926_v0  ;;  %5222 = vmatmul.msk.bf16.gmra.mxu2 %vm68_vm0, %v6926_v0 }
 0x253   :  { %v1491_v59 = vpop.f32.mrf.mxu3  ;;  %v1547_v5 = vpop.f32.mrf.mxu2 }
 0x254   :  { %v1492_v34 = vadd.f32 %v1491_v59, %v1464_v8  ;;  %v1465_v20 = vpop.f32.mrf.mxu1  ;;  %v1521_v22 = vpop.f32.mrf.mxu0 }
 0x255   :  { %v1456_v20 = vadd.f32 %v7661_v46, %v7564_v43  ;;  %v1451_v22 = vadd.f32 %v7593_v50, %v7564_v43 }
 0x256   :  { %1896 = vmatpush.xpose.msra.mxu0 %v1492_v34  ;;  %6075 = vmatpush.xpose.msra.mxu1 %v1492_v34 }
 0x257   :  { %v1484_v34 = vadd.f32 %v1483_v58, %v1456_v20 }
 0x25a   :  { %1897 = vmatpush.xpose.msra.mxu0 %v1489_v21  ;;  %6076 = vmatpush.xpose.msra.mxu1 %v1489_v21 }
 0x25b   :  { %v1493_v19 = vpop.f32.mrf.mxu3  ;;  %v1549_v2 = vpop.f32.mrf.mxu2 }
 0x25c   :  { %v7734_v54 = vpop.f32.mrf.mxu1  ;;  %v7736_v7 = vpop.f32.mrf.mxu0  ;;  %v1454_v2 = vadd.f32 %v7618_v13, %v7564_v43  ;;  %v1517_v43 = vadd.f32 %v1516_v12, %v7567_v14 }
 0x25e   :  { %1898 = vmatpush.xpose.msra.mxu0 %v1487_v51  ;;  %6077 = vmatpush.xpose.msra.mxu1 %v1487_v51  ;;  %v1482_v21 = vadd.f32 %v7657_v42, %v1454_v2  ;;  %v1520_v51 = vadd.f32 %v1519_v48, %v7567_v14  ;;  %v1545_v50 = vadd.f32 %v1544_v4, %v1517_v43 }
 0x25f   :  { %1783 = vmatmul.bf16.vlgmr.msrb.gmra.mxu1 %v6706_v32  ;;  %1839 = vmatmul.bf16.vlgmr.msrb.gmra.mxu0 %v6706_v32 }
 0x260   :  { %5223 = vmatmul.msk.bf16.vlgmr.msrb.gmra.mxu3 %vm68_vm0, %v6708_v33  ;;  %5227 = vmatmul.msk.bf16.vlgmr.msrb.gmra.mxu2 %vm68_vm0, %v6708_v33  ;;  %v1479_v33 = vadd.f32 %v7614_v9, %v1451_v22  ;;  %v1548_v60 = vadd.f32 %v1547_v5, %v1520_v51  ;;  %v1515_v9 = vadd.f32 %v7703_v57, %v7567_v14 }
 0x262   :  { %1899 = vmatpush.xpose.msra.mxu0 %v1484_v34  ;;  %6078 = vmatpush.xpose.msra.mxu1 %v1484_v34  ;;  %v1543_v27 = vadd.f32 %v7723_v39, %v1515_v9 }
 0x263   :  { %v7748_v19 = vpop.f32.mrf.mxu3  ;;  %v7750_v24 = vpop.f32.mrf.mxu2 }
 0x264   :  { %v7753_v62 = vpop.f32.mrf.mxu1  ;;  %v7755_v32 = vpop.f32.mrf.mxu0 }
 0x266   :  { %1900 = vmatpush.xpose.msra.mxu0 %v1482_v21  ;;  %6079 = vmatpush.xpose.msra.mxu1 %v1482_v21 }
 0x26a   :  { %1901 = vmatpush.xpose.msra.mxu0 %v1479_v33  ;;  %6080 = vmatpush.xpose.msra.mxu1 %v1479_v33 }
 0x26b   :  { %v7761_v13 = vpop.f32.mrf.mxu3  ;;  %v7763_v46 = vpop.f32.mrf.mxu2 }
 0x26c   :  { %v7765_v42 = vpop.f32.mrf.mxu1  ;;  %v7767_v58 = vpop.f32.mrf.mxu0 }
 0x26e   :  { %1902 = vmatpush.xpose.msra.mxu0 %v7589_v3  ;;  %6081 = vmatpush.xpose.msra.mxu1 %v7589_v3 }
 0x26f   :  { %1788 = vmatmul.bf16.gmra.mxu1 %v6786_v28  ;;  %1844 = vmatmul.bf16.gmra.mxu0 %v6786_v28  ;;  %v1512_v28 = vadd.f32 %v7663_v31, %v7567_v14 }
 0x270   :  { %5224 = vmatmul.msk.bf16.gmra.mxu3 %vm68_vm0, %v6788_v30  ;;  %5228 = vmatmul.msk.bf16.gmra.mxu2 %vm68_vm0, %v6788_v30 }
 0x271   :  { %v1540_v4 = vadd.f32 %v7701_v63, %v1512_v28 }
 0x272   :  { %2092 = vmatpush.xpose.msrb.mxu0 %v1548_v60 }
 0x273   :  { %v7780_v41 = vpop.f32.mrf.mxu3  ;;  %v7782_v3 = vpop.f32.mrf.mxu2 }
 0x274   :  { %v1567_v16 = vpop.f32.mrf.mxu1  ;;  %v7784_v12 = vpop.f32.mrf.mxu0 }
 0x276   :  { %2093 = vmatpush.xpose.msrb.mxu0 %v1545_v50 }
 0x27a   :  { %2094 = vmatpush.xpose.msrb.mxu0 %v1543_v27 }
 0x27b   :  { %v1595_v30 = vpop.f32.mrf.mxu3  ;;  %v7790_v48 = vpop.f32.mrf.mxu2 }
 0x27c   :  { %v1570_v57 = vpop.f32.mrf.mxu1  ;;  %v1626_v8 = vpop.f32.mrf.mxu0 }
 0x27e   :  { %2095 = vmatpush.xpose.msrb.mxu0 %v1540_v4 }
 0x27f   :  { %1793 = vmatmul.bf16.gmra.mxu1 %v6895_v45  ;;  %1849 = vmatmul.bf16.gmra.mxu0 %v6895_v45  ;;  %v6247_v45 = vld [vmem:[%s9793_s7] sm:$0xff] }
 0x280   :  { %5225 = vmatmul.msk.bf16.gmra.mxu3 %vm68_vm0, %v6897_v17  ;;  %5229 = vmatmul.msk.bf16.gmra.mxu2 %vm68_vm0, %v6897_v17  ;;  %v465_v34 = vperm.slane %v6247_v45, 6  ;;  %v466_v43 = vperm.slane %v6247_v45, 7 }
 0x282   :  { %2096 = vmatpush.xpose.msrb.mxu0 %v7659_v44  ;;  %v1571_v60 = vadd.f32 %v1570_v57, %v465_v34  ;;  %v1568_v4 = vadd.f32 %v1567_v16, %v465_v34  ;;  %v1566_v57 = vadd.f32 %v7765_v42, %v465_v34 }
 0x283   :  { %v1598_v14 = vpop.f32.mrf.mxu3  ;;  %v1654_v31 = vpop.f32.mrf.mxu2 }
 0x284   :  { %v1572_v63 = vpop.f32.mrf.mxu1  ;;  %v1628_v39 = vpop.f32.mrf.mxu0  ;;  %v1599_v27 = vadd.f32 %v1598_v14, %v1571_v60  ;;  %v7863_v60 = vld [vmem:[%s9793_s7 + $0x8] sm:$0xf] }
 0x285   :  { %v1573_v33 = vadd.f32 %v1572_v63, %v465_v34  ;;  %v1629_v63 = vadd.f32 %v1628_v39, %v466_v43  ;;  %v1624_v39 = vadd.f32 %v7784_v12, %v466_v43 }
 0x286   :  { %2097 = vmatpush.xpose.msrb.mxu0 %v7616_v25 }
 0x28a   :  { %2098 = vmatpush.xpose.msrb.mxu0 %v7591_v10 }
 0x28b   :  { %v1600_v59 = vpop.f32.mrf.mxu3  ;;  %v1656_v44 = vpop.f32.mrf.mxu2 }
 0x28c   :  { %v1575_v5 = vpop.f32.mrf.mxu1  ;;  %v1631_v20 = vpop.f32.mrf.mxu0  ;;  %v1601_v51 = vadd.f32 %v1600_v59, %v1573_v33  ;;  %v1657_v59 = vadd.f32 %v1656_v44, %v1629_v63  ;;  %v1652_v44 = vadd.f32 %v7790_v48, %v1624_v39 }
 0x28d   :  { %v1576_v17 = vadd.f32 %v1575_v5, %v465_v34 }
 0x28f   :  { %1798 = vmatmul.bf16.gmra.mxu1 %v6924_v53  ;;  %1854 = vmatmul.bf16.gmra.mxu0 %v6924_v53 }
 0x290   :  { %5226 = vmatmul.msk.bf16.gmra.mxu3 %vm68_vm0, %v6926_v0  ;;  %5230 = vmatmul.msk.bf16.gmra.mxu2 %vm68_vm0, %v6926_v0  ;;  %v1632_v0 = vadd.f32 %v1631_v20, %v466_v43  ;;  %v1594_v20 = vadd.f32 %v7780_v41, %v1566_v57  ;;  %v1561_v41 = vadd.f32 %v7734_v54, %v465_v34 }
 0x291   :  { %v1619_v54 = vadd.f32 %v7755_v32, %v466_v43 }
 0x293   :  { %v1603_v10 = vpop.f32.mrf.mxu3  ;;  %v1659_v25 = vpop.f32.mrf.mxu2  ;;  %v1647_v12 = vadd.f32 %v7763_v46, %v1619_v54 }
 0x294   :  { %v1604_v2 = vadd.f32 %v1603_v10, %v1576_v17  ;;  %v1577_v21 = vpop.f32.mrf.mxu1  ;;  %v1633_v22 = vpop.f32.mrf.mxu0  ;;  %v1660_v5 = vadd.f32 %v1659_v25, %v1632_v0  ;;  %v1596_v17 = vadd.f32 %v1595_v30, %v1568_v4 }
 0x296   :  { %2280 = vmatpush.xpose.msrb.mxu1 %v1604_v2 }
 0x29a   :  { %2281 = vmatpush.xpose.msrb.mxu1 %v1601_v51 }
 0x29b   :  { %v1605_v50 = vpop.f32.mrf.mxu3  ;;  %v1661_v9 = vpop.f32.mrf.mxu2 }
 0x29c   :  { %v7810_v28 = vpop.f32.mrf.mxu1  ;;  %v7812_v53 = vpop.f32.mrf.mxu0 }
 0x29e   :  { %2282 = vmatpush.xpose.msrb.mxu1 %v1599_v27 }
 0x29f   :  { %1912 = vmatmul.f32.vlgmr.msra.gmra.mxu1 %v7243_v29  ;;  %1903 = vmatmul.f32.vlgmr.msra.gmra.mxu0 %v7123_v26  ;;  %v1627_v29 = vadd.f32 %v1626_v8, %v466_v43  ;;  %v1563_v26 = vadd.f32 %v7753_v62, %v465_v34  ;;  %v1589_v62 = vadd.f32 %v7748_v19, %v1561_v41 }
 0x2a0   :  { %2468 = vmatpush.xpose.msra.mxu0 %v1660_v5 }
 0x2a1   :  { %v1655_v30 = vadd.f32 %v1654_v31, %v1627_v29  ;;  %v1591_v42 = vadd.f32 %v7761_v13, %v1563_v26 }
 0x2a2   :  { %2283 = vmatpush.xpose.msrb.mxu1 %v1596_v17 }
 0x2a3   :  { %v7817_v14 = vpop.f32.mrf.mxu3  ;;  %v7819_v45 = vpop.f32.mrf.mxu2 }
 0x2a4   :  { %v7822_v16 = vpop.f32.mrf.mxu1  ;;  %v7824_v10 = vpop.f32.mrf.mxu0  ;;  %2469 = vmatpush.xpose.msra.mxu0 %v1657_v59 }
 0x2a6   :  { %2284 = vmatpush.xpose.msrb.mxu1 %v1594_v20 }
 0x2a7   :  { %1915 = vmatmul.f32.gmra.mxu1 %v7282_v1  ;;  %1906 = vmatmul.f32.gmra.mxu0 %v7156_v47  ;;  %v1622_v47 = vadd.f32 %v7767_v58, %v466_v43  ;;  %v1617_v58 = vadd.f32 %v7736_v7, %v466_v43 }
 0x2a8   :  { %2470 = vmatpush.xpose.msra.mxu0 %v1655_v30 }
 0x2a9   :  { %v1650_v13 = vadd.f32 %v7782_v3, %v1622_v47  ;;  %v1645_v3 = vadd.f32 %v7750_v24, %v1617_v58 }
 0x2aa   :  { %2285 = vmatpush.xpose.msrb.mxu1 %v1591_v42 }
 0x2ab   :  { %v7833_v8 = vpop.f32.mrf.mxu3  ;;  %v7835_v25 = vpop.f32.mrf.mxu2 }
 0x2ac   :  { %v7838_v31 = vpop.f32.mrf.mxu1  ;;  %v7840_v1 = vpop.f32.mrf.mxu0  ;;  %2471 = vmatpush.xpose.msra.mxu0 %v1652_v44 }
 0x2ae   :  { %2286 = vmatpush.xpose.msrb.mxu1 %v1589_v62 }
 0x2af   :  { %1918 = vmatmul.f32.gmra.mxu1 %v7306_v35  ;;  %1909 = vmatmul.f32.gmra.mxu0 %v7180_v56 }
 0x2b0   :  { %2472 = vmatpush.xpose.msra.mxu0 %v1650_v13 }
 0x2b3   :  { %v7848_v19 = vpop.f32.mrf.mxu3  ;;  %v7850_v48 = vpop.f32.mrf.mxu2 }
 0x2b4   :  { %v1679_v34 = vpop.f32.mrf.mxu1  ;;  %v1735_v2 = vpop.f32.mrf.mxu0  ;;  %2473 = vmatpush.xpose.msra.mxu0 %v1647_v12 }
 0x2b7   :  { %1921 = vmatmul.f32.gmra.mxu1 %v7312_v38  ;;  %2099 = vmatmul.f32.vlgmr.msrb.gmra.mxu0 %v7154_v40 }
 0x2b8   :  { %2474 = vmatpush.xpose.msra.mxu0 %v1645_v3 }
 0x2bb   :  { %v1707_v56 = vpop.f32.mrf.mxu3  ;;  %v1763_v35 = vpop.f32.mrf.mxu2 }
 0x2bc   :  { %v1682_v32 = vpop.f32.mrf.mxu1  ;;  %v1738_v46 = vpop.f32.mrf.mxu0 }
 0x2bf   :  { %2287 = vmatmul.f32.vlgmr.msrb.gmra.mxu1 %v7361_v23  ;;  %2102 = vmatmul.f32.gmra.mxu0 %v7178_v55  ;;  %v467_v55 = vperm.slane %v7863_v60, 0  ;;  %v468_v23 = vperm.slane %v7863_v60, 1 }
 0x2c1   :  { %v1683_v63 = vadd.f32 %v1682_v32, %v467_v55  ;;  %v1680_v20 = vadd.f32 %v1679_v34, %v467_v55  ;;  %v1736_v29 = vadd.f32 %v1735_v2, %v468_v23  ;;  %v1678_v30 = vadd.f32 %v7838_v31, %v467_v55 }
 0x2c2   :  { %v1734_v39 = vadd.f32 %v7840_v1, %v468_v23  ;;  %v1731_v54 = vadd.f32 %v7824_v10, %v468_v23  ;;  %v1673_v1 = vadd.f32 %v7810_v28, %v467_v55  ;;  %v1729_v34 = vadd.f32 %v7812_v53, %v468_v23 }
 0x2c3   :  { %v1710_v21 = vpop.f32.mrf.mxu3  ;;  %v1766_v22 = vpop.f32.mrf.mxu2  ;;  %v1708_v42 = vadd.f32 %v1707_v56, %v1680_v20  ;;  %v1764_v41 = vadd.f32 %v1763_v35, %v1736_v29  ;;  %v1706_v47 = vadd.f32 %v7848_v19, %v1678_v30  ;;  %v9815_v56 = vld [vmem:[#allocation10_spill] sm:$0xff]  ;;  %v9816_v35 = vld [vmem:[#allocation4_spill] sm:$0xff] }
 0x2c4   :  { %v1684_v33 = vpop.f32.mrf.mxu1  ;;  %v1740_v7 = vpop.f32.mrf.mxu0  ;;  %v1762_v31 = vadd.f32 %v7850_v48, %v1734_v39  ;;  %v1701_v19 = vadd.f32 %v7817_v14, %v1673_v1  ;;  %v1757_v10 = vadd.f32 %v7819_v45, %v1729_v34  ;;  %v9814_v14 = vld [vmem:[#allocation3_spill] sm:$0xff] }
 0x2c5   :  { %v1685_v9 = vadd.f32 %v1684_v33, %v467_v55  ;;  %v1741_v17 = vadd.f32 %v1740_v7, %v468_v23 }
 0x2c7   :  { %2290 = vmatmul.f32.gmra.mxu1 %v7385_v52  ;;  %2105 = vmatmul.f32.gmra.mxu0 %v7232_v37 }
 0x2cb   :  { %v1712_v38 = vpop.f32.mrf.mxu3  ;;  %v1768_v24 = vpop.f32.mrf.mxu2 }
 0x2cc   :  { %v1687_v40 = vpop.f32.mrf.mxu1  ;;  %v1743_v51 = vpop.f32.mrf.mxu0  ;;  %v1713_v57 = vadd.f32 %v1712_v38, %v1685_v9  ;;  %v1769_v59 = vadd.f32 %v1768_v24, %v1741_v17 }
 0x2cd   :  { %v1688_v52 = vadd.f32 %v1687_v40, %v467_v55  ;;  %v1744_v43 = vadd.f32 %v1743_v51, %v468_v23 }
 0x2cf   :  { %2293 = vmatmul.f32.gmra.mxu1 %v7427_v11  ;;  %2108 = vmatmul.f32.gmra.mxu0 %v7277_v6  ;;  %v1739_v11 = vadd.f32 %v1738_v46, %v468_v23  ;;  %v1711_v6 = vadd.f32 %v1710_v21, %v1683_v63  ;;  %v469_v63 = vperm.slane %v7863_v60, 2 }
 0x2d1   :  { %v1767_v26 = vadd.f32 %v1766_v22, %v1739_v11  ;;  %v9817_v22 = vld [vmem:[#allocation5_spill] sm:$0xff] }
 0x2d3   :  { %v1715_v37 = vpop.f32.mrf.mxu3  ;;  %v1771_v50 = vpop.f32.mrf.mxu2 }
 0x2d4   :  { %v1716_v27 = vadd.f32 %v1715_v37, %v1688_v52  ;;  %v1772_v0 = vadd.f32 %v1771_v50, %v1744_v43  ;;  %v1689_v4 = vpop.f32.mrf.mxu1  ;;  %v1745_v5 = vpop.f32.mrf.mxu0  ;;  %v9819_v50 = vld [vmem:[#allocation7_spill] sm:$0xff] }
 0x2d6   :  { %2054 = vmatpush.msra.mxu3 %v1716_v27  ;;  %2242 = vmatpush.msra.mxu2 %v1772_v0 }
 0x2d7   :  { %2296 = vmatmul.f32.gmra.mxu1 %v7475_v18  ;;  %2111 = vmatmul.f32.gmra.mxu0 %v7304_v36  ;;  %v1675_v18 = vadd.f32 %v7822_v16, %v467_v55  ;;  %v1759_v16 = vadd.f32 %v7835_v25, %v1731_v54  ;;  %v9818_v55 = vld [vmem:[#allocation6_spill] sm:$0xff] }
 0x2d8   :  { %2055 = vmatpush.msra.mxu3 %v1713_v57  ;;  %2243 = vmatpush.msra.mxu2 %v1769_v59  ;;  %v9820_v57 = vld [vmem:[#allocation8_spill] sm:$0xff] }
 0x2d9   :  { %v1703_v12 = vadd.f32 %v7833_v8, %v1675_v18 }
 0x2da   :  { %2056 = vmatpush.msra.mxu3 %v1711_v6  ;;  %2244 = vmatpush.msra.mxu2 %v1767_v26 }
 0x2db   :  { %v1717_v44 = vpop.f32.mrf.mxu3  ;;  %v1773_v62 = vpop.f32.mrf.mxu2 }
 0x2dc   :  { %2057 = vmatpush.msra.mxu3 %v1708_v42  ;;  %v7875_v13 = vpop.f32.mrf.mxu1  ;;  %v7877_v36 = vpop.f32.mrf.mxu0  ;;  %2245 = vmatpush.msra.mxu2 %v1764_v41  ;;  %v9821_v62 = vld [vmem:[#allocation9_spill] sm:$0xff] }
 0x2de   :  { %2058 = vmatpush.msra.mxu3 %v1706_v47  ;;  %2246 = vmatpush.msra.mxu2 %v1762_v31 }
 0x2df   :  { %2299 = vmatmul.f32.gmra.mxu1 %v7511_v61  ;;  %2114 = vmatmul.f32.gmra.mxu0 %v7310_v49  ;;  %v7895_v61 = vperm.slane %v7863_v60, 3 }
 0x2e0   :  { %2059 = vmatpush.msra.mxu3 %v1703_v12  ;;  %2247 = vmatpush.msra.mxu2 %v1759_v16  ;;  %v1785_v16 = vadd.f32 %v7875_v13, %v469_v63  ;;  %v7939_v13 = vld [vmem:[%s9794_s1] sm:$0xff] }
 0x2e2   :  { %2060 = vmatpush.msra.mxu3 %v1701_v19  ;;  %2248 = vmatpush.msra.mxu2 %v1757_v10 }
 0x2e3   :  { %v7889_v28 = vpop.f32.mrf.mxu3  ;;  %v7891_v8 = vpop.f32.mrf.mxu2 }
 0x2e4   :  { %v1786_v53 = vpop.f32.mrf.mxu1  ;;  %v1842_v48 = vpop.f32.mrf.mxu0  ;;  %v1813_v10 = vadd.f32 %v7889_v28, %v1785_v16 }
 0x2e5   :  { %v1843_v49 = vadd.f32 %v1842_v48, %v7895_v61  ;;  %v1787_v54 = vadd.f32 %v1786_v53, %v469_v63  ;;  %v9822_v48 = vld [vmem:[#allocation11_spill] sm:$0xff] }
 0x2e7   :  { %2302 = vmatmul.f32.gmra.mxu1 %v7523_v15  ;;  %2117 = vmatmul.f32.gmra.mxu0 %v9814_v14 }
 0x2eb   :  { %v1814_v25 = vpop.f32.mrf.mxu3  ;;  %v1870_v45 = vpop.f32.mrf.mxu2 }
 0x2ec   :  { %v7899_v2 = vadd.f32 %v1870_v45, %v1843_v49  ;;  %v1789_v58 = vpop.f32.mrf.mxu1  ;;  %v7901_v3 = vpop.f32.mrf.mxu0  ;;  %v1815_v19 = vadd.f32 %v1814_v25, %v1787_v54 }
 0x2ed   :  { %v1790_v60 = vadd.f32 %v1789_v58, %v469_v63 }
 0x2ef   :  { %2305 = vmatmul.f32.gmra.mxu1 %v9815_v56  ;;  %2475 = vmatmul.f32.vlgmr.msra.gmra.mxu0 %v9816_v35 }
 0x2f3   :  { %v1817_v32 = vpop.f32.mrf.mxu3  ;;  %v7905_v15 = vpop.f32.mrf.mxu2 }
 0x2f4   :  { %v1791_v46 = vpop.f32.mrf.mxu1  ;;  %v1847_v21 = vpop.f32.mrf.mxu0  ;;  %v1818_v31 = vadd.f32 %v1817_v32, %v1790_v60  ;;  %v7999_v60 = vld [vmem:[%s9794_s1 + $0x28] sm:$0xff] }
 0x2f5   :  { %v1848_v33 = vadd.f32 %v1847_v21, %v7895_v61  ;;  %v1792_v41 = vadd.f32 %v1791_v46, %v469_v63  ;;  %v7951_v21 = vld [vmem:[%s9794_s1 + $0x8] sm:$0xff] }
 0x2f7   :  { %2478 = vmatmul.f32.gmra.mxu0 %v9817_v22 }
 0x2fb   :  { %v1819_v7 = vpop.f32.mrf.mxu3  ;;  %v1875_v38 = vpop.f32.mrf.mxu2 }
 0x2fc   :  { %v1794_v24 = vpop.f32.mrf.mxu1  ;;  %v7909_v40 = vadd.f32 %v1875_v38, %v1848_v33  ;;  %v7911_v51 = vpop.f32.mrf.mxu0  ;;  %v1820_v18 = vadd.f32 %v1819_v7, %v1792_v41 }
 0x2fd   :  { %v1795_v42 = vadd.f32 %v1794_v24, %v469_v63 }
 0x2ff   :  { %2481 = vmatmul.f32.gmra.mxu0 %v9818_v55  ;;  %v7961_v55 = vld [vmem:[%s9794_s1 + $0x10] sm:$0xff] }
 0x303   :  { %v1822_v23 = vpop.f32.mrf.mxu3  ;;  %v7914_v52 = vpop.f32.mrf.mxu2 }
 0x304   :  { %v1796_v43 = vpop.f32.mrf.mxu1  ;;  %v1852_v37 = vpop.f32.mrf.mxu0  ;;  %v1823_v44 = vadd.f32 %v1822_v23, %v1795_v42 }
 0x305   :  { %v1853_v9 = vadd.f32 %v1852_v37, %v7895_v61  ;;  %v1797_v20 = vadd.f32 %v1796_v43, %v469_v63 }
 0x307   :  { %2484 = vmatmul.f32.gmra.mxu0 %v9819_v50 }
 0x30b   :  { %v1824_v27 = vpop.f32.mrf.mxu3  ;;  %v1880_v0 = vpop.f32.mrf.mxu2 }
 0x30c   :  { %v1799_v4 = vpop.f32.mrf.mxu1  ;;  %v7918_v5 = vadd.f32 %v1880_v0, %v1853_v9  ;;  %v7920_v17 = vpop.f32.mrf.mxu0  ;;  %v1825_v39 = vadd.f32 %v1824_v27, %v1797_v20  ;;  %v7971_v27 = vld [vmem:[%s9794_s1 + $0x18] sm:$0xff] }
 0x30d   :  { %v1800_v11 = vadd.f32 %v1799_v4, %v469_v63 }
 0x30f   :  { %2487 = vmatmul.f32.gmra.mxu0 %v9820_v57 }
 0x313   :  { %v1827_v59 = vpop.f32.mrf.mxu3  ;;  %v7924_v29 = vpop.f32.mrf.mxu2 }
 0x314   :  { %v1828_v6 = vadd.f32 %v1827_v59, %v1800_v11  ;;  %v1801_v26 = vpop.f32.mrf.mxu1  ;;  %v1857_v30 = vpop.f32.mrf.mxu0 }
 0x316   :  { %2430 = vmatpush.msrb.mxu2 %v1828_v6  ;;  %6082 = vmatpush.msrb.mxu3 %v1828_v6  ;;  %v7984_v6 = vld [vmem:[%s9794_s1 + $0x20] sm:$0xff] }
 0x317   :  { %2490 = vmatmul.f32.gmra.mxu0 %v9821_v62 }
 0x318   :  { %2431 = vmatpush.msrb.mxu2 %v1825_v39  ;;  %6083 = vmatpush.msrb.mxu3 %v1825_v39 }
 0x31a   :  { %2432 = vmatpush.msrb.mxu2 %v1823_v44  ;;  %6084 = vmatpush.msrb.mxu3 %v1823_v44 }
 0x31b   :  { %v1829_v47 = vpop.f32.mrf.mxu3  ;;  %v1885_v1 = vpop.f32.mrf.mxu2 }
 0x31c   :  { %2433 = vmatpush.msrb.mxu2 %v1820_v18  ;;  %6085 = vmatpush.msrb.mxu3 %v1820_v18  ;;  %v7927_v12 = vpop.f32.mrf.mxu1  ;;  %v1904_v34 = vpop.f32.mrf.mxu0 }
 0x31d   :  { %v1925_v30 = vmul.f32 0.14433756, %v1904_v34 }
 0x31e   :  { %2434 = vmatpush.msrb.mxu2 %v1818_v31  ;;  %6086 = vmatpush.msrb.mxu3 %v1818_v31 }
 0x31f   :  { %2493 = vmatmul.f32.gmra.mxu0 %v9822_v48  ;;  %v7994_v62 = vadd.f32 %v7939_v13, %v1925_v30  ;;  %v8014_v48 = vld [vmem:[%s9794_s1 + $0x30] sm:$0xff] }
 0x320   :  { %2435 = vmatpush.msrb.mxu2 %v1815_v19  ;;  %6087 = vmatpush.msrb.mxu3 %v1815_v19 }
 0x321   :  { %v1947_v31 = vsel %vm1946_vm8, %v7994_v62, -inf }
 0x322   :  { %2436 = vmatpush.msrb.mxu2 %v1813_v10  ;;  %6088 = vmatpush.msrb.mxu3 %v1813_v10 }
 0x324   :  { %v7932_v53 = vpop.f32.mrf.mxu1  ;;  %v1907_v14 = vpop.f32.mrf.mxu0 }
 0x325   :  { %v1926_v54 = vmul.f32 0.14433756, %v1907_v14 }
 0x327   :  { %v8009_v10 = vadd.f32 %v7951_v21, %v1926_v54 }
 0x32c   :  { %v1910_v49 = vpop.f32.mrf.mxu0  ;;  %v7934_v45 = vpop.f32.mrf.mxu1 }
 0x334   :  { %v2100_v58 = vpop.f32.mrf.mxu0  ;;  %v7941_v28 = vpop.f32.mrf.mxu1 }
 0x335   :  { %v2121_v56 = vmul.f32 0.14433756, %v2100_v58 }
 0x337   :  { %v7944_v25 = vadd.f32 %v2121_v56, %v7939_v13  ;;  %v1927_v56 = vmul.f32 0.14433756, %v1910_v49 }
 0x339   :  { %v2135_v35 = vsel %vm1946_vm8, %v7944_v25, -inf }
 0x33a   :  { %2136 = vmax.xlane.f32.xlu2 %v2135_v35 }
 0x33c   :  { %v2103_v32 = vpop.f32.mrf.mxu0  ;;  %v2288_v33 = vpop.f32.mrf.mxu1 }
 0x33d   :  { %v2122_v46 = vmul.f32 0.14433756, %v2103_v32  ;;  %v2309_v4 = vmul.f32 0.14433756, %v2288_v33  ;;  %v1950_v32 = vsel %vm1946_vm8, %v8009_v10, -inf }
 0x33f   :  { %v7954_v22 = vadd.f32 %v2122_v46, %v7951_v21  ;;  %v7979_v20 = vadd.f32 %v2309_v4, %v7939_v13 }
 0x341   :  { %v2138_v7 = vsel %vm1946_vm8, %v7954_v22, -inf  ;;  %v2323_v39 = vsel %vm1946_vm8, %v7979_v20, -inf }
 0x342   :  { %2139 = vmax.xlane.f32.xlu0 %v2138_v7  ;;  %v8029_v7 = vadd.f32 %v7961_v55, %v1927_v56 }
 0x344   :  { %v2106_v38 = vpop.f32.mrf.mxu0  ;;  %v2291_v37 = vpop.f32.mrf.mxu1 }
 0x345   :  { %v2123_v24 = vmul.f32 0.14433756, %v2106_v38  ;;  %v2310_v35 = vmul.f32 0.14433756, %v2291_v37  ;;  %v1953_v37 = vsel %vm1946_vm8, %v8029_v7, -inf }
 0x347   :  { %v7964_v23 = vadd.f32 %v2123_v24, %v7961_v55  ;;  %v8032_v38 = vadd.f32 %v2310_v35, %v7951_v21  ;;  %v1928_v24 = vmul.f32 0.14433756, %v7927_v12 }
 0x349   :  { %v2141_v43 = vsel %vm1946_vm8, %v7964_v23, -inf }
 0x34a   :  { %2142 = vmax.xlane.f32.xlu1 %v2141_v43 }
 0x34c   :  { %v2109_v50 = vpop.f32.mrf.mxu0  ;;  %v2294_v11 = vpop.f32.mrf.mxu1 }
 0x34d   :  { %v2124_v9 = vmul.f32 0.14433756, %v2109_v50  ;;  %v2311_v43 = vmul.f32 0.14433756, %v2294_v11  ;;  %v2326_v50 = vsel %vm1946_vm8, %v8032_v38, -inf }
 0x34f   :  { %v7974_v0 = vadd.f32 %v2124_v9, %v7971_v27  ;;  %v8040_v9 = vadd.f32 %v7971_v27, %v1928_v24  ;;  %v8043_v4 = vadd.f32 %v2311_v43, %v7961_v55 }
 0x351   :  { %v2144_v63 = vsel %vm1946_vm8, %v7974_v0, -inf  ;;  %v1956_v12 = vsel %vm1946_vm8, %v8040_v9, -inf  ;;  %v2329_v11 = vsel %vm1946_vm8, %v8043_v4, -inf }
 0x352   :  { %2145 = vmax.xlane.f32.xlu2 %v2144_v63  ;;  %v1929_v63 = vmul.f32 0.14433756, %v7932_v53 }
 0x354   :  { %v2112_v57 = vpop.f32.mrf.mxu0  ;;  %v2297_v18 = vpop.f32.mrf.mxu1  ;;  %v8051_v30 = vadd.f32 %v7984_v6, %v1929_v63 }
 0x355   :  { %v2125_v59 = vmul.f32 0.14433756, %v2112_v57  ;;  %v2312_v34 = vmul.f32 0.14433756, %v2297_v18 }
 0x356   :  { %v1959_v53 = vsel %vm1946_vm8, %v8051_v30, -inf }
 0x357   :  { %v7987_v26 = vadd.f32 %v2125_v59, %v7984_v6  ;;  %v8017_v14 = vadd.f32 %v2312_v34, %v7971_v27 }
 0x359   :  { %v2147_v42 = vsel %vm1946_vm8, %v7987_v26, -inf  ;;  %v2332_v33 = vsel %vm1946_vm8, %v8017_v14, -inf }
 0x35a   :  { %2148 = vmax.xlane.f32.xlu0 %v2147_v42  ;;  %2324 = vmax.xlane.f32.xlu2 %v2323_v39  ;;  %v1930_v39 = vmul.f32 0.14433756, %v7934_v45 }
 0x35c   :  { %v2115_v41 = vpop.f32.mrf.mxu0  ;;  %v8062_v54 = vadd.f32 %v7999_v60, %v1930_v39 }
 0x35d   :  { %v2126_v44 = vmul.f32 0.14433756, %v2115_v41 }
 0x35e   :  { %v1962_v45 = vsel %vm1946_vm8, %v8062_v54, -inf }
 0x35f   :  { %v8002_v47 = vadd.f32 %v2126_v44, %v7999_v60 }
 0x361   :  { %v2150_v1 = vsel %vm1946_vm8, %v8002_v47, -inf }
 0x362   :  { %1948 = vmax.xlane.f32.xlu0 %v1947_v31  ;;  %2151 = vmax.xlane.f32.xlu1 %v2150_v1 }
 0x364   :  { %v2118_v16 = vpop.f32.mrf.mxu0 }
 0x365   :  { %v2127_v19 = vmul.f32 0.14433756, %v2118_v16 }
 0x367   :  { %v8020_v58 = vadd.f32 %v2127_v19, %v8014_v48 }
 0x369   :  { %v2153_v46 = vsel %vm1946_vm8, %v8020_v58, -inf }
 0x36a   :  { %1951 = vmax.xlane.f32.xlu0 %v1950_v32  ;;  %2154 = vmax.xlane.f32.xlu2 %v2153_v46 }
 0x36b   :  { %2333 = vmax.xlane.f32.xlu1 %v2332_v33 }
 0x36c   :  { %v2476_v49 = vpop.f32.mrf.mxu0 }
 0x36d   :  { %v2497_v57 = vmul.f32 0.14433756, %v2476_v49 }
 0x36f   :  { %v8054_v42 = vadd.f32 %v2497_v57, %v7939_v13  ;;  %v1931_v13 = vmul.f32 0.14433756, %v7941_v28 }
 0x371   :  { %v2511_v44 = vsel %vm1946_vm8, %v8054_v42, -inf  ;;  %v8076_v19 = vadd.f32 %v8014_v48, %v1931_v13 }
 0x372   :  { %1954 = vmax.xlane.f32.xlu0 %v1953_v37  ;;  %2327 = vmax.xlane.f32.xlu2 %v2326_v50 }
 0x373   :  { %v1965_v35 = vsel %vm1946_vm8, %v8076_v19, -inf }
 0x374   :  { %v2479_v59 = vpop.f32.mrf.mxu0 }
 0x375   :  { %v2498_v41 = vmul.f32 0.14433756, %v2479_v59 }
 0x377   :  { %v8065_v31 = vadd.f32 %v2498_v41, %v7951_v21 }
 0x379   :  { %v2514_v34 = vsel %vm1946_vm8, %v8065_v31, -inf }
 0x37a   :  { %1957 = vmax.xlane.f32.xlu0 %v1956_v12  ;;  %2330 = vmax.xlane.f32.xlu2 %v2329_v11 }
 0x37c   :  { %v2482_v18 = vpop.f32.mrf.mxu0 }
 0x37d   :  { %v2499_v1 = vmul.f32 0.14433756, %v2482_v18 }
 0x37f   :  { %v8073_v16 = vadd.f32 %v2499_v1, %v7961_v55 }
 0x381   :  { %v2517_v28 = vsel %vm1946_vm8, %v8073_v16, -inf }
 0x382   :  { %1960 = vmax.xlane.f32.xlu0 %v1959_v53  ;;  %2512 = vmax.xlane.f32.xlu2 %v2511_v44 }
 0x384   :  { %v2485_v56 = vpop.f32.mrf.mxu0 }
 0x385   :  { %v2500_v21 = vmul.f32 0.14433756, %v2485_v56 }
 0x387   :  { %v8083_v32 = vadd.f32 %v2500_v21, %v7971_v27 }
 0x389   :  { %v2520_v55 = vsel %vm1946_vm8, %v8083_v32, -inf }
 0x38a   :  { %1963 = vmax.xlane.f32.xlu0 %v1962_v45  ;;  %2515 = vmax.xlane.f32.xlu2 %v2514_v34 }
 0x392   :  { %2518 = vmax.xlane.f32.xlu2 %v2517_v28  ;;  %1966 = vmax.xlane.f32.xlu0 %v1965_v35 }
 0x39a   :  { %2521 = vmax.xlane.f32.xlu0 %v2520_v55 }
 0x3ad   :  { %v2137_v46 = vpop.xlane.xlu2 %2136 }
 0x3ae   :  { %v2156_v33 = vsub.f32 %v7944_v25, %v2137_v46 }
 0x3b0   :  { %v2163_v49 = vmul.f32 1.442695, %v2156_v33 }
 0x3b2   :  { %6107 = vpow2.f32 %v2163_v49 }
 0x3b5   :  { %v2140_v24 = vpop.xlane.xlu0 %2139 }
 0x3b6   :  { %v2157_v43 = vsub.f32 %v7954_v22, %v2140_v24 }
 0x3b8   :  { %v8089_v37 = vpop.eup %6107  ;;  %v2165_v50 = vmul.f32 1.442695, %v2157_v43 }
 0x3b9   :  { %v2177_v63 = vsel %vm1946_vm8, %v8089_v37, 0.0 }
 0x3ba   :  { %6109 = vpow2.f32 %v2165_v50  ;;  %2178 = vadd.xlane.f32.xlu1 %v2177_v63 }
 0x3bd   :  { %v2143_v27 = vpop.xlane.xlu1 %2142 }
 0x3be   :  { %v2158_v57 = vsub.f32 %v7964_v23, %v2143_v27 }
 0x3c0   :  { %v8094_v12 = vpop.eup %6109  ;;  %v2167_v11 = vmul.f32 1.442695, %v2158_v57 }
 0x3c1   :  { %v2180_v25 = vsel %vm1946_vm8, %v8094_v12, 0.0 }
 0x3c2   :  { %6111 = vpow2.f32 %v2167_v11  ;;  %2181 = vadd.xlane.f32.xlu1 %v2180_v25  ;;  %v2488_v11 = vpop.f32.mrf.mxu0 }
 0x3c5   :  { %v2146_v22 = vpop.xlane.xlu2 %2145 }
 0x3c6   :  { %v2159_v59 = vsub.f32 %v7974_v0, %v2146_v22 }
 0x3c8   :  { %v8099_v39 = vpop.eup %6111  ;;  %v2169_v41 = vmul.f32 1.442695, %v2159_v59 }
 0x3c9   :  { %v2183_v53 = vsel %vm1946_vm8, %v8099_v39, 0.0 }
 0x3ca   :  { %6113 = vpow2.f32 %v2169_v41  ;;  %2184 = vadd.xlane.f32.xlu1 %v2183_v53 }
 0x3cd   :  { %v2149_v23 = vpop.xlane.xlu0 %2148  ;;  %v2325_v0 = vpop.xlane.xlu2 %2324 }
 0x3ce   :  { %v2160_v44 = vsub.f32 %v7987_v26, %v2149_v23  ;;  %v2344_v35 = vsub.f32 %v7979_v20, %v2325_v0 }
 0x3d0   :  { %v8104_v18 = vpop.eup %6113  ;;  %v2171_v13 = vmul.f32 1.442695, %v2160_v44  ;;  %v2351_v33 = vmul.f32 1.442695, %v2344_v35 }
 0x3d1   :  { %v2186_v1 = vsel %vm1946_vm8, %v8104_v18, 0.0 }
 0x3d2   :  { %6115 = vpow2.f32 %v2171_v13  ;;  %2187 = vadd.xlane.f32.xlu1 %v2186_v1 }
 0x3d5   :  { %v1949_v45 = vpop.xlane.xlu0 %1948  ;;  %v2152_v34 = vpop.xlane.xlu1 %2151 }
 0x3d6   :  { %v1968_v56 = vsub.f32 %v7994_v62, %v1949_v45  ;;  %v2161_v21 = vsub.f32 %v8002_v47, %v2152_v34  ;;  %v2501_v45 = vmul.f32 0.14433756, %v2488_v11 }
 0x3d8   :  { %v8110_v28 = vpop.eup %6115  ;;  %v1975_v26 = vmul.f32 1.442695, %v1968_v56  ;;  %v2173_v55 = vmul.f32 1.442695, %v2161_v21 }
 0x3d9   :  { %v2189_v46 = vsel %vm1946_vm8, %v8110_v28, 0.0 }
 0x3da   :  { %6117 = vpow2.f32 %v1975_v26  ;;  %2190 = vadd.xlane.f32.xlu1 %v2189_v46  ;;  %v8143_v26 = vadd.f32 %v2501_v45, %v7984_v6 }
 0x3db   :  { %6119 = vpow2.f32 %v2173_v55 }
 0x3dc   :  { %6121 = vpow2.f32 %v2351_v33 }
 0x3dd   :  { %v1952_v49 = vpop.xlane.xlu0 %1951  ;;  %v2155_v24 = vpop.xlane.xlu2 %2154 }
 0x3de   :  { %v1969_v43 = vsub.f32 %v8009_v10, %v1952_v49  ;;  %v2162_v62 = vsub.f32 %v8020_v58, %v2155_v24  ;;  %v2300_v10 = vpop.f32.mrf.mxu1 }
 0x3df   :  { %v2313_v44 = vmul.f32 0.14433756, %v2300_v10 }
 0x3e0   :  { %v8117_v47 = vpop.eup %6117  ;;  %v1977_v50 = vmul.f32 1.442695, %v1969_v43  ;;  %v2175_v20 = vmul.f32 1.442695, %v2162_v62 }
 0x3e1   :  { %v8119_v63 = vpop.eup %6119  ;;  %v1989_v27 = vsel %vm1946_vm8, %v8117_v47, 0.0  ;;  %v8140_v35 = vadd.f32 %v2313_v44, %v7984_v6 }
 0x3e2   :  { %6123 = vpow2.f32 %v1977_v50  ;;  %1990 = vadd.xlane.f32.xlu2 %v1989_v27  ;;  %v2192_v57 = vsel %vm1946_vm8, %v8119_v63, 0.0  ;;  %v8125_v22 = vpop.eup %6121  ;;  %v2523_v50 = vsel %vm1946_vm8, %v8143_v26, -inf }
 0x3e3   :  { %6125 = vpow2.f32 %v2175_v20  ;;  %2193 = vadd.xlane.f32.xlu1 %v2192_v57  ;;  %v2365_v1 = vsel %vm1946_vm8, %v8125_v22, 0.0  ;;  %v2335_v43 = vsel %vm1946_vm8, %v8140_v35, -inf }
 0x3e5   :  { %v1955_v58 = vpop.xlane.xlu0 %1954  ;;  %v2328_v25 = vpop.xlane.xlu2 %2327 }
 0x3e6   :  { %v2345_v59 = vsub.f32 %v8032_v38, %v2328_v25  ;;  %v1970_v13 = vsub.f32 %v8029_v7, %v1955_v58  ;;  %v2491_v7 = vpop.f32.mrf.mxu0  ;;  %v2303_v55 = vpop.f32.mrf.mxu1 }
 0x3e7   :  { %v2502_v49 = vmul.f32 0.14433756, %v2491_v7  ;;  %v2314_v62 = vmul.f32 0.14433756, %v2303_v55 }
 0x3e8   :  { %v8128_v41 = vpop.eup %6123  ;;  %v2353_v53 = vmul.f32 1.442695, %v2345_v59  ;;  %v1979_v38 = vmul.f32 1.442695, %v1970_v13 }
 0x3e9   :  { %v8130_v23 = vpop.eup %6125  ;;  %v1992_v0 = vsel %vm1946_vm8, %v8128_v41, 0.0  ;;  %v8156_v10 = vadd.f32 %v2502_v49, %v7999_v60  ;;  %v8160_v11 = vadd.f32 %v2314_v62, %v7999_v60 }
 0x3ea   :  { %2366 = vadd.xlane.f32.xlu2 %v2365_v1  ;;  %v2195_v34 = vsel %vm1946_vm8, %v8130_v23, 0.0  ;;  %1993 = vadd.xlane.f32.xlu0 %v1992_v0  ;;  %6127 = vpow2.f32 %v2353_v53 }
 0x3eb   :  { %2196 = vadd.xlane.f32.xlu1 %v2195_v34  ;;  %6129 = vpow2.f32 %v1979_v38  ;;  %v2526_v53 = vsel %vm1946_vm8, %v8156_v10, -inf }
 0x3ed   :  { %v1958_v56 = vpop.xlane.xlu0 %1957  ;;  %v2331_v21 = vpop.xlane.xlu2 %2330 }
 0x3ee   :  { %v1971_v46 = vsub.f32 %v8040_v9, %v1958_v56  ;;  %v2346_v24 = vsub.f32 %v8043_v4, %v2331_v21  ;;  %v2494_v45 = vpop.f32.mrf.mxu0  ;;  %v2306_v34 = vpop.f32.mrf.mxu1 }
 0x3ef   :  { %v2503_v21 = vmul.f32 0.14433756, %v2494_v45 }
 0x3f0   :  { %v8146_v33 = vpop.eup %6127  ;;  %v1981_v9 = vmul.f32 1.442695, %v1971_v46  ;;  %v2355_v20 = vmul.f32 1.442695, %v2346_v24  ;;  %v2315_v46 = vmul.f32 0.14433756, %v2306_v34 }
 0x3f1   :  { %v2368_v6 = vsel %vm1946_vm8, %v8146_v33, 0.0  ;;  %v8162_v58 = vpop.eup %6129 }
 0x3f2   :  { %2336 = vmax.xlane.f32.xlu2 %v2335_v43  ;;  %2369 = vadd.xlane.f32.xlu0 %v2368_v6  ;;  %6131 = vpow2.f32 %v1981_v9  ;;  %v1995_v44 = vsel %vm1946_vm8, %v8162_v58, 0.0 }
 0x3f3   :  { %2524 = vmax.xlane.f32.xlu1 %v2523_v50  ;;  %6133 = vpow2.f32 %v2355_v20  ;;  %v8190_v20 = vadd.f32 %v2315_v46, %v8014_v48 }
 0x3f5   :  { %v1961_v27 = vpop.xlane.xlu0 %1960  ;;  %v2513_v57 = vpop.xlane.xlu2 %2512 }
 0x3f6   :  { %v2532_v4 = vsub.f32 %v8054_v42, %v2513_v57  ;;  %v1972_v59 = vsub.f32 %v8051_v30, %v1961_v27  ;;  %v2338_v42 = vsel %vm1946_vm8, %v8160_v11, -inf }
 0x3f8   :  { %v2539_v25 = vmul.f32 1.442695, %v2532_v4  ;;  %v1983_v60 = vmul.f32 1.442695, %v1972_v59  ;;  %v8171_v0 = vpop.eup %6131 }
 0x3f9   :  { %v8173_v30 = vpop.eup %6133  ;;  %v1998_v55 = vsel %vm1946_vm8, %v8171_v0, 0.0 }
 0x3fa   :  { %2527 = vmax.xlane.f32.xlu2 %v2526_v53  ;;  %6135 = vpow2.f32 %v2539_v25  ;;  %2339 = vmax.xlane.f32.xlu0 %v2338_v42  ;;  %v2371_v49 = vsel %vm1946_vm8, %v8173_v30, 0.0 }
 0x3fb   :  { %1996 = vadd.xlane.f32.xlu1 %v1995_v44  ;;  %6137 = vpow2.f32 %v1983_v60 }
 0x3fd   :  { %v1964_v13 = vpop.xlane.xlu0 %1963  ;;  %v2516_v1 = vpop.xlane.xlu2 %2515 }
 0x3fe   :  { %v1973_v38 = vsub.f32 %v8062_v54, %v1964_v13  ;;  %v2533_v7 = vsub.f32 %v8065_v31, %v2516_v1  ;;  %v2334_v54 = vpop.xlane.xlu1 %2333  ;;  %v8186_v31 = vadd.f32 %v2503_v21, %v8014_v48  ;;  %v2341_v48 = vsel %vm1946_vm8, %v8190_v20, -inf }
 0x3ff   :  { %v2347_v57 = vsub.f32 %v8017_v14, %v2334_v54 }
 0x400   :  { %v8176_v56 = vpop.eup %6135  ;;  %v1985_v43 = vmul.f32 1.442695, %v1973_v38  ;;  %v2541_v62 = vmul.f32 1.442695, %v2533_v7  ;;  %v2529_v59 = vsel %vm1946_vm8, %v8186_v31, -inf }
 0x401   :  { %v2553_v24 = vsel %vm1946_vm8, %v8176_v56, 0.0  ;;  %v8192_v27 = vpop.eup %6137 }
 0x402   :  { %1999 = vadd.xlane.f32.xlu2 %v1998_v55  ;;  %2554 = vadd.xlane.f32.xlu0 %v2553_v24  ;;  %6139 = vpow2.f32 %v1985_v43  ;;  %v2001_v53 = vsel %vm1946_vm8, %v8192_v27, 0.0  ;;  %v1856_v43 = vadd.f32 %v7920_v17, %v7895_v61  ;;  %v1846_v17 = vadd.f32 %v7901_v3, %v7895_v61 }
 0x403   :  { %2372 = vadd.xlane.f32.xlu1 %v2371_v49  ;;  %6141 = vpow2.f32 %v2541_v62 }
 0x405   :  { %v2519_v50 = vpop.xlane.xlu2 %2518  ;;  %v1967_v6 = vpop.xlane.xlu0 %1966 }
 0x406   :  { %v2534_v9 = vsub.f32 %v8073_v16, %v2519_v50  ;;  %v1974_v25 = vsub.f32 %v8076_v19, %v1967_v6  ;;  %v2357_v16 = vmul.f32 1.442695, %v2347_v57  ;;  %v1884_v6 = vadd.f32 %v7924_v29, %v1856_v43 }
 0x407   :  { %v1874_v29 = vadd.f32 %v7905_v15, %v1846_v17 }
 0x408   :  { %v2543_v4 = vmul.f32 1.442695, %v2534_v9  ;;  %v1987_v14 = vmul.f32 1.442695, %v1974_v25  ;;  %v8202_v42 = vpop.eup %6139  ;;  %v1851_v9 = vadd.f32 %v7911_v51, %v7895_v61  ;;  %v1841_v51 = vadd.f32 %v7877_v36, %v7895_v61 }
 0x409   :  { %v8205_v60 = vpop.eup %6141  ;;  %v2004_v45 = vsel %vm1946_vm8, %v8202_v42, 0.0 }
 0x40a   :  { %6143 = vpow2.f32 %v2543_v4  ;;  %2530 = vmax.xlane.f32.xlu2 %v2529_v59  ;;  %2342 = vmax.xlane.f32.xlu0 %v2341_v48  ;;  %v2556_v38 = vsel %vm1946_vm8, %v8205_v60, 0.0  ;;  %v1879_v57 = vadd.f32 %v7914_v52, %v1851_v9  ;;  %v1869_v52 = vadd.f32 %v7891_v8, %v1841_v51 }
 0x40b   :  { %2002 = vadd.xlane.f32.xlu1 %v2001_v53  ;;  %6145 = vpow2.f32 %v2357_v16 }
 0x40c   :  { %6147 = vpow2.f32 %v1987_v14 }
 0x40d   :  { %v2522_v44 = vpop.xlane.xlu0 %2521 }
 0x40e   :  { %v2535_v19 = vsub.f32 %v8083_v32, %v2522_v44 }
 0x410   :  { %v8207_v13 = vpop.eup %6143  ;;  %v2545_v1 = vmul.f32 1.442695, %v2535_v19 }
 0x411   :  { %v2559_v34 = vsel %vm1946_vm8, %v8207_v13, 0.0  ;;  %v8215_v32 = vpop.eup %6145 }
 0x412   :  { %6149 = vpow2.f32 %v2545_v1  ;;  %2005 = vadd.xlane.f32.xlu2 %v2004_v45  ;;  %2560 = vadd.xlane.f32.xlu0 %v2559_v34  ;;  %v8217_v21 = vpop.eup %6147  ;;  %v2374_v46 = vsel %vm1946_vm8, %v8215_v32, 0.0 }
 0x413   :  { %2557 = vadd.xlane.f32.xlu1 %v2556_v38  ;;  %v2007_v49 = vsel %vm1946_vm8, %v8217_v21, 0.0 }
 0x418   :  { %v8219_v7 = vpop.eup %6149 }
 0x419   :  { %v2562_v55 = vsel %vm1946_vm8, %v8219_v7, 0.0 }
 0x41a   :  { %2563 = vadd.xlane.f32.xlu2 %v2562_v55  ;;  %2375 = vadd.xlane.f32.xlu0 %v2374_v46 }
 0x41b   :  { %2008 = vadd.xlane.f32.xlu1 %v2007_v49 }
 0x42d   :  { %v2179_v24 = vpop.xlane.xlu1 %2178 }
 0x42e   :  { %6151 = vrcp.f32 %v2179_v24 }
 0x434   :  { %v6152_v54 = vpop.eup %6151 }
 0x435   :  { %v2205_v62 = vmul.f32 %v6152_v54, %v8089_v37  ;;  %v2182_v50 = vpop.xlane.xlu1 %2181 }
 0x436   :  { %6153 = vrcp.f32 %v2182_v50 }
 0x437   :  { %5238 = vmatmul.msk.f32.vlgmr.msra.gmra.mxu2 %vm1946_vm8, %v2205_v62 }
 0x438   :  { %2618 = vmatpush.msra.mxu2 %v1884_v6 }
 0x43a   :  { %2619 = vmatpush.msra.mxu2 %v7918_v5 }
 0x43c   :  { %v6154_v4 = vpop.eup %6153  ;;  %2620 = vmatpush.msra.mxu2 %v1879_v57 }
 0x43d   :  { %v2185_v37 = vpop.xlane.xlu1 %2184  ;;  %v2206_v25 = vmul.f32 %v6154_v4, %v8094_v12 }
 0x43e   :  { %2621 = vmatpush.msra.mxu2 %v7909_v40  ;;  %6155 = vrcp.f32 %v2185_v37 }
 0x43f   :  { %5239 = vmatmul.msk.f32.gmra.mxu2 %vm1946_vm8, %v2206_v25 }
 0x440   :  { %2622 = vmatpush.msra.mxu2 %v1874_v29 }
 0x442   :  { %2623 = vmatpush.msra.mxu2 %v7899_v2 }
 0x444   :  { %v6156_v3 = vpop.eup %6155  ;;  %2624 = vmatpush.msra.mxu2 %v1869_v52 }
 0x445   :  { %v2188_v5 = vpop.xlane.xlu1 %2187  ;;  %v2207_v12 = vmul.f32 %v6156_v3, %v8099_v39 }
 0x446   :  { %6157 = vrcp.f32 %v2188_v5 }
 0x447   :  { %5240 = vmatmul.msk.f32.gmra.mxu2 %vm1946_vm8, %v2207_v12 }
 0x44c   :  { %v6158_v15 = vpop.eup %6157 }
 0x44d   :  { %v2191_v40 = vpop.xlane.xlu1 %2190  ;;  %v2208_v59 = vmul.f32 %v6158_v15, %v8104_v18 }
 0x44e   :  { %6159 = vrcp.f32 %v2191_v40 }
 0x44f   :  { %5241 = vmatmul.msk.f32.gmra.mxu2 %vm1946_vm8, %v2208_v59 }
 0x454   :  { %v6160_v36 = vpop.eup %6159 }
 0x455   :  { %v1991_v61 = vpop.xlane.xlu2 %1990  ;;  %v2209_v8 = vmul.f32 %v6160_v36, %v8110_v28 }
 0x456   :  { %6161 = vrcp.f32 %v1991_v61  ;;  %v2194_v2 = vpop.xlane.xlu1 %2193 }
 0x457   :  { %6163 = vrcp.f32 %v2194_v2  ;;  %5242 = vmatmul.msk.f32.gmra.mxu2 %vm1946_vm8, %v2209_v8 }
 0x45c   :  { %v6162_v39 = vpop.eup %6161 }
 0x45d   :  { %v6164_v53 = vpop.eup %6163  ;;  %v2017_v48 = vmul.f32 %v6162_v39, %v8117_v47  ;;  %v2367_v16 = vpop.xlane.xlu2 %2366 }
 0x45e   :  { %v1994_v14 = vpop.xlane.xlu0 %1993  ;;  %v2197_v44 = vpop.xlane.xlu1 %2196  ;;  %v2210_v18 = vmul.f32 %v6164_v53, %v8119_v63 }
 0x45f   :  { %6165 = vrcp.f32 %v2197_v44  ;;  %5231 = vmatmul.msk.f32.vlgmr.msra.gmra.mxu3 %vm1946_vm8, %v2017_v48 }
 0x460   :  { %6167 = vrcp.f32 %v1994_v14  ;;  %5243 = vmatmul.msk.f32.gmra.mxu2 %vm1946_vm8, %v2210_v18 }
 0x461   :  { %6169 = vrcp.f32 %v2367_v16 }
 0x465   :  { %v6166_v28 = vpop.eup %6165  ;;  %v2337_v19 = vpop.xlane.xlu2 %2336 }
 0x466   :  { %v6168_v1 = vpop.eup %6167  ;;  %v2525_v45 = vpop.xlane.xlu1 %2524  ;;  %v2348_v34 = vsub.f32 %v8140_v35, %v2337_v19  ;;  %v2211_v47 = vmul.f32 %v6166_v28, %v8130_v23 }
 0x467   :  { %v2370_v38 = vpop.xlane.xlu0 %2369  ;;  %v2536_v55 = vsub.f32 %v8143_v26, %v2525_v45  ;;  %v2018_v63 = vmul.f32 %v6168_v1, %v8128_v41  ;;  %v6170_v24 = vpop.eup %6169 }
 0x468   :  { %v2359_v46 = vmul.f32 1.442695, %v2348_v34  ;;  %5244 = vmatmul.msk.f32.gmra.mxu2 %vm1946_vm8, %v2211_v47  ;;  %v2393_v35 = vmul.f32 %v6170_v24, %v8125_v22 }
 0x469   :  { %v2547_v49 = vmul.f32 1.442695, %v2536_v55  ;;  %5232 = vmatmul.msk.f32.gmra.mxu3 %vm1946_vm8, %v2018_v63 }
 0x46a   :  { %6171 = vpow2.f32 %v2359_v46 }
 0x46b   :  { %6173 = vpow2.f32 %v2547_v49 }
 0x46c   :  { %6175 = vrcp.f32 %v2370_v38 }
 0x46d   :  { %v2528_v54 = vpop.xlane.xlu2 %2527 }
 0x46e   :  { %v1997_v43 = vpop.xlane.xlu1 %1996  ;;  %v2537_v23 = vsub.f32 %v8156_v10, %v2528_v54 }
 0x46f   :  { %v2340_v62 = vpop.xlane.xlu0 %2339  ;;  %6177 = vrcp.f32 %v1997_v43  ;;  %v5301_v43 = vld [vmem:[%s9795_s3 + $0x50] sm:$0xf] }
 0x470   :  { %v2349_v41 = vsub.f32 %v8160_v11, %v2340_v62  ;;  %v8265_v26 = vpop.eup %6171  ;;  %v2549_v50 = vmul.f32 1.442695, %v2537_v23  ;;  %5245 = vmatmul.msk.f32.vlgmr.msrb.gmra.mxu2 %vm1946_vm8, %v2393_v35  ;;  %v5954_v23 = vld [vmem:[%s9795_s3 + $0x54] sm:$0xf0] }
 0x471   :  { %v8268_v6 = vpop.eup %6173  ;;  %v2377_v57 = vsel %vm1946_vm8, %v8265_v26, 0.0  ;;  %v5302_v62 = vor.u32 %v5954_v23, %v5301_v43 }
 0x472   :  { %v2361_v9 = vmul.f32 1.442695, %v2349_v41  ;;  %6179 = vpow2.f32 %v2549_v50  ;;  %v2565_v22 = vsel %vm1946_vm8, %v8268_v6, 0.0  ;;  %2378 = vadd.xlane.f32.xlu2 %v2377_v57  ;;  %v6176_v10 = vpop.eup %6175  ;;  %v5293_v41 = vld [vmem:[%s9795_s3 + $0x40] sm:$0xf] }
 0x473   :  { %2566 = vadd.xlane.f32.xlu1 %v2565_v22  ;;  %v2394_v29 = vmul.f32 %v6176_v10, %v8146_v33  ;;  %v5952_v50 = vld [vmem:[%s9795_s3 + $0x44] sm:$0xf0]  ;;  %v5285_v22 = vld [vmem:[%s9795_s3 + $0x30] sm:$0xf]  ;;  %v5950_v10 = vld [vmem:[%s9795_s3 + $0x34] sm:$0xf0] }
 0x474   :  { %6181 = vpow2.f32 %v2361_v9  ;;  %v5294_v57 = vor.u32 %v5952_v50, %v5293_v41  ;;  %v5357_v50 = vld [vmem:[%s9795_s3 + $0xc0] sm:$0xf] }
 0x475   :  { %v6178_v11 = vpop.eup %6177  ;;  %v2000_v4 = vpop.xlane.xlu2 %1999 }
 0x476   :  { %v2373_v17 = vpop.xlane.xlu1 %2372  ;;  %6183 = vrcp.f32 %v2000_v4  ;;  %v2019_v25 = vmul.f32 %v6178_v11, %v8162_v58  ;;  %v5445_v11 = vld [vmem:[%s9795_s3 + $0x170] sm:$0xf]  ;;  %v5990_v4 = vld [vmem:[%s9795_s3 + $0x174] sm:$0xf0] }
 0x477   :  { %v2555_v37 = vpop.xlane.xlu0 %2554  ;;  %6185 = vrcp.f32 %v2373_v17  ;;  %v5286_v17 = vor.u32 %v5950_v10, %v5285_v22  ;;  %v5493_v10 = vld [vmem:[%s9795_s3 + $0x1d0] sm:$0xf] }
 0x478   :  { %v8276_v51 = vpop.eup %6179  ;;  %5233 = vmatmul.msk.f32.gmra.mxu3 %vm1946_vm8, %v2019_v25  ;;  %5246 = vmatmul.msk.f32.gmra.mxu2 %vm1946_vm8, %v2394_v29  ;;  %6187 = vrcp.f32 %v2555_v37  ;;  %v5446_v37 = vor.u32 %v5990_v4, %v5445_v11  ;;  %v5277_v25 = vld [vmem:[%s9795_s3 + $0x20] sm:$0xf]  ;;  %v5948_v29 = vld [vmem:[%s9795_s3 + $0x24] sm:$0xf0]  ;;  %v6002_v11 = vld [vmem:[%s9795_s3 + $0x1d4] sm:$0xf0] }
 0x479   :  { %v2568_v3 = vsel %vm1946_vm8, %v8276_v51, 0.0  ;;  %v5494_v4 = vor.u32 %v6002_v11, %v5493_v10  ;;  %v5303_v11 = vld [vmem:[%s9795_s3 + $0x58] sm:$0xf0] }
 0x47a   :  { %v8280_v52 = vpop.eup %6181  ;;  %2569 = vadd.xlane.f32.xlu0 %v2568_v3  ;;  %3103 = vmatpush.bf16.msrb.mxu0 %v5446_v37  ;;  %v5437_v3 = vld [vmem:[%s9795_s3 + $0x160] sm:$0xf]  ;;  %v5966_v37 = vld [vmem:[%s9795_s3 + $0xb4] sm:$0xf0] }
 0x47b   :  { %v2380_v5 = vsel %vm1946_vm8, %v8280_v52, 0.0 }
 0x47c   :  { %2381 = vadd.xlane.f32.xlu1 %v2380_v5  ;;  %v6184_v58 = vpop.eup %6183 }
 0x47d   :  { %v6186_v12 = vpop.eup %6185  ;;  %v2531_v33 = vpop.xlane.xlu2 %2530  ;;  %v2020_v15 = vmul.f32 %v6184_v58, %v8171_v0  ;;  %v5278_v58 = vor.u32 %v5948_v29, %v5277_v25  ;;  %v5485_v29 = vld [vmem:[%s9795_s3 + $0x1c0] sm:$0xf] }
 0x47e   :  { %v2003_v40 = vpop.xlane.xlu1 %2002  ;;  %v2538_v59 = vsub.f32 %v8186_v31, %v2531_v33  ;;  %v2395_v61 = vmul.f32 %v6186_v12, %v8173_v30  ;;  %v6188_v53 = vpop.eup %6187  ;;  %v5988_v12 = vld [vmem:[%s9795_s3 + $0x164] sm:$0xf0] }
 0x47f   :  { %v2343_v36 = vpop.xlane.xlu0 %2342  ;;  %6189 = vrcp.f32 %v2003_v40  ;;  %v2581_v16 = vmul.f32 %v6188_v53, %v8176_v56  ;;  %v5438_v33 = vor.u32 %v5988_v12, %v5437_v3  ;;  %v5946_v40 = vld [vmem:[%s9795_s3 + $0x14] sm:$0xf0]  ;;  %v5421_v53 = vld [vmem:[%s9795_s3 + $0x140] sm:$0xf]  ;;  %v6000_v3 = vld [vmem:[%s9795_s3 + $0x1c4] sm:$0xf0] }
 0x480   :  { %v2350_v8 = vsub.f32 %v8190_v20, %v2343_v36  ;;  %v2551_v2 = vmul.f32 1.442695, %v2538_v59  ;;  %5234 = vmatmul.msk.f32.gmra.mxu3 %vm1946_vm8, %v2020_v15  ;;  %5247 = vmatmul.msk.f32.gmra.mxu2 %vm1946_vm8, %v2395_v61  ;;  %v5269_v15 = vld [vmem:[%s9795_s3 + $0x10] sm:$0xf]  ;;  %v5986_v61 = vld [vmem:[%s9795_s3 + $0x154] sm:$0xf0]  ;;  %v5486_v12 = vor.u32 %v6000_v3, %v5485_v29 }
 0x481   :  { %3104 = vmatpush.bf16.msrb.mxu0 %v5438_v33  ;;  %v5429_v59 = vld [vmem:[%s9795_s3 + $0x150] sm:$0xf]  ;;  %v5270_v36 = vor.u32 %v5946_v40, %v5269_v15  ;;  %v5341_v15 = vld [vmem:[%s9795_s3 + $0xa0] sm:$0xf]  ;;  %v5964_v40 = vld [vmem:[%s9795_s3 + $0xa4] sm:$0xf0] }
 0x482   :  { %v2363_v39 = vmul.f32 1.442695, %v2350_v8  ;;  %6191 = vpow2.f32 %v2551_v2  ;;  %v5430_v8 = vor.u32 %v5986_v61, %v5429_v59  ;;  %v5261_v2 = vld [vmem:[%s9795_s3] sm:$0xf]  ;;  %v5342_v59 = vor.u32 %v5964_v40, %v5341_v15  ;;  %v5477_v61 = vld [vmem:[%s9795_s3 + $0x1b0] sm:$0xf] }
 0x483   :  { %v5295_v29 = vld [vmem:[%s9795_s3 + $0x48] sm:$0xf0] }
 0x484   :  { %6193 = vpow2.f32 %v2363_v39  ;;  %v5944_v39 = vld [vmem:[%s9795_s3 + $0x4] sm:$0xf0] }
 0x485   :  { %v6190_v48 = vpop.eup %6189  ;;  %v2006_v0 = vpop.xlane.xlu2 %2005  ;;  %3105 = vmatpush.bf16.msrb.mxu0 %v5430_v8  ;;  %v5998_v8 = vld [vmem:[%s9795_s3 + $0x1b4] sm:$0xf0] }
 0x486   :  { %v2558_v31 = vpop.xlane.xlu1 %2557  ;;  %6195 = vrcp.f32 %v2006_v0  ;;  %v2021_v30 = vmul.f32 %v6190_v48, %v8192_v27  ;;  %v5262_v0 = vor.u32 %v5944_v39, %v5261_v2  ;;  %v5478_v39 = vor.u32 %v5998_v8, %v5477_v61  ;;  %v5949_v61 = vld [vmem:[%s9795_s3 + $0x34] sm:$0xf]  ;;  %v5287_v8 = vld [vmem:[%s9795_s3 + $0x38] sm:$0xf0] }
 0x487   :  { %6197 = vrcp.f32 %v2558_v31  ;;  %v2561_v20 = vpop.xlane.xlu0 %2560 }
 0x488   :  { %v8294_v14 = vpop.eup %6191  ;;  %5235 = vmatmul.msk.f32.gmra.mxu3 %vm1946_vm8, %v2021_v30  ;;  %5252 = vmatmul.msk.f32.vlgmr.msra.gmra.mxu2 %vm1946_vm8, %v2581_v16  ;;  %6199 = vrcp.f32 %v2561_v20  ;;  %v5984_v16 = vld [vmem:[%s9795_s3 + $0x144] sm:$0xf0]  ;;  %v5413_v30 = vld [vmem:[%s9795_s3 + $0x130] sm:$0xf]  ;;  %v5982_v20 = vld [vmem:[%s9795_s3 + $0x134] sm:$0xf0] }
 0x489   :  { %v2571_v18 = vsel %vm1946_vm8, %v8294_v14, 0.0  ;;  %v5422_v31 = vor.u32 %v5984_v16, %v5421_v53  ;;  %v5333_v53 = vld [vmem:[%s9795_s3 + $0x90] sm:$0xf] }
 0x48a   :  { %v8298_v44 = vpop.eup %6193  ;;  %2572 = vadd.xlane.f32.xlu2 %v2571_v18  ;;  %v5414_v18 = vor.u32 %v5982_v20, %v5413_v30  ;;  %v5996_v30 = vld [vmem:[%s9795_s3 + $0x1a4] sm:$0xf0] }
 0x48b   :  { %v2383_v56 = vsel %vm1946_vm8, %v8298_v44, 0.0  ;;  %3106 = vmatpush.bf16.msrb.mxu0 %v5422_v31  ;;  %v5469_v31 = vld [vmem:[%s9795_s3 + $0x1a0] sm:$0xf] }
 0x48c   :  { %2384 = vadd.xlane.f32.xlu0 %v2383_v56  ;;  %v6196_v28 = vpop.eup %6195  ;;  %v5381_v56 = vld [vmem:[%s9795_s3 + $0xf0] sm:$0xf]  ;;  %v5470_v20 = vor.u32 %v5996_v30, %v5469_v31 }
 0x48d   :  { %v6198_v27 = vpop.eup %6197  ;;  %v2022_v19 = vmul.f32 %v6196_v28, %v8202_v42  ;;  %v2564_v34 = vpop.xlane.xlu2 %2563  ;;  %v5974_v28 = vld [vmem:[%s9795_s3 + $0xf4] sm:$0xf0] }
 0x48e   :  { %v2009_v1 = vpop.xlane.xlu1 %2008  ;;  %v2582_v45 = vmul.f32 %v6198_v27, %v8205_v60  ;;  %v6200_v47 = vpop.eup %6199  ;;  %v5382_v27 = vor.u32 %v5974_v28, %v5381_v56  ;;  %v5325_v56 = vld [vmem:[%s9795_s3 + $0x80] sm:$0xf]  ;;  %v5960_v28 = vld [vmem:[%s9795_s3 + $0x84] sm:$0xf0] }
 0x48f   :  { %6201 = vrcp.f32 %v2009_v1  ;;  %v2376_v38 = vpop.xlane.xlu0 %2375  ;;  %v2583_v46 = vmul.f32 %v6200_v47, %v8207_v13  ;;  %v5958_v13 = vld [vmem:[%s9795_s3 + $0x74] sm:$0xf0]  ;;  %3107 = vmatpush.bf16.msrb.mxu0 %v5414_v18  ;;  %v5980_v1 = vld [vmem:[%s9795_s3 + $0x124] sm:$0xf0] }
 0x490   :  { %5236 = vmatmul.msk.f32.gmra.mxu3 %vm1946_vm8, %v2022_v19  ;;  %5253 = vmatmul.msk.f32.gmra.mxu2 %vm1946_vm8, %v2582_v45  ;;  %6203 = vrcp.f32 %v2564_v34  ;;  %v5405_v19 = vld [vmem:[%s9795_s3 + $0x120] sm:$0xf]  ;;  %v5972_v47 = vld [vmem:[%s9795_s3 + $0xe4] sm:$0xf0] }
 0x491   :  { %6205 = vrcp.f32 %v2376_v38  ;;  %3075 = vmatpush.bf16.msra.mxu3 %v5382_v27  ;;  %v5406_v34 = vor.u32 %v5980_v1, %v5405_v19  ;;  %v5373_v38 = vld [vmem:[%s9795_s3 + $0xe0] sm:$0xf]  ;;  %v5461_v27 = vld [vmem:[%s9795_s3 + $0x190] sm:$0xf] }
 0x493   :  { %3108 = vmatpush.bf16.msrb.mxu0 %v5406_v34  ;;  %v5326_v34 = vor.u32 %v5960_v28, %v5325_v56  ;;  %v5973_v28 = vld [vmem:[%s9795_s3 + $0xf4] sm:$0xf] }
 0x495   :  { %v6202_v55 = vpop.eup %6201 }
 0x496   :  { %v2023_v63 = vmul.f32 %v6202_v55, %v8217_v21  ;;  %v6204_v42 = vpop.eup %6203  ;;  %v5317_v21 = vld [vmem:[%s9795_s3 + $0x70] sm:$0xf] }
 0x497   :  { %v6206_v60 = vpop.eup %6205  ;;  %v2584_v24 = vmul.f32 %v6204_v42, %v8219_v7  ;;  %v5318_v54 = vor.u32 %v5958_v13, %v5317_v21  ;;  %v5956_v7 = vld [vmem:[%s9795_s3 + $0x64] sm:$0xf0]  ;;  %v5397_v55 = vld [vmem:[%s9795_s3 + $0x110] sm:$0xf]  ;;  %v5970_v13 = vld [vmem:[%s9795_s3 + $0xd4] sm:$0xf0] }
 0x498   :  { %5237 = vmatmul.msk.f32.gmra.mxu3 %vm1946_vm8, %v2023_v63  ;;  %5254 = vmatmul.msk.f32.gmra.mxu2 %vm1946_vm8, %v2583_v46  ;;  %v2396_v49 = vmul.f32 %v6206_v60, %v8215_v32  ;;  %v5309_v32 = vld [vmem:[%s9795_s3 + $0x60] sm:$0xf]  ;;  %v5374_v63 = vor.u32 %v5972_v47, %v5373_v38  ;;  %v5978_v46 = vld [vmem:[%s9795_s3 + $0x114] sm:$0xf0]  ;;  %v5509_v42 = vld [vmem:[%s9795_s3 + $0x1f0] sm:$0xf] }
 0x499   :  { %3047 = vmatpush.bf16.msra.mxu1 %v5318_v54  ;;  %v5310_v35 = vor.u32 %v5956_v7, %v5309_v32  ;;  %v6006_v60 = vld [vmem:[%s9795_s3 + $0x1f4] sm:$0xf0]  ;;  %v5365_v21 = vld [vmem:[%s9795_s3 + $0xd0] sm:$0xf]  ;;  %v5389_v32 = vld [vmem:[%s9795_s3 + $0x100] sm:$0xf] }
 0x49a   :  { %3076 = vmatpush.bf16.msra.mxu3 %v5374_v63  ;;  %v5366_v54 = vor.u32 %v5970_v13, %v5365_v21  ;;  %v5976_v7 = vld [vmem:[%s9795_s3 + $0x104] sm:$0xf0]  ;;  %v5994_v38 = vld [vmem:[%s9795_s3 + $0x194] sm:$0xf0] }
 0x49b   :  { %v5390_v23 = vor.u32 %v5976_v7, %v5389_v32  ;;  %v5957_v7 = vld [vmem:[%s9795_s3 + $0x74] sm:$0xf] }
 0x49d   :  { %3048 = vmatpush.bf16.msra.mxu1 %v5310_v35  ;;  %v5501_v35 = vld [vmem:[%s9795_s3 + $0x1e0] sm:$0xf] }
 0x49e   :  { %3077 = vmatpush.bf16.msra.mxu3 %v5366_v54 }
 0x4a0   :  { %5248 = vmatmul.msk.f32.vlgmr.msrb.gmra.mxu3 %vm1946_vm8, %v2396_v49  ;;  %5255 = vmatmul.msk.f32.gmra.mxu2 %vm1946_vm8, %v2584_v24  ;;  %v5398_v49 = vor.u32 %v5978_v46, %v5397_v55  ;;  %v5510_v24 = vor.u32 %v6006_v60, %v5509_v42  ;;  %v5462_v42 = vor.u32 %v5994_v38, %v5461_v27  ;;  %v5383_v27 = vld [vmem:[%s9795_s3 + $0xf8] sm:$0xf0]  ;;  %v5375_v38 = vld [vmem:[%s9795_s3 + $0xe8] sm:$0xf0] }
 0x4a1   :  { %3049 = vmatpush.bf16.msra.mxu1 %v5302_v62  ;;  %v6004_v62 = vld [vmem:[%s9795_s3 + $0x1e4] sm:$0xf0] }
 0x4a2   :  { %3131 = vmatpush.bf16.msrb.mxu2 %v5510_v24  ;;  %3109 = vmatpush.bf16.msrb.mxu0 %v5398_v49  ;;  %v5502_v41 = vor.u32 %v6004_v62, %v5501_v35  ;;  %v5453_v24 = vld [vmem:[%s9795_s3 + $0x180] sm:$0xf]  ;;  %v5319_v35 = vld [vmem:[%s9795_s3 + $0x78] sm:$0xf0] }
 0x4a3   :  { %v5322_v62 = vor.u32 %v5957_v7, %v5319_v35  ;;  %v5965_v35 = vld [vmem:[%s9795_s3 + $0xb4] sm:$0xf] }
 0x4a5   :  { %3050 = vmatpush.bf16.msra.mxu1 %v5294_v57  ;;  %v5968_v57 = vld [vmem:[%s9795_s3 + $0xc4] sm:$0xf0] }
 0x4a6   :  { %v5358_v22 = vor.u32 %v5968_v57, %v5357_v50  ;;  %3110 = vmatpush.bf16.msrb.mxu0 %v5390_v23  ;;  %3132 = vmatpush.bf16.msrb.mxu2 %v5502_v41  ;;  %v5311_v41 = vld [vmem:[%s9795_s3 + $0x68] sm:$0xf0] }
 0x4a8   :  { %3078 = vmatpush.bf16.msra.mxu3 %v5358_v22 }
 0x4a9   :  { %3051 = vmatpush.bf16.msra.mxu1 %v5286_v17  ;;  %v5349_v17 = vld [vmem:[%s9795_s3 + $0xb0] sm:$0xf] }
 0x4aa   :  { %v5350_v25 = vor.u32 %v5966_v37, %v5349_v17  ;;  %3133 = vmatpush.bf16.msrb.mxu2 %v5494_v4 }
 0x4ac   :  { %3079 = vmatpush.bf16.msra.mxu3 %v5350_v25  ;;  %v5951_v25 = vld [vmem:[%s9795_s3 + $0x44] sm:$0xf] }
 0x4ad   :  { %3052 = vmatpush.bf16.msra.mxu1 %v5278_v58  ;;  %v5298_v3 = vor.u32 %v5951_v25, %v5295_v29  ;;  %v5327_v25 = vld [vmem:[%s9795_s3 + $0x88] sm:$0xf0] }
 0x4ae   :  { %3134 = vmatpush.bf16.msrb.mxu2 %v5486_v12 }
 0x4b0   :  { %3080 = vmatpush.bf16.msra.mxu3 %v5342_v59 }
 0x4b1   :  { %3053 = vmatpush.bf16.msra.mxu1 %v5270_v36 }
 0x4b2   :  { %3135 = vmatpush.bf16.msrb.mxu2 %v5478_v39  ;;  %v5290_v39 = vor.u32 %v5949_v61, %v5287_v8  ;;  %v5987_v61 = vld [vmem:[%s9795_s3 + $0x164] sm:$0xf] }
 0x4b5   :  { %3054 = vmatpush.bf16.msra.mxu1 %v5262_v0  ;;  %v5962_v0 = vld [vmem:[%s9795_s3 + $0x94] sm:$0xf0] }
 0x4b6   :  { %v5334_v16 = vor.u32 %v5962_v0, %v5333_v53  ;;  %3136 = vmatpush.bf16.msrb.mxu2 %v5470_v20  ;;  %v5279_v53 = vld [vmem:[%s9795_s3 + $0x28] sm:$0xf0] }
 0x4b8   :  { %3081 = vmatpush.bf16.msra.mxu3 %v5334_v16  ;;  %v5945_v16 = vld [vmem:[%s9795_s3 + $0x14] sm:$0xf] }
 0x4b9   :  { %3159 = vmatpush.bf16.msrb.mxu1 %v5322_v62 }
 0x4ba   :  { %v8340_v9 = vpop.f32.mrf.mxu2  ;;  %3137 = vmatpush.bf16.msrb.mxu2 %v5462_v42 }
 0x4bc   :  { %3082 = vmatpush.bf16.msra.mxu3 %v5326_v34 }
 0x4c2   :  { %v8363_v5 = vpop.f32.mrf.mxu2 }
 0x4c3   :  { %v8589_v56 = vpack.c.bf16 %v8363_v5, %v8340_v9  ;;  %v5263_v9 = vld [vmem:[%s9795_s3 + $0x8] sm:$0xf0]  ;;  %v5971_v5 = vld [vmem:[%s9795_s3 + $0xe4] sm:$0xf] }
 0x4ca   :  { %v8389_v48 = vpop.f32.mrf.mxu2 }
 0x4d2   :  { %v8412_v45 = vpop.f32.mrf.mxu2 }
 0x4d3   :  { %v8630_v7 = vpack.c.bf16 %v8412_v45, %v8389_v48  ;;  %v5343_v48 = vld [vmem:[%s9795_s3 + $0xa8] sm:$0xf0] }
 0x4da   :  { %v8447_v43 = vpop.f32.mrf.mxu2 }
 0x4e2   :  { %v2062_v58 = vpop.f32.mrf.mxu3 }
 0x4e3   :  { %v8476_v33 = vpop.f32.mrf.mxu2 }
 0x4e5   :  { %v2379_v36 = vpop.xlane.xlu2 %2378 }
 0x4e6   :  { %v2567_v2 = vpop.xlane.xlu1 %2566  ;;  %6207 = vrcp.f32 %v2379_v36 }
 0x4e7   :  { %6209 = vrcp.f32 %v2567_v2 }
 0x4eb   :  { %v8502_v18 = vpop.f32.mrf.mxu2 }
 0x4ec   :  { %v6208_v19 = vpop.eup %6207  ;;  %v2065_v1 = vpop.f32.mrf.mxu3 }
 0x4ed   :  { %v6210_v47 = vpop.eup %6209  ;;  %v8516_v55 = vpack.c.bf16 %v2065_v1, %v2062_v58  ;;  %v2570_v63 = vpop.xlane.xlu0 %2569  ;;  %v2397_v46 = vmul.f32 %v6208_v19, %v8265_v26  ;;  %v5992_v26 = vld [vmem:[%s9795_s3 + $0x184] sm:$0xf0]  ;;  %v5386_v19 = vor.u32 %v5973_v28, %v5383_v27  ;;  %v5943_v1 = vld [vmem:[%s9795_s3 + $0x4] sm:$0xf]  ;;  %v5423_v28 = vld [vmem:[%s9795_s3 + $0x148] sm:$0xf0] }
 0x4ee   :  { %6211 = vrcp.f32 %v2570_v63  ;;  %v2585_v49 = vmul.f32 %v6210_v47, %v8268_v6  ;;  %v5454_v21 = vor.u32 %v5992_v26, %v5453_v24  ;;  %v5266_v34 = vor.u32 %v5943_v1, %v5263_v9  ;;  %v5367_v24 = vld [vmem:[%s9795_s3 + $0xd8] sm:$0xf0] }
 0x4ef   :  { %v2382_v60 = vpop.xlane.xlu1 %2381  ;;  %3055 = vmatmul.bf16.vlgmr.msra.gmra.mxu1 %v8516_v55  ;;  %5249 = vmatmul.msk.f32.gmra.mxu3 %vm1946_vm8, %v2397_v46  ;;  %v5378_v46 = vor.u32 %v5971_v5, %v5375_v38  ;;  %v5479_v1 = vld [vmem:[%s9795_s3 + $0x1b8] sm:$0xf0]  ;;  %v5981_v5 = vld [vmem:[%s9795_s3 + $0x134] sm:$0xf] }
 0x4f0   :  { %6213 = vrcp.f32 %v2382_v60  ;;  %5256 = vmatmul.msk.f32.gmra.mxu2 %vm1946_vm8, %v2585_v49  ;;  %3187 = vmatpush.bf16.msrb.mxu3 %v5386_v19  ;;  %v5969_v49 = vld [vmem:[%s9795_s3 + $0xd4] sm:$0xf] }
 0x4f1   :  { %3138 = vmatpush.bf16.msrb.mxu2 %v5454_v21  ;;  %v5370_v26 = vor.u32 %v5969_v49, %v5367_v24  ;;  %v5967_v21 = vld [vmem:[%s9795_s3 + $0xc4] sm:$0xf]  ;;  %v5997_v19 = vld [vmem:[%s9795_s3 + $0x1b4] sm:$0xf]  ;;  %v5407_v49 = vld [vmem:[%s9795_s3 + $0x128] sm:$0xf0] }
 0x4f2   :  { %v5482_v9 = vor.u32 %v5997_v19, %v5479_v1 }
 0x4f3   :  { %v2438_v13 = vpop.f32.mrf.mxu2 }
 0x4f4   :  { %v6212_v6 = vpop.eup %6211  ;;  %3188 = vmatpush.bf16.msrb.mxu3 %v5378_v46  ;;  %v5979_v46 = vld [vmem:[%s9795_s3 + $0x124] sm:$0xf] }
 0x4f5   :  { %v2586_v32 = vmul.f32 %v6212_v6, %v8276_v51  ;;  %v5955_v51 = vld [vmem:[%s9795_s3 + $0x64] sm:$0xf]  ;;  %v5410_v24 = vor.u32 %v5979_v46, %v5407_v49 }
 0x4f6   :  { %v6214_v54 = vpop.eup %6213  ;;  %v5314_v50 = vor.u32 %v5955_v51, %v5311_v41  ;;  %v5963_v51 = vld [vmem:[%s9795_s3 + $0xa4] sm:$0xf] }
 0x4f7   :  { %v2398_v23 = vmul.f32 %v6214_v54, %v8280_v52  ;;  %v5953_v52 = vld [vmem:[%s9795_s3 + $0x54] sm:$0xf] }
 0x4f8   :  { %5257 = vmatmul.msk.f32.gmra.mxu2 %vm1946_vm8, %v2586_v32  ;;  %3160 = vmatpush.bf16.msrb.mxu1 %v5314_v50  ;;  %v5306_v17 = vor.u32 %v5953_v52, %v5303_v11  ;;  %v5346_v50 = vor.u32 %v5963_v51, %v5343_v48  ;;  %v5961_v11 = vld [vmem:[%s9795_s3 + $0x94] sm:$0xf]  ;;  %v5455_v51 = vld [vmem:[%s9795_s3 + $0x188] sm:$0xf0] }
 0x4f9   :  { %5250 = vmatmul.msk.f32.gmra.mxu3 %vm1946_vm8, %v2398_v23  ;;  %v5351_v23 = vld [vmem:[%s9795_s3 + $0xb8] sm:$0xf0] }
 0x4fa   :  { %3189 = vmatpush.bf16.msrb.mxu3 %v5370_v26  ;;  %v5354_v62 = vor.u32 %v5965_v35, %v5351_v23  ;;  %v5993_v26 = vld [vmem:[%s9795_s3 + $0x194] sm:$0xf] }
 0x4fb   :  { %v2068_v57 = vpop.f32.mrf.mxu3  ;;  %v2441_v22 = vpop.f32.mrf.mxu2 }
 0x4fc   :  { %v8545_v10 = vpack.c.bf16 %v2441_v22, %v2438_v13  ;;  %3161 = vmatpush.bf16.msrb.mxu1 %v5306_v17  ;;  %v5359_v13 = vld [vmem:[%s9795_s3 + $0xc8] sm:$0xf0] }
 0x4fd   :  { %v2573_v4 = vpop.xlane.xlu2 %2572  ;;  %v5362_v32 = vor.u32 %v5967_v21, %v5359_v13  ;;  %v5463_v21 = vld [vmem:[%s9795_s3 + $0x198] sm:$0xf0]  ;;  %v5977_v13 = vld [vmem:[%s9795_s3 + $0x114] sm:$0xf] }
 0x4fe   :  { %6215 = vrcp.f32 %v2573_v4  ;;  %3111 = vmatmul.bf16.vlgmr.msrb.gmra.mxu0 %v8545_v10  ;;  %v5335_v4 = vld [vmem:[%s9795_s3 + $0x98] sm:$0xf0] }
 0x4ff   :  { %v2385_v37 = vpop.xlane.xlu0 %2384  ;;  %3190 = vmatpush.bf16.msrb.mxu3 %v5362_v32  ;;  %v5338_v17 = vor.u32 %v5961_v11, %v5335_v4 }
 0x500   :  { %6217 = vrcp.f32 %v2385_v37  ;;  %3162 = vmatpush.bf16.msrb.mxu1 %v5298_v3  ;;  %v5959_v37 = vld [vmem:[%s9795_s3 + $0x84] sm:$0xf]  ;;  %v8669_v3 = vpack.c.bf16 %v8476_v33, %v8447_v43  ;;  %v5989_v43 = vld [vmem:[%s9795_s3 + $0x174] sm:$0xf]  ;;  %v5447_v33 = vld [vmem:[%s9795_s3 + $0x178] sm:$0xf0] }
 0x501   :  { %v5330_v29 = vor.u32 %v5959_v37, %v5327_v25 }
 0x503   :  { %v2071_v58 = vpop.f32.mrf.mxu3  ;;  %v8560_v12 = vpop.f32.mrf.mxu2  ;;  %3191 = vmatpush.bf16.msrb.mxu3 %v5354_v62  ;;  %v5991_v62 = vld [vmem:[%s9795_s3 + $0x184] sm:$0xf] }
 0x504   :  { %v6216_v15 = vpop.eup %6215  ;;  %v8562_v40 = vpack.c.bf16 %v2071_v58, %v2068_v57  ;;  %3163 = vmatpush.bf16.msrb.mxu1 %v5290_v39  ;;  %v6005_v58 = vld [vmem:[%s9795_s3 + $0x1f4] sm:$0xf]  ;;  %v5458_v48 = vor.u32 %v5991_v62, %v5455_v51 }
 0x505   :  { %v2587_v36 = vmul.f32 %v6216_v15, %v8294_v14  ;;  %v5947_v14 = vld [vmem:[%s9795_s3 + $0x24] sm:$0xf] }
 0x506   :  { %v6218_v59 = vpop.eup %6217  ;;  %3060 = vmatmul.bf16.gmra.mxu1 %v8562_v40  ;;  %v5282_v0 = vor.u32 %v5947_v14, %v5279_v53  ;;  %v5495_v14 = vld [vmem:[%s9795_s3 + $0x1d8] sm:$0xf0] }
 0x507   :  { %v2399_v2 = vmul.f32 %v6218_v59, %v8298_v44  ;;  %5258 = vmatmul.msk.f32.gmra.mxu2 %vm1946_vm8, %v2587_v36  ;;  %v5271_v44 = vld [vmem:[%s9795_s3 + $0x18] sm:$0xf0]  ;;  %3192 = vmatpush.bf16.msrb.mxu3 %v5346_v50  ;;  %v8681_v59 = vpack.c.bf16 %v8502_v18, %v8502_v18  ;;  %v6003_v36 = vld [vmem:[%s9795_s3 + $0x1e4] sm:$0xf]  ;;  %v5503_v18 = vld [vmem:[%s9795_s3 + $0x1e8] sm:$0xf0] }
 0x508   :  { %3164 = vmatpush.bf16.msrb.mxu1 %v5282_v0  ;;  %v5274_v20 = vor.u32 %v5945_v16, %v5271_v44  ;;  %v5506_v8 = vor.u32 %v6003_v36, %v5503_v18  ;;  %v5985_v0 = vld [vmem:[%s9795_s3 + $0x154] sm:$0xf]  ;;  %v5431_v16 = vld [vmem:[%s9795_s3 + $0x158] sm:$0xf0] }
 0x509   :  { %5251 = vmatmul.msk.f32.gmra.mxu3 %vm1946_vm8, %v2399_v2  ;;  %v5439_v2 = vld [vmem:[%s9795_s3 + $0x168] sm:$0xf0]  ;;  %v5434_v44 = vor.u32 %v5985_v0, %v5431_v16 }
 0x50a   :  { %v5442_v39 = vor.u32 %v5987_v61, %v5439_v2 }
 0x50b   :  { %v2074_v31 = vpop.f32.mrf.mxu3  ;;  %v2626_v30 = vpop.f32.mrf.mxu2  ;;  %3193 = vmatpush.bf16.msrb.mxu3 %v5338_v17 }
 0x50c   :  { %3165 = vmatpush.bf16.msrb.mxu1 %v5274_v20  ;;  %v5983_v20 = vld [vmem:[%s9795_s3 + $0x144] sm:$0xf] }
 0x50d   :  { %v5426_v27 = vor.u32 %v5983_v20, %v5423_v28 }
 0x50f   :  { %3194 = vmatpush.bf16.msrb.mxu3 %v5330_v29 }
 0x510   :  { %3166 = vmatpush.bf16.msrb.mxu1 %v5266_v34  ;;  %v5415_v34 = vld [vmem:[%s9795_s3 + $0x138] sm:$0xf0] }
 0x511   :  { %3083 = vmatmul.bf16.vlgmr.msra.gmra.mxu3 %v8589_v56  ;;  %v5418_v38 = vor.u32 %v5981_v5, %v5415_v34 }
 0x513   :  { %v2077_v47 = vpop.f32.mrf.mxu3  ;;  %v2629_v63 = vpop.f32.mrf.mxu2 }
 0x514   :  { %v8610_v42 = vpack.c.bf16 %v2077_v47, %v2074_v31  ;;  %v8612_v60 = vpack.c.bf16 %v2629_v63, %v2626_v30  ;;  %v5999_v31 = vld [vmem:[%s9795_s3 + $0x1c4] sm:$0xf]  ;;  %v5487_v30 = vld [vmem:[%s9795_s3 + $0x1c8] sm:$0xf0] }
 0x515   :  { %v5995_v47 = vld [vmem:[%s9795_s3 + $0x1a4] sm:$0xf]  ;;  %v5471_v63 = vld [vmem:[%s9795_s3 + $0x1a8] sm:$0xf0] }
 0x516   :  { %3065 = vmatmul.bf16.gmra.mxu1 %v8610_v42  ;;  %3139 = vmatmul.bf16.vlgmr.msrb.gmra.mxu2 %v8612_v60 }
 0x51b   :  { %v2080_v6 = vpop.f32.mrf.mxu3  ;;  %v2632_v54 = vpop.f32.mrf.mxu2 }
 0x51c   :  { %v8645_v57 = vpack.c.bf16 %v2080_v6, %v2080_v6  ;;  %v5466_v6 = vor.u32 %v5993_v26, %v5463_v21 }
 0x521   :  { %3088 = vmatmul.bf16.gmra.mxu3 %v8630_v7 }
 0x523   :  { %v2447_v45 = vpop.f32.mrf.mxu3  ;;  %v2635_v41 = vpop.f32.mrf.mxu2 }
 0x524   :  { %v8648_v22 = vpack.c.bf16 %v2447_v45, %v8560_v12  ;;  %v8650_v52 = vpack.c.bf16 %v2635_v41, %v2632_v54  ;;  %v5511_v12 = vld [vmem:[%s9795_s3 + $0x1f8] sm:$0xf0]  ;;  %v5975_v45 = vld [vmem:[%s9795_s3 + $0x104] sm:$0xf]  ;;  %v5391_v41 = vld [vmem:[%s9795_s3 + $0x108] sm:$0xf0] }
 0x525   :  { %v5514_v15 = vor.u32 %v6005_v58, %v5511_v12  ;;  %v5399_v54 = vld [vmem:[%s9795_s3 + $0x118] sm:$0xf0] }
 0x526   :  { %3070 = vmatmul.bf16.gmra.mxu1 %v8645_v57  ;;  %3116 = vmatmul.bf16.gmra.mxu0 %v8648_v22 }
 0x527   :  { %3144 = vmatmul.bf16.gmra.mxu2 %v8650_v52 }
 0x528   :  { %3243 = vmatpush.bf16.msra.mxu2 %v5514_v15 }
 0x52c   :  { %3244 = vmatpush.bf16.msra.mxu2 %v5506_v8 }
 0x531   :  { %3093 = vmatmul.bf16.gmra.mxu3 %v8669_v3 }
 0x536   :  { %3167 = vmatmul.bf16.vlgmr.msrb.gmra.mxu1 %v8516_v55  ;;  %v5450_v55 = vor.u32 %v5989_v43, %v5447_v33 }
 0x538   :  { %3215 = vmatpush.bf16.msra.mxu0 %v5450_v55 }
 0x53c   :  { %3216 = vmatpush.bf16.msra.mxu0 %v5442_v39 }
 0x540   :  { %3217 = vmatpush.bf16.msra.mxu0 %v5434_v44 }
 0x541   :  { %3098 = vmatmul.bf16.gmra.mxu3 %v8681_v59 }
 0x544   :  { %3218 = vmatpush.bf16.msra.mxu0 %v5426_v27 }
 0x546   :  { %3172 = vmatmul.bf16.gmra.mxu1 %v8562_v40  ;;  %v6001_v40 = vld [vmem:[%s9795_s3 + $0x1d4] sm:$0xf] }
 0x547   :  { %v5498_v53 = vor.u32 %v6001_v40, %v5495_v14 }
 0x548   :  { %3219 = vmatpush.bf16.msra.mxu0 %v5418_v38 }
 0x549   :  { %3245 = vmatpush.bf16.msra.mxu2 %v5498_v53 }
 0x54c   :  { %3220 = vmatpush.bf16.msra.mxu0 %v5410_v24 }
 0x551   :  { %3195 = vmatmul.bf16.vlgmr.msrb.gmra.mxu3 %v8589_v56  ;;  %v5490_v56 = vor.u32 %v5999_v31, %v5487_v30 }
 0x553   :  { %3246 = vmatpush.bf16.msra.mxu2 %v5490_v56 }
 0x556   :  { %3177 = vmatmul.bf16.gmra.mxu1 %v8610_v42  ;;  %v5474_v42 = vor.u32 %v5995_v47, %v5471_v63 }
 0x557   :  { %3247 = vmatpush.bf16.msra.mxu2 %v5482_v9 }
 0x55b   :  { %3248 = vmatpush.bf16.msra.mxu2 %v5474_v42 }
 0x55f   :  { %3249 = vmatpush.bf16.msra.mxu2 %v5466_v6 }
 0x561   :  { %3200 = vmatmul.bf16.gmra.mxu3 %v8630_v7  ;;  %v5402_v7 = vor.u32 %v5977_v13, %v5399_v54 }
 0x563   :  { %3221 = vmatpush.bf16.msra.mxu0 %v5402_v7  ;;  %3250 = vmatpush.bf16.msra.mxu2 %v5458_v48 }
 0x566   :  { %3182 = vmatmul.bf16.gmra.mxu1 %v8645_v57  ;;  %v5394_v57 = vor.u32 %v5975_v45, %v5391_v41 }
 0x568   :  { %3222 = vmatpush.bf16.msra.mxu0 %v5394_v57 }
 0x56c   :  { %v3056_v32 = vpop.f32.mrf.mxu1 }
 0x571   :  { %3205 = vmatmul.bf16.gmra.mxu3 %v8669_v3 }
 0x572   :  { %v2450_v35 = vpop.f32.mrf.mxu3 }
 0x573   :  { %v2638_v23 = vpop.f32.mrf.mxu2 }
 0x574   :  { %v8780_v50 = vpop.f32.mrf.mxu1 }
 0x57b   :  { %v2641_v4 = vpop.f32.mrf.mxu2  ;;  %v3112_v43 = vpop.f32.mrf.mxu0 }
 0x57c   :  { %v2453_v11 = vpop.f32.mrf.mxu3  ;;  %v2658_v37 = vpack.c.bf16 %v2641_v4, %v2638_v23 }
 0x57d   :  { %v2657_v17 = vpack.c.bf16 %v2453_v11, %v2450_v35 }
 0x57e   :  { %3149 = vmatmul.bf16.gmra.mxu2 %v2658_v37 }
 0x57f   :  { %3121 = vmatmul.bf16.gmra.mxu0 %v2657_v17 }
 0x581   :  { %3210 = vmatmul.bf16.gmra.mxu3 %v8681_v59 }
 0x583   :  { %v3061_v25 = vpop.f32.mrf.mxu1  ;;  %v8791_v39 = vpop.f32.mrf.mxu0 }
 0x58a   :  { %v2644_v29 = vpop.f32.mrf.mxu2 }
 0x58b   :  { %v2662_v58 = vpack.c.bf16 %v2644_v29, %v2644_v29  ;;  %v8783_v12 = vpop.f32.mrf.mxu1 }
 0x58c   :  { %v2456_v3 = vpop.f32.mrf.mxu3 }
 0x58d   :  { %v2661_v15 = vpack.c.bf16 %v2456_v3, %v2456_v3 }
 0x58e   :  { %3154 = vmatmul.bf16.gmra.mxu2 %v2662_v58 }
 0x58f   :  { %3126 = vmatmul.bf16.gmra.mxu0 %v2661_v15 }
 0x593   :  { %v3066_v33 = vpop.f32.mrf.mxu1 }
 0x594   :  { %v3084_v55 = vpop.f32.mrf.mxu3 }
 0x595   :  { %v3085_v36 = vadd.f32 %v3084_v55, %v3056_v32 }
 0x597   :  { %v3113_v18 = vadd.f32 %v3112_v43, %v3085_v36 }
 0x599   :  { %v3140_v61 = vpop.f32.mrf.mxu2 }
 0x59a   :  { %v8785_v8 = vadd.f32 %v3140_v61, %v3113_v18  ;;  %v6248_v61 = vld [vmem:[%s9790_s0] sm:$0xff] }
 0x59b   :  { %v8787_v2 = vpop.f32.mrf.mxu1 }
 0x59c   :  { %v8789_v59 = vpop.f32.mrf.mxu3 }
 0x59e   :  { %3251 = vmatmul.bf16.vlgmr.msra.gmra.mxu2 %v8612_v60 }
 0x59f   :  { %3223 = vmatmul.bf16.vlgmr.msra.gmra.mxu0 %v8545_v10 }
 0x5a1   :  { %v8795_v40 = vpop.f32.mrf.mxu2 }
 0x5a3   :  { %v3071_v14 = vpop.f32.mrf.mxu1  ;;  %v3117_v16 = vpop.f32.mrf.mxu0 }
 0x5a4   :  { %v3089_v53 = vpop.f32.mrf.mxu3 }
 0x5a5   :  { %v3090_v0 = vadd.f32 %v3089_v53, %v3061_v25 }
 0x5a7   :  { %v3118_v44 = vadd.f32 %v3117_v16, %v3090_v0  ;;  %v6249_v16 = vld [vmem:[%s9790_s0 + $0x8] sm:$0xff] }
 0x5aa   :  { %v3145_v31 = vpop.f32.mrf.mxu2 }
 0x5ab   :  { %v8797_v30 = vadd.f32 %v3145_v31, %v3118_v44  ;;  %v3073_v20 = vpop.f32.mrf.mxu1  ;;  %v8811_v13 = vpop.f32.mrf.mxu0 }
 0x5ac   :  { %v8799_v56 = vpop.f32.mrf.mxu3 }
 0x5ae   :  { %3256 = vmatmul.bf16.gmra.mxu2 %v8650_v52 }
 0x5af   :  { %3228 = vmatmul.bf16.gmra.mxu0 %v8648_v22 }
 0x5b2   :  { %v8815_v32 = vpop.f32.mrf.mxu2 }
 0x5b3   :  { %v3168_v28 = vpop.f32.mrf.mxu1 }
 0x5b4   :  { %v3094_v10 = vpop.f32.mrf.mxu3 }
 0x5b5   :  { %v3095_v60 = vadd.f32 %v3094_v10, %v3066_v33  ;;  %v3087_v33 = vadd.f32 %v8789_v59, %v8780_v50 }
 0x5b7   :  { %v3115_v50 = vadd.f32 %v8791_v39, %v3087_v33  ;;  %v6250_v39 = vld [vmem:[%s9790_s0 + $0x10] sm:$0xff] }
 0x5b9   :  { %v3143_v10 = vadd.f32 %v8795_v40, %v3115_v50 }
 0x5bb   :  { %v3170_v19 = vpop.f32.mrf.mxu1 }
 0x5bc   :  { %v8803_v27 = vpop.f32.mrf.mxu3 }
 0x5be   :  { %3261 = vmatmul.bf16.gmra.mxu2 %v2658_v37 }
 0x5bf   :  { %3233 = vmatmul.bf16.gmra.mxu0 %v2657_v17 }
 0x5c3   :  { %v3173_v9 = vpop.f32.mrf.mxu1 }
 0x5c4   :  { %v3099_v1 = vpop.f32.mrf.mxu3 }
 0x5c5   :  { %v3100_v5 = vadd.f32 %v3099_v1, %v3071_v14  ;;  %v3271_v14 = vadd.f32 %v6248_v61, %v8785_v8 }
 0x5cb   :  { %v8805_v38 = vpop.f32.mrf.mxu1 }
 0x5cc   :  { %v3101_v34 = vpop.f32.mrf.mxu3 }
 0x5cd   :  { %v6251_v34 = vld [vmem:[%s9790_s0 + $0x18] sm:$0xff] }
 0x5ce   :  { %3266 = vmatmul.bf16.gmra.mxu2 %v2662_v58 }
 0x5cf   :  { %3238 = vmatmul.bf16.gmra.mxu0 %v2661_v15  ;;  %v4605_v15 = vld [vmem:[%s9792_s8 + $0x6] ss:$8 sm:$0x3] }
 0x5d0   :  { %v8834_v18 = vperm.slane %v4605_v15, 1  ;;  %v8840_v53 = vperm.slane %v4605_v15, 0  ;;  %v6255_v15 = vld [vmem:[%s9790_s0 + $0x38] sm:$0xff] }
 0x5d2   :  { %v8850_v20 = vadd.f32 %v8840_v53, %v3271_v14 }
 0x5d3   :  { %v3178_v47 = vpop.f32.mrf.mxu1 }
 0x5d4   :  { %v3196_v22 = vpop.f32.mrf.mxu3 }
 0x5d5   :  { %v3197_v63 = vadd.f32 %v3196_v22, %v3168_v28 }
 0x5db   :  { %v8807_v52 = vpop.f32.mrf.mxu1 }
 0x5dc   :  { %v3198_v46 = vpop.f32.mrf.mxu3 }
 0x5dd   :  { %v3199_v59 = vadd.f32 %v3198_v46, %v3170_v19  ;;  %v3273_v19 = vadd.f32 %v6250_v39, %v3143_v10 }
 0x5df   :  { %v8866_v22 = vadd.f32 %v8840_v53, %v3273_v19 }
 0x5e3   :  { %v3183_v42 = vpop.f32.mrf.mxu1 }
 0x5e4   :  { %v3201_v49 = vpop.f32.mrf.mxu3 }
 0x5e5   :  { %v3202_v24 = vadd.f32 %v3201_v49, %v3173_v9 }
 0x5eb   :  { %v3185_v26 = vpop.f32.mrf.mxu1 }
 0x5ec   :  { %v8809_v21 = vpop.f32.mrf.mxu3 }
 0x5f4   :  { %v3206_v6 = vpop.f32.mrf.mxu3 }
 0x5f5   :  { %v8813_v54 = vadd.f32 %v3206_v6, %v3178_v47 }
 0x5fc   :  { %v3122_v7 = vpop.f32.mrf.mxu0  ;;  %v8817_v35 = vpop.f32.mrf.mxu3 }
 0x5fd   :  { %v3123_v23 = vadd.f32 %v3122_v7, %v3095_v60  ;;  %v6252_v7 = vld [vmem:[%s9790_s0 + $0x20] sm:$0xff] }
 0x601   :  { %v3150_v62 = vpop.f32.mrf.mxu2 }
 0x602   :  { %v8819_v51 = vadd.f32 %v3150_v62, %v3123_v23  ;;  %v3275_v23 = vadd.f32 %v6252_v7, %v8797_v30 }
 0x604   :  { %v8821_v48 = vpop.f32.mrf.mxu0  ;;  %v3211_v45 = vpop.f32.mrf.mxu3 }
 0x605   :  { %v8823_v41 = vadd.f32 %v3211_v45, %v3183_v42  ;;  %v3092_v42 = vadd.f32 %v8799_v56, %v8783_v12  ;;  %v3204_v12 = vadd.f32 %v8809_v21, %v8805_v38  ;;  %v6254_v38 = vld [vmem:[%s9790_s0 + $0x30] sm:$0xff] }
 0x609   :  { %v8825_v57 = vpop.f32.mrf.mxu2 }
 0x60c   :  { %v3127_v11 = vpop.f32.mrf.mxu0  ;;  %v3213_v4 = vpop.f32.mrf.mxu3 }
 0x60d   :  { %v3128_v17 = vadd.f32 %v3127_v11, %v3100_v5  ;;  %v3120_v11 = vadd.f32 %v8811_v13, %v3092_v42  ;;  %v8887_v4 = vadd.f32 %v8840_v53, %v3275_v23 }
 0x60f   :  { %v3148_v30 = vadd.f32 %v8815_v32, %v3120_v11 }
 0x611   :  { %v3155_v37 = vpop.f32.mrf.mxu2  ;;  %v3277_v21 = vadd.f32 %v6254_v38, %v3148_v30 }
 0x612   :  { %v8827_v25 = vadd.f32 %v3155_v37, %v3128_v17 }
 0x613   :  { %v8903_v33 = vadd.f32 %v8840_v53, %v3277_v21 }
 0x614   :  { %v3129_v29 = vpop.f32.mrf.mxu0 }
 0x619   :  { %v3157_v3 = vpop.f32.mrf.mxu2 }
 0x61c   :  { %v3224_v58 = vpop.f32.mrf.mxu0 }
 0x61d   :  { %v3225_v43 = vadd.f32 %v3224_v58, %v3197_v63 }
 0x621   :  { %v3252_v55 = vpop.f32.mrf.mxu2 }
 0x622   :  { %v3253_v36 = vadd.f32 %v3252_v55, %v3225_v43 }
 0x624   :  { %v3226_v0 = vpop.f32.mrf.mxu0  ;;  %v3272_v44 = vadd.f32 %v6249_v16, %v3253_v36  ;;  %v3097_v16 = vadd.f32 %v8803_v27, %v8787_v2 }
 0x625   :  { %v3227_v8 = vadd.f32 %v3226_v0, %v3199_v59 }
 0x626   :  { %v8847_v31 = vadd.f32 %v8834_v18, %v3272_v44  ;;  %v6256_v44 = vld [vmem:[%s9790_s0 + $0x40] sm:$0xff] }
 0x627   :  { %v3279_v50 = vadd.f32 %v6256_v44, %v8819_v51 }
 0x628   :  { %v3304_v28 = vsel %vm68_vm0, %v8847_v31, 0.0 }
 0x629   :  { %v3254_v60 = vpop.f32.mrf.mxu2  ;;  %v3305_v1 = vadd.f32 %v3304_v28, %v8850_v20  ;;  %v3209_v28 = vadd.f32 %v8817_v35, %v8807_v52  ;;  %v8925_v27 = vadd.f32 %v8840_v53, %v3279_v50  ;;  %v6258_v52 = vld [vmem:[%s9790_s0 + $0x50] sm:$0xff] }
 0x62a   :  { %v3255_v9 = vadd.f32 %v3254_v60, %v3227_v8  ;;  %v3125_v8 = vadd.f32 %v8821_v48, %v3097_v16 }
 0x62b   :  { %3306 = vadd.xlane.f32.xlu1 %v3305_v1 }
 0x62c   :  { %v3229_v5 = vpop.f32.mrf.mxu0  ;;  %v3274_v40 = vadd.f32 %v6251_v34, %v3255_v9  ;;  %v3153_v51 = vadd.f32 %v8825_v57, %v3125_v8 }
 0x62d   :  { %v3230_v63 = vadd.f32 %v3229_v5, %v3202_v24  ;;  %v6253_v24 = vld [vmem:[%s9790_s0 + $0x28] sm:$0xff]  ;;  %v6259_v5 = vld [vmem:[%s9790_s0 + $0x58] sm:$0xff] }
 0x62e   :  { %v8863_v47 = vadd.f32 %v8834_v18, %v3274_v40  ;;  %v3281_v35 = vadd.f32 %v6258_v52, %v3153_v51 }
 0x630   :  { %v3308_v46 = vsel %vm68_vm0, %v8863_v47, 0.0  ;;  %v8941_v40 = vadd.f32 %v8840_v53, %v3281_v35  ;;  %v5575_v35 = vld [vmem:[%s9796_s4 + $0x78] sm:$0xf0] }
 0x631   :  { %v3257_v49 = vpop.f32.mrf.mxu2  ;;  %v3309_v26 = vadd.f32 %v3308_v46, %v8866_v22 }
 0x632   :  { %v3258_v6 = vadd.f32 %v3257_v49, %v3230_v63 }
 0x633   :  { %3310 = vadd.xlane.f32.xlu2 %v3309_v26 }
 0x634   :  { %v3231_v62 = vpop.f32.mrf.mxu0  ;;  %v3276_v45 = vadd.f32 %v6253_v24, %v3258_v6  ;;  %v6260_v6 = vld [vmem:[%s9790_s0 + $0x60] sm:$0xff] }
 0x635   :  { %v3232_v17 = vadd.f32 %v3231_v62, %v3204_v12  ;;  %v3283_v7 = vadd.f32 %v6260_v6, %v8827_v25  ;;  %v6261_v62 = vld [vmem:[%s9790_s0 + $0x68] sm:$0xff] }
 0x636   :  { %v8884_v56 = vadd.f32 %v8834_v18, %v3276_v45 }
 0x637   :  { %v8958_v45 = vadd.f32 %v8840_v53, %v3283_v7 }
 0x638   :  { %v3312_v37 = vsel %vm68_vm0, %v8884_v56, 0.0 }
 0x639   :  { %v3259_v29 = vpop.f32.mrf.mxu2  ;;  %v3313_v3 = vadd.f32 %v3312_v37, %v8887_v4 }
 0x63a   :  { %v3260_v58 = vadd.f32 %v3259_v29, %v3232_v17  ;;  %v9823_v17 = vld [vmem:[#allocation2_spill] sm:$0xff] }
 0x63b   :  { %3314 = vadd.xlane.f32.xlu0 %v3313_v3 }
 0x63c   :  { %v3234_v13 = vpop.f32.mrf.mxu0  ;;  %v3278_v32 = vadd.f32 %v6255_v15, %v3260_v58 }
 0x63d   :  { %v3235_v55 = vadd.f32 %v3234_v13, %v8813_v54  ;;  %v6257_v54 = vld [vmem:[%s9790_s0 + $0x48] sm:$0xff] }
 0x63e   :  { %v8900_v43 = vadd.f32 %v8834_v18, %v3278_v32 }
 0x640   :  { %v3316_v36 = vsel %vm68_vm0, %v8900_v43, 0.0 }
 0x641   :  { %v3262_v61 = vpop.f32.mrf.mxu2  ;;  %v3317_v14 = vadd.f32 %v3316_v36, %v8903_v33 }
 0x642   :  { %v3263_v0 = vadd.f32 %v3262_v61, %v3235_v55 }
 0x643   :  { %3318 = vadd.xlane.f32.xlu1 %v3317_v14 }
 0x644   :  { %v3236_v59 = vpop.f32.mrf.mxu0  ;;  %v3280_v10 = vadd.f32 %v6257_v54, %v3263_v0 }
 0x645   :  { %v3237_v60 = vadd.f32 %v3236_v59, %v3209_v28 }
 0x646   :  { %v8922_v2 = vadd.f32 %v8834_v18, %v3280_v10 }
 0x648   :  { %v3320_v1 = vsel %vm68_vm0, %v8922_v2, 0.0 }
 0x649   :  { %v3264_v9 = vpop.f32.mrf.mxu2  ;;  %v3321_v39 = vadd.f32 %v3320_v1, %v8925_v27  ;;  %v5607_v1 = vld [vmem:[%s9796_s4 + $0xb8] sm:$0xf0] }
 0x64a   :  { %v3265_v19 = vadd.f32 %v3264_v9, %v3237_v60  ;;  %v6029_v60 = vld [vmem:[%s9796_s4 + $0xb4] sm:$0xf] }
 0x64b   :  { %3322 = vadd.xlane.f32.xlu2 %v3321_v39  ;;  %v6021_v9 = vld [vmem:[%s9796_s4 + $0x74] sm:$0xf]  ;;  %v5610_v52 = vor.u32 %v6029_v60, %v5607_v1 }
 0x64c   :  { %v3239_v48 = vpop.f32.mrf.mxu0  ;;  %v3282_v57 = vadd.f32 %v6259_v5, %v3265_v19  ;;  %v6030_v5 = vld [vmem:[%s9796_s4 + $0xb4] sm:$0xf0] }
 0x64d   :  { %v3240_v63 = vadd.f32 %v3239_v48, %v8823_v41  ;;  %v5605_v48 = vld [vmem:[%s9796_s4 + $0xb0] sm:$0xf]  ;;  %3789 = vmatpush.bf16.msrb.mxu2 %v5610_v52 }
 0x64e   :  { %v8938_v34 = vadd.f32 %v8834_v18, %v3282_v57  ;;  %v5578_v57 = vor.u32 %v6021_v9, %v5575_v35 }
 0x650   :  { %v3324_v46 = vsel %vm68_vm0, %v8938_v34, 0.0  ;;  %3757 = vmatpush.bf16.msrb.mxu0 %v5578_v57 }
 0x651   :  { %v3267_v42 = vpop.f32.mrf.mxu2  ;;  %v3325_v49 = vadd.f32 %v3324_v46, %v8941_v40  ;;  %v5573_v46 = vld [vmem:[%s9796_s4 + $0x70] sm:$0xf] }
 0x652   :  { %v3268_v26 = vadd.f32 %v3267_v42, %v3240_v63  ;;  %v5606_v63 = vor.u32 %v6030_v5, %v5605_v48  ;;  %v6022_v42 = vld [vmem:[%s9796_s4 + $0x74] sm:$0xf0] }
 0x653   :  { %3326 = vadd.xlane.f32.xlu0 %v3325_v49  ;;  %v6019_v49 = vld [vmem:[%s9796_s4 + $0x64] sm:$0xf]  ;;  %v5574_v7 = vor.u32 %v6022_v42, %v5573_v46 }
 0x654   :  { %v3241_v23 = vpop.f32.mrf.mxu0  ;;  %v3284_v41 = vadd.f32 %v6261_v62, %v3268_v26  ;;  %v6027_v62 = vld [vmem:[%s9796_s4 + $0xa4] sm:$0xf]  ;;  %3733 = vmatpush.bf16.msra.mxu3 %v5606_v63 }
 0x655   :  { %v5567_v23 = vld [vmem:[%s9796_s4 + $0x68] sm:$0xf0]  ;;  %3701 = vmatpush.bf16.msra.mxu1 %v5574_v7  ;;  %v5557_v7 = vld [vmem:[%s9796_s4 + $0x50] sm:$0xf] }
 0x656   :  { %v8955_v24 = vadd.f32 %v8834_v18, %v3284_v41  ;;  %v5599_v41 = vld [vmem:[%s9796_s4 + $0xa8] sm:$0xf0] }
 0x658   :  { %v3328_v11 = vsel %vm68_vm0, %v8955_v24, 0.0 }
 0x659   :  { %v3269_v12 = vpop.f32.mrf.mxu2  ;;  %v3329_v30 = vadd.f32 %v3328_v11, %v8958_v45  ;;  %v5570_v11 = vor.u32 %v6019_v49, %v5567_v23  ;;  %v6018_v23 = vld [vmem:[%s9796_s4 + $0x54] sm:$0xf0] }
 0x65a   :  { %v5602_v12 = vor.u32 %v6027_v62, %v5599_v41  ;;  %v5558_v62 = vor.u32 %v6018_v23, %v5557_v7  ;;  %v6015_v41 = vld [vmem:[%s9796_s4 + $0x44] sm:$0xf]  ;;  %v5583_v23 = vld [vmem:[%s9796_s4 + $0x88] sm:$0xf0] }
 0x65b   :  { %3330 = vadd.xlane.f32.xlu0 %v3329_v30  ;;  %v5565_v30 = vld [vmem:[%s9796_s4 + $0x60] sm:$0xf]  ;;  %3758 = vmatpush.bf16.msrb.mxu0 %v5570_v11  ;;  %v5551_v11 = vld [vmem:[%s9796_s4 + $0x48] sm:$0xf0]  ;;  %v6023_v7 = vld [vmem:[%s9796_s4 + $0x84] sm:$0xf] }
 0x65c   :  { %3790 = vmatpush.bf16.msrb.mxu2 %v5602_v12  ;;  %v5549_v12 = vld [vmem:[%s9796_s4 + $0x40] sm:$0xf] }
 0x69e   :  { %v3307_v25 = vpop.xlane.xlu1 %3306 }
 0x69f   :  { %v3332_v37 = vmul.f32 %v3307_v25, %v9823_v17  ;;  %v6020_v25 = vld [vmem:[%s9796_s4 + $0x64] sm:$0xf0] }
 0x6a1   :  { %v8965_v29 = vsub.f32 %v8850_v20, %v3332_v37  ;;  %v8968_v3 = vsub.f32 %v8847_v31, %v3332_v37  ;;  %v6017_v37 = vld [vmem:[%s9796_s4 + $0x54] sm:$0xf] }
 0x6a3   :  { %v3353_v18 = vmul.f32 %v8965_v29, %v8965_v29  ;;  %v3354_v53 = vmul.f32 %v8968_v3, %v8968_v3 }
 0x6a5   :  { %v3367_v58 = vsel %vm68_vm0, %v3354_v53, 0.0  ;;  %v5566_v53 = vor.u32 %v6020_v25, %v5565_v30  ;;  %v5554_v30 = vor.u32 %v6015_v41, %v5551_v11  ;;  %v6016_v25 = vld [vmem:[%s9796_s4 + $0x44] sm:$0xf0]  ;;  %v5586_v11 = vor.u32 %v6023_v7, %v5583_v23 }
 0x6a6   :  { %v3311_v38 = vpop.xlane.xlu2 %3310  ;;  %v3368_v21 = vadd.f32 %v3367_v58, %v3353_v18  ;;  %v5559_v58 = vld [vmem:[%s9796_s4 + $0x58] sm:$0xf0]  ;;  %v4602_v7 = vld [vmem:[%s9792_s8 + $0x3] ss:$8 sm:$0x3] }
 0x6a7   :  { %v3333_v13 = vmul.f32 %v3311_v38, %v9823_v17  ;;  %v5597_v38 = vld [vmem:[%s9796_s4 + $0xa0] sm:$0xf]  ;;  %3702 = vmatpush.bf16.msra.mxu1 %v5566_v53  ;;  %v5543_v53 = vld [vmem:[%s9796_s4 + $0x38] sm:$0xf0] }
 0x6a8   :  { %3369 = vadd.xlane.f32.xlu1 %v3368_v21 }
 0x6a9   :  { %v8977_v15 = vsub.f32 %v8866_v22, %v3333_v13  ;;  %v8980_v32 = vsub.f32 %v8863_v47, %v3333_v13 }
 0x6ab   :  { %v3355_v55 = vmul.f32 %v8977_v15, %v8977_v15  ;;  %v3356_v36 = vmul.f32 %v8980_v32, %v8980_v32  ;;  %3703 = vmatpush.bf16.msra.mxu1 %v5558_v62  ;;  %v5581_v62 = vld [vmem:[%s9796_s4 + $0x80] sm:$0xf] }
 0x6ad   :  { %v3371_v61 = vsel %vm68_vm0, %v3356_v36, 0.0 }
 0x6ae   :  { %v3315_v14 = vpop.xlane.xlu0 %3314  ;;  %v3372_v0 = vadd.f32 %v3371_v61, %v3355_v55  ;;  %v6028_v55 = vld [vmem:[%s9796_s4 + $0xa4] sm:$0xf0] }
 0x6af   :  { %v3334_v16 = vmul.f32 %v3315_v14, %v9823_v17  ;;  %v5598_v61 = vor.u32 %v6028_v55, %v5597_v38  ;;  %v5562_v14 = vor.u32 %v6017_v37, %v5559_v58  ;;  %v5550_v37 = vor.u32 %v6016_v25, %v5549_v12  ;;  %v5541_v58 = vld [vmem:[%s9796_s4 + $0x30] sm:$0xf]  ;;  %v6011_v55 = vld [vmem:[%s9796_s4 + $0x24] sm:$0xf]  ;;  %v6024_v12 = vld [vmem:[%s9796_s4 + $0x84] sm:$0xf0] }
 0x6b0   :  { %3373 = vadd.xlane.f32.xlu2 %v3372_v0  ;;  %v5582_v25 = vor.u32 %v6024_v12, %v5581_v62 }
 0x6b1   :  { %v8989_v44 = vsub.f32 %v8887_v4, %v3334_v16  ;;  %v8992_v50 = vsub.f32 %v8884_v56, %v3334_v16  ;;  %3734 = vmatpush.bf16.msra.mxu3 %v5598_v61  ;;  %3759 = vmatpush.bf16.msrb.mxu0 %v5562_v14  ;;  %v5533_v61 = vld [vmem:[%s9796_s4 + $0x20] sm:$0xf]  ;;  %v6025_v14 = vld [vmem:[%s9796_s4 + $0x94] sm:$0xf] }
 0x6b2   :  { %3704 = vmatpush.bf16.msra.mxu1 %v5550_v37  ;;  %v5519_v37 = vld [vmem:[%s9796_s4 + $0x8] sm:$0xf0] }
 0x6b3   :  { %v3357_v59 = vmul.f32 %v8989_v44, %v8989_v44  ;;  %v3358_v54 = vmul.f32 %v8992_v50, %v8992_v50 }
 0x6b5   :  { %v3375_v10 = vsel %vm68_vm0, %v3358_v54, 0.0  ;;  %3760 = vmatpush.bf16.msrb.mxu0 %v5554_v30  ;;  %v6007_v30 = vld [vmem:[%s9796_s4 + $0x4] sm:$0xf] }
 0x6b6   :  { %v3319_v8 = vpop.xlane.xlu1 %3318  ;;  %v3376_v28 = vadd.f32 %v3375_v10, %v3357_v59 }
 0x6b7   :  { %v3335_v51 = vmul.f32 %v3319_v8, %v9823_v17 }
 0x6b8   :  { %3377 = vadd.xlane.f32.xlu1 %v3376_v28 }
 0x6b9   :  { %v9010_v39 = vsub.f32 %v8903_v33, %v3335_v51  ;;  %v9013_v19 = vsub.f32 %v8900_v43, %v3335_v51 }
 0x6bb   :  { %v3359_v26 = vmul.f32 %v9010_v39, %v9010_v39  ;;  %v3360_v6 = vmul.f32 %v9013_v19, %v9013_v19 }
 0x6bd   :  { %v3379_v18 = vsel %vm68_vm0, %v3360_v6, 0.0 }
 0x6be   :  { %v3323_v21 = vpop.xlane.xlu2 %3322  ;;  %v3380_v13 = vadd.f32 %v3379_v18, %v3359_v26  ;;  %v6013_v18 = vld [vmem:[%s9796_s4 + $0x34] sm:$0xf] }
 0x6bf   :  { %v3336_v36 = vmul.f32 %v3323_v21, %v9823_v17  ;;  %v5546_v38 = vor.u32 %v6013_v18, %v5543_v53  ;;  %v6014_v21 = vld [vmem:[%s9796_s4 + $0x34] sm:$0xf0]  ;;  %v5517_v18 = vld [vmem:[%s9796_s4] sm:$0xf]  ;;  %v6008_v53 = vld [vmem:[%s9796_s4 + $0x4] sm:$0xf0] }
 0x6c0   :  { %3381 = vadd.xlane.f32.xlu2 %v3380_v13  ;;  %v5542_v13 = vor.u32 %v6014_v21, %v5541_v58  ;;  %v5522_v58 = vor.u32 %v6007_v30, %v5519_v37  ;;  %v9207_v37 = vperm.slane %v4602_v7, 0 }
 0x6c1   :  { %v9067_v0 = vsub.f32 %v8925_v27, %v3336_v36  ;;  %v9070_v16 = vsub.f32 %v8922_v2, %v3336_v36  ;;  %3761 = vmatpush.bf16.msrb.mxu0 %v5546_v38  ;;  %v5535_v36 = vld [vmem:[%s9796_s4 + $0x28] sm:$0xf0]  ;;  %v5518_v38 = vor.u32 %v6008_v53, %v5517_v18  ;;  %v9209_v18 = vperm.slane %v4602_v7, 1 }
 0x6c2   :  { %3705 = vmatpush.bf16.msra.mxu1 %v5542_v13 }
 0x6c3   :  { %v3361_v59 = vmul.f32 %v9067_v0, %v9067_v0  ;;  %v3362_v54 = vmul.f32 %v9070_v16, %v9070_v16 }
 0x6c5   :  { %v3383_v10 = vsel %vm68_vm0, %v3362_v54, 0.0  ;;  %v5538_v54 = vor.u32 %v6011_v55, %v5535_v36 }
 0x6c6   :  { %v3327_v8 = vpop.xlane.xlu0 %3326  ;;  %v3384_v28 = vadd.f32 %v3383_v10, %v3361_v59  ;;  %v5591_v59 = vld [vmem:[%s9796_s4 + $0x98] sm:$0xf0]  ;;  %v6012_v10 = vld [vmem:[%s9796_s4 + $0x24] sm:$0xf0] }
 0x6c7   :  { %v3337_v51 = vmul.f32 %v3327_v8, %v9823_v17  ;;  %v5594_v8 = vor.u32 %v6025_v14, %v5591_v59  ;;  %3762 = vmatpush.bf16.msrb.mxu0 %v5538_v54 }
 0x6c8   :  { %3385 = vadd.xlane.f32.xlu0 %v3384_v28  ;;  %v5534_v28 = vor.u32 %v6012_v10, %v5533_v61 }
 0x6c9   :  { %v9079_v60 = vsub.f32 %v8941_v40, %v3337_v51  ;;  %v9082_v1 = vsub.f32 %v8938_v34, %v3337_v51  ;;  %3791 = vmatpush.bf16.msrb.mxu2 %v5594_v8  ;;  %v5589_v51 = vld [vmem:[%s9796_s4 + $0x90] sm:$0xf] }
 0x6ca   :  { %3706 = vmatpush.bf16.msra.mxu1 %v5534_v28 }
 0x6cb   :  { %v3363_v9 = vmul.f32 %v9079_v60, %v9079_v60  ;;  %v3364_v52 = vmul.f32 %v9082_v1, %v9082_v1 }
 0x6cd   :  { %v3387_v35 = vsel %vm68_vm0, %v3364_v52, 0.0  ;;  %v6009_v52 = vld [vmem:[%s9796_s4 + $0x14] sm:$0xf]  ;;  %3792 = vmatpush.bf16.msrb.mxu2 %v5586_v11 }
 0x6ce   :  { %v3331_v48 = vpop.xlane.xlu0 %3330  ;;  %v3388_v5 = vadd.f32 %v3387_v35, %v3363_v9  ;;  %v6026_v9 = vld [vmem:[%s9796_s4 + $0x94] sm:$0xf0] }
 0x6cf   :  { %v3338_v57 = vmul.f32 %v3331_v48, %v9823_v17  ;;  %v5590_v35 = vor.u32 %v6026_v9, %v5589_v51  ;;  %v5527_v48 = vld [vmem:[%s9796_s4 + $0x18] sm:$0xf0] }
 0x6d0   :  { %3389 = vadd.xlane.f32.xlu1 %v3388_v5  ;;  %v5525_v5 = vld [vmem:[%s9796_s4 + $0x10] sm:$0xf] }
 0x6d1   :  { %v9091_v63 = vsub.f32 %v8958_v45, %v3338_v57  ;;  %v9094_v46 = vsub.f32 %v8955_v24, %v3338_v57  ;;  %v6010_v57 = vld [vmem:[%s9796_s4 + $0x14] sm:$0xf0]  ;;  %3735 = vmatpush.bf16.msra.mxu3 %v5590_v35  ;;  %v4601_v35 = vld [vmem:[%s9792_s8 + $0x2] ss:$8 sm:$0x3] }
 0x6d3   :  { %v3365_v42 = vmul.f32 %v9091_v63, %v9091_v63  ;;  %v3366_v49 = vmul.f32 %v9094_v46, %v9094_v46 }
 0x6d5   :  { %v3391_v26 = vsel %vm68_vm0, %v3366_v49, 0.0  ;;  %v5530_v49 = vor.u32 %v6009_v52, %v5527_v48  ;;  %3736 = vmatpush.bf16.msra.mxu3 %v5582_v25 }
 0x6d6   :  { %v3392_v6 = vadd.f32 %v3391_v26, %v3365_v42  ;;  %v5526_v26 = vor.u32 %v6010_v57, %v5525_v5 }
 0x6d7   :  { %3763 = vmatpush.bf16.msrb.mxu0 %v5530_v49  ;;  %v9197_v49 = vperm.slane %v4601_v35, 0 }
 0x6d8   :  { %3393 = vadd.xlane.f32.xlu2 %v3392_v6  ;;  %3707 = vmatpush.bf16.msra.mxu1 %v5526_v26  ;;  %v9199_v26 = vperm.slane %v4601_v35, 1 }
 0x6db   :  { %3764 = vmatpush.bf16.msrb.mxu0 %v5522_v58 }
 0x6dc   :  { %3708 = vmatpush.bf16.msra.mxu1 %v5518_v38 }
 0x71b   :  { %v3370_v42 = vpop.xlane.xlu1 %3369 }
 0x71c   :  { %v3395_v6 = vmul.f32 %v3370_v42, %v9823_v17 }
 0x71e   :  { %v3402_v41 = vadd.f32 1e-05, %v3395_v6 }
 0x720   :  { %6219 = vrsqrt.f32 %v3402_v41  ;;  %vm3415_vm10 = vweird.f32 %v3402_v41 }
 0x723   :  { %v3374_v21 = vpop.xlane.xlu2 %3373 }
 0x724   :  { %v3396_v13 = vmul.f32 %v3374_v21, %v9823_v17 }
 0x726   :  { %v6220_v55 = vpop.eup %6219  ;;  %v3403_v36 = vadd.f32 1e-05, %v3396_v13 }
 0x727   :  { %v3410_v61 = vmul.f32 %v6220_v55, %v3402_v41  ;;  %vm3416_vm9 = vweird.f32 %v6220_v55 }
 0x728   :  { %6221 = vrsqrt.f32 %v3403_v36  ;;  %vm3417_vm11 = vmor %vm3415_vm10, %vm3416_vm9  ;;  %vm3425_vm13 = vweird.f32 %v3403_v36 }
 0x729   :  { %v3411_v14 = vmul.f32 %v6220_v55, %v3410_v61 }
 0x72b   :  { %v3412_v59 = vmul.f32 0.5, %v3411_v14  ;;  %v3378_v54 = vpop.xlane.xlu1 %3377 }
 0x72c   :  { %v3397_v10 = vmul.f32 %v3378_v54, %v9823_v17 }
 0x72d   :  { %v3413_v8 = vsub.f32 1.5, %v3412_v59 }
 0x72e   :  { %v6222_v28 = vpop.eup %6221  ;;  %v3404_v51 = vadd.f32 1e-05, %v3397_v10 }
 0x72f   :  { %v3414_v9 = vmul.f32 %v6220_v55, %v3413_v8  ;;  %v3420_v52 = vmul.f32 %v6222_v28, %v3403_v36  ;;  %vm3426_vm12 = vweird.f32 %v6222_v28 }
 0x730   :  { %6223 = vrsqrt.f32 %v3404_v51  ;;  %vm3427_vm14 = vmor %vm3425_vm13, %vm3426_vm12  ;;  %vm3435_vm1 = vweird.f32 %v3404_v51 }
 0x731   :  { %v3421_v48 = vmul.f32 %v6222_v28, %v3420_v52  ;;  %v3418_v5 = vsel %vm3417_vm11, %v6220_v55, %v3414_v9 }
 0x732   :  { %v3479_v23 = vmul.f32 %v3418_v5, %v8965_v29  ;;  %v3480_v62 = vmul.f32 %v3418_v5, %v8968_v3 }
 0x733   :  { %v3422_v57 = vmul.f32 0.5, %v3421_v48  ;;  %v3382_v42 = vpop.xlane.xlu2 %3381 }
 0x734   :  { %v3398_v6 = vmul.f32 %v3382_v42, %v9823_v17  ;;  %v3498_v53 = vmul.f32 %v9197_v49, %v3479_v23  ;;  %v3499_v58 = vmul.f32 %v9199_v26, %v3480_v62 }
 0x735   :  { %v3423_v41 = vsub.f32 1.5, %v3422_v57 }
 0x736   :  { %v6224_v11 = vpop.eup %6223  ;;  %v3405_v12 = vadd.f32 1e-05, %v3398_v6  ;;  %v3517_v59 = vadd.f32 %v9207_v37, %v3498_v53  ;;  %v3518_v54 = vadd.f32 %v9209_v18, %v3499_v58 }
 0x737   :  { %v3424_v30 = vmul.f32 %v6222_v28, %v3423_v41  ;;  %v3430_v25 = vmul.f32 %v6224_v11, %v3404_v51  ;;  %vm3436_vm15 = vweird.f32 %v6224_v11 }
 0x738   :  { %6225 = vrsqrt.f32 %v3405_v12  ;;  %vm3437_vm2 = vmor %vm3435_vm1, %vm3436_vm15  ;;  %vm3445_vm4 = vweird.f32 %v3405_v12 }
 0x739   :  { %v3428_v29 = vsel %vm3427_vm14, %v6222_v28, %v3424_v30  ;;  %v3431_v38 = vmul.f32 %v6224_v11, %v3430_v25 }
 0x73a   :  { %v3481_v3 = vmul.f32 %v3428_v29, %v8977_v15  ;;  %v3482_v21 = vmul.f32 %v3428_v29, %v8980_v32 }
 0x73b   :  { %v3432_v13 = vmul.f32 0.5, %v3431_v38  ;;  %v3386_v55 = vpop.xlane.xlu0 %3385 }
 0x73c   :  { %v3500_v36 = vmul.f32 %v9197_v49, %v3481_v3  ;;  %v3501_v61 = vmul.f32 %v9199_v26, %v3482_v21  ;;  %v3399_v14 = vmul.f32 %v3386_v55, %v9823_v17 }
 0x73d   :  { %v3433_v10 = vsub.f32 1.5, %v3432_v13 }
 0x73e   :  { %v6226_v8 = vpop.eup %6225  ;;  %v3519_v28 = vadd.f32 %v9207_v37, %v3500_v36  ;;  %v3520_v15 = vadd.f32 %v9209_v18, %v3501_v61  ;;  %v3406_v32 = vadd.f32 1e-05, %v3399_v14 }
 0x73f   :  { %v3434_v9 = vmul.f32 %v6224_v11, %v3433_v10  ;;  %v3440_v52 = vmul.f32 %v6226_v8, %v3405_v12  ;;  %vm3446_vm3 = vweird.f32 %v6226_v8 }
 0x740   :  { %v3532_v35 = vpack.c.bf16 %v3520_v15, %v3518_v54  ;;  %6227 = vrsqrt.f32 %v3406_v32  ;;  %v3531_v48 = vpack.c.bf16 %v3519_v28, %v3517_v59  ;;  %vm3447_vm5 = vmor %vm3445_vm4, %vm3446_vm3  ;;  %vm3455_vm7 = vweird.f32 %v3406_v32 }
 0x741   :  { %v3441_v5 = vmul.f32 %v6226_v8, %v3440_v52  ;;  %v3438_v57 = vsel %vm3437_vm2, %v6224_v11, %v3434_v9 }
 0x742   :  { %3709 = vmatmul.bf16.vlgmr.msra.gmra.mxu1 %v3531_v48  ;;  %5611 = vmatmul.msk.bf16.vlgmr.msra.gmra.mxu3 %vm68_vm0, %v3532_v35  ;;  %v3483_v23 = vmul.f32 %v3438_v57, %v8989_v44  ;;  %v3484_v41 = vmul.f32 %v3438_v57, %v8992_v50 }
 0x743   :  { %v3442_v42 = vmul.f32 0.5, %v3441_v5  ;;  %3765 = vmatmul.bf16.vlgmr.msrb.gmra.mxu0 %v3531_v48  ;;  %5615 = vmatmul.msk.bf16.vlgmr.msrb.gmra.mxu2 %vm68_vm0, %v3532_v35  ;;  %v3390_v6 = vpop.xlane.xlu1 %3389  ;;  %v5743_v48 = vld [vmem:[%s9797_s5 + $0xf8] sm:$0xf0] }
 0x744   :  { %v3400_v7 = vmul.f32 %v3390_v6, %v9823_v17  ;;  %v3502_v29 = vmul.f32 %v9197_v49, %v3483_v23  ;;  %v3503_v3 = vmul.f32 %v9199_v26, %v3484_v41  ;;  %v6062_v6 = vld [vmem:[%s9797_s5 + $0xf4] sm:$0xf0]  ;;  %v5677_v41 = vld [vmem:[%s9797_s5 + $0x70] sm:$0xf] }
 0x745   :  { %v3443_v62 = vsub.f32 1.5, %v3442_v42  ;;  %v5741_v42 = vld [vmem:[%s9797_s5 + $0xf0] sm:$0xf] }
 0x746   :  { %v6228_v51 = vpop.eup %6227  ;;  %v9227_v30 = vadd.f32 1e-05, %v3400_v7  ;;  %v3521_v61 = vadd.f32 %v9207_v37, %v3502_v29  ;;  %v6045_v7 = vld [vmem:[%s9797_s5 + $0x74] sm:$0xf] }
 0x747   :  { %v3444_v11 = vmul.f32 %v6226_v8, %v3443_v62  ;;  %v3450_v25 = vmul.f32 %v6228_v51, %v3406_v32  ;;  %vm3456_vm6 = vweird.f32 %v6228_v51  ;;  %v6061_v32 = vld [vmem:[%s9797_s5 + $0xf4] sm:$0xf] }
 0x748   :  { %6229 = vrsqrt.f32 %v9227_v30  ;;  %vm3457_vm8 = vmor %vm3455_vm7, %vm3456_vm6  ;;  %v5746_v57 = vor.u32 %v6061_v32, %v5743_v48  ;;  %vm3465_vm10 = vweird.f32 %v9227_v30  ;;  %v6058_v32 = vld [vmem:[%s9797_s5 + $0xd4] sm:$0xf0]  ;;  %v6041_v48 = vld [vmem:[%s9797_s5 + $0x54] sm:$0xf] }
 0x749   :  { %v3448_v53 = vsel %vm3447_vm5, %v6226_v8, %v3444_v11  ;;  %v3451_v58 = vmul.f32 %v6228_v51, %v3450_v25 }
 0x74a   :  { %v3485_v38 = vmul.f32 %v3448_v53, %v9010_v39  ;;  %v3486_v44 = vmul.f32 %v3448_v53, %v9013_v19  ;;  %v3522_v19 = vadd.f32 %v9209_v18, %v3503_v3  ;;  %4111 = vmatpush.bf16.msra.mxu2 %v5746_v57  ;;  %v6046_v53 = vld [vmem:[%s9797_s5 + $0x74] sm:$0xf0]  ;;  %v5733_v3 = vld [vmem:[%s9797_s5 + $0xe0] sm:$0xf]  ;;  %v5661_v57 = vld [vmem:[%s9797_s5 + $0x50] sm:$0xf] }
 0x74b   :  { %v3452_v21 = vmul.f32 0.5, %v3451_v58  ;;  %v3394_v50 = vpop.xlane.xlu2 %3393  ;;  %v5735_v58 = vld [vmem:[%s9797_s5 + $0xe8] sm:$0xf0] }
 0x74c   :  { %v3401_v13 = vmul.f32 %v3394_v50, %v9823_v17  ;;  %v3504_v12 = vmul.f32 %v9197_v49, %v3485_v38  ;;  %v3505_v55 = vmul.f32 %v9199_v26, %v3486_v44  ;;  %v5678_v44 = vor.u32 %v6046_v53, %v5677_v41  ;;  %v6043_v50 = vld [vmem:[%s9797_s5 + $0x64] sm:$0xf]  ;;  %v6056_v53 = vld [vmem:[%s9797_s5 + $0xc4] sm:$0xf0] }
 0x74d   :  { %v3453_v36 = vsub.f32 1.5, %v3452_v21  ;;  %v6060_v21 = vld [vmem:[%s9797_s5 + $0xe4] sm:$0xf0] }
 0x74e   :  { %v6230_v14 = vpop.eup %6229  ;;  %v9238_v59 = vadd.f32 1e-05, %v3401_v13  ;;  %v3523_v39 = vadd.f32 %v9207_v37, %v3504_v12  ;;  %v3524_v54 = vadd.f32 %v9209_v18, %v3505_v55  ;;  %v5734_v12 = vor.u32 %v6060_v21, %v5733_v3  ;;  %v5671_v55 = vld [vmem:[%s9797_s5 + $0x68] sm:$0xf0]  ;;  %4027 = vmatpush.bf16.msrb.mxu1 %v5678_v44  ;;  %v6039_v44 = vld [vmem:[%s9797_s5 + $0x44] sm:$0xf] }
 0x74f   :  { %v3454_v10 = vmul.f32 %v6228_v51, %v3453_v36  ;;  %v3460_v8 = vmul.f32 %v6230_v14, %v9227_v30  ;;  %vm3466_vm9 = vweird.f32 %v6230_v14  ;;  %v5669_v36 = vld [vmem:[%s9797_s5 + $0x60] sm:$0xf]  ;;  %v5655_v3 = vld [vmem:[%s9797_s5 + $0x48] sm:$0xf0] }
 0x750   :  { %6231 = vrsqrt.f32 %v9238_v59  ;;  %v3533_v28 = vpack.c.bf16 %v3523_v39, %v3521_v61  ;;  %v3534_v15 = vpack.c.bf16 %v3524_v54, %v3522_v19  ;;  %vm3467_vm11 = vmor %vm3465_vm10, %vm3466_vm9  ;;  %v5674_v54 = vor.u32 %v6043_v50, %v5671_v55  ;;  %v5653_v21 = vld [vmem:[%s9797_s5 + $0x40] sm:$0xf] }
 0x751   :  { %v3458_v9 = vsel %vm3457_vm8, %v6228_v51, %v3454_v10  ;;  %v3461_v52 = vmul.f32 %v6230_v14, %v3460_v8  ;;  %v5742_v51 = vor.u32 %v6062_v6, %v5741_v42  ;;  %v6044_v10 = vld [vmem:[%s9797_s5 + $0x64] sm:$0xf0]  ;;  %v6057_v8 = vld [vmem:[%s9797_s5 + $0xd4] sm:$0xf]  ;;  %vm3475_vm13 = vweird.f32 %v9238_v59 }
 0x752   :  { %3714 = vmatmul.bf16.gmra.mxu1 %v3533_v28  ;;  %5612 = vmatmul.msk.bf16.gmra.mxu3 %vm68_vm0, %v3534_v15  ;;  %v3487_v5 = vmul.f32 %v3458_v9, %v9067_v0  ;;  %v3488_v23 = vmul.f32 %v3458_v9, %v9070_v16  ;;  %v5679_v0 = vld [vmem:[%s9797_s5 + $0x78] sm:$0xf0]  ;;  %v6059_v16 = vld [vmem:[%s9797_s5 + $0xe4] sm:$0xf]  ;;  %v5670_v9 = vor.u32 %v6044_v10, %v5669_v36  ;;  %v5709_v10 = vld [vmem:[%s9797_s5 + $0xb0] sm:$0xf] }
 0x753   :  { %v3462_v35 = vmul.f32 0.5, %v3461_v52  ;;  %3770 = vmatmul.bf16.gmra.mxu0 %v3533_v28  ;;  %5616 = vmatmul.msk.bf16.gmra.mxu2 %vm68_vm0, %v3534_v15  ;;  %v5682_v25 = vor.u32 %v6045_v7, %v5679_v0  ;;  %v5738_v13 = vor.u32 %v6059_v16, %v5735_v58  ;;  %v5727_v28 = vld [vmem:[%s9797_s5 + $0xd8] sm:$0xf0] }
 0x754   :  { %4055 = vmatpush.bf16.msrb.mxu3 %v5742_v51  ;;  %v3506_v30 = vmul.f32 %v9197_v49, %v3487_v5  ;;  %v3507_v19 = vmul.f32 %v9199_v26, %v3488_v23  ;;  %v5730_v52 = vor.u32 %v6057_v8, %v5727_v28  ;;  %v6042_v23 = vld [vmem:[%s9797_s5 + $0x54] sm:$0xf0]  ;;  %v5719_v51 = vld [vmem:[%s9797_s5 + $0xc8] sm:$0xf0]  ;;  %4028 = vmatpush.bf16.msrb.mxu1 %v5670_v9  ;;  %v6037_v28 = vld [vmem:[%s9797_s5 + $0x34] sm:$0xf] }
 0x755   :  { %v3463_v62 = vsub.f32 1.5, %v3462_v35  ;;  %4083 = vmatpush.bf16.msra.mxu0 %v5682_v25  ;;  %4112 = vmatpush.bf16.msra.mxu2 %v5738_v13  ;;  %v5725_v35 = vld [vmem:[%s9797_s5 + $0xd0] sm:$0xf]  ;;  %v5662_v41 = vor.u32 %v6042_v23, %v5661_v57  ;;  %v5717_v25 = vld [vmem:[%s9797_s5 + $0xc0] sm:$0xf] }
 0x756   :  { %v9270_v11 = vpop.eup %6231  ;;  %v3525_v16 = vadd.f32 %v9207_v37, %v3506_v30  ;;  %v6040_v30 = vld [vmem:[%s9797_s5 + $0x44] sm:$0xf0]  ;;  %v5718_v36 = vor.u32 %v6056_v53, %v5717_v25  ;;  %v6054_v8 = vld [vmem:[%s9797_s5 + $0xb4] sm:$0xf0]  ;;  %v6049_v25 = vld [vmem:[%s9797_s5 + $0x94] sm:$0xf] }
 0x757   :  { %v3464_v29 = vmul.f32 %v6230_v14, %v3463_v62  ;;  %v3470_v38 = vmul.f32 %v9270_v11, %v9238_v59  ;;  %v6055_v62 = vld [vmem:[%s9797_s5 + $0xc4] sm:$0xf]  ;;  %vm3476_vm12 = vweird.f32 %v9270_v11  ;;  %v5711_v59 = vld [vmem:[%s9797_s5 + $0xb8] sm:$0xf0] }
 0x758   :  { %4056 = vmatpush.bf16.msrb.mxu3 %v5734_v12  ;;  %vm3477_vm14 = vmor %vm3475_vm13, %vm3476_vm12  ;;  %v5722_v55 = vor.u32 %v6055_v62, %v5719_v51  ;;  %4029 = vmatpush.bf16.msrb.mxu1 %v5662_v41  ;;  %v6036_v41 = vld [vmem:[%s9797_s5 + $0x24] sm:$0xf0]  ;;  %v5695_v53 = vld [vmem:[%s9797_s5 + $0x98] sm:$0xf0] }
 0x759   :  { %v3468_v61 = vsel %vm3467_vm11, %v6230_v14, %v3464_v29  ;;  %v3471_v39 = vmul.f32 %v9270_v11, %v3470_v38  ;;  %4084 = vmatpush.bf16.msra.mxu0 %v5674_v54  ;;  %v3526_v29 = vadd.f32 %v9209_v18, %v3507_v19  ;;  %4113 = vmatpush.bf16.msra.mxu2 %v5730_v52 }
 0x75a   :  { %v3489_v14 = vmul.f32 %v3468_v61, %v9079_v60  ;;  %v3490_v15 = vmul.f32 %v3468_v61, %v9082_v1  ;;  %v5726_v60 = vor.u32 %v6058_v32, %v5725_v35  ;;  %v5663_v1 = vld [vmem:[%s9797_s5 + $0x58] sm:$0xf0]  ;;  %v6053_v61 = vld [vmem:[%s9797_s5 + $0xb4] sm:$0xf]  ;;  %v5658_v19 = vor.u32 %v6039_v44, %v5655_v3 }
 0x75b   :  { %v3472_v5 = vmul.f32 0.5, %v3471_v39  ;;  %v5666_v7 = vor.u32 %v6041_v48, %v5663_v1  ;;  %v5654_v54 = vor.u32 %v6040_v30, %v5653_v21  ;;  %v5714_v9 = vor.u32 %v6053_v61, %v5711_v59  ;;  %v6051_v48 = vld [vmem:[%s9797_s5 + $0xa4] sm:$0xf]  ;;  %v6033_v44 = vld [vmem:[%s9797_s5 + $0x14] sm:$0xf] }
 0x75c   :  { %v3508_v42 = vmul.f32 %v9197_v49, %v3489_v14  ;;  %v3509_v6 = vmul.f32 %v9199_v26, %v3490_v15  ;;  %4057 = vmatpush.bf16.msrb.mxu3 %v5726_v60  ;;  %v5645_v14 = vld [vmem:[%s9797_s5 + $0x30] sm:$0xf]  ;;  %v6038_v15 = vld [vmem:[%s9797_s5 + $0x34] sm:$0xf0]  ;;  %v5710_v32 = vor.u32 %v6054_v8, %v5709_v10  ;;  %v5631_v21 = vld [vmem:[%s9797_s5 + $0x18] sm:$0xf0] }
 0x75d   :  { %v3473_v0 = vsub.f32 1.5, %v3472_v5  ;;  %4085 = vmatpush.bf16.msra.mxu0 %v5666_v7  ;;  %4114 = vmatpush.bf16.msra.mxu2 %v5722_v55  ;;  %v5703_v5 = vld [vmem:[%s9797_s5 + $0xa8] sm:$0xf0]  ;;  %v5646_v1 = vor.u32 %v6038_v15, %v5645_v14  ;;  %v6034_v30 = vld [vmem:[%s9797_s5 + $0x14] sm:$0xf0] }
 0x75e   :  { %v3527_v58 = vadd.f32 %v9207_v37, %v3508_v42  ;;  %v3528_v38 = vadd.f32 %v9209_v18, %v3509_v6  ;;  %4030 = vmatpush.bf16.msrb.mxu1 %v5654_v54  ;;  %v5706_v57 = vor.u32 %v6051_v48, %v5703_v5  ;;  %v6047_v55 = vld [vmem:[%s9797_s5 + $0x84] sm:$0xf]  ;;  %v5685_v59 = vld [vmem:[%s9797_s5 + $0x80] sm:$0xf]  ;;  %v6032_v10 = vld [vmem:[%s9797_s5 + $0x4] sm:$0xf0] }
 0x75f   :  { %v3474_v50 = vmul.f32 %v9270_v11, %v3473_v0  ;;  %v6031_v8 = vld [vmem:[%s9797_s5 + $0x4] sm:$0xf] }
 0x760   :  { %v3535_v13 = vpack.c.bf16 %v3527_v58, %v3525_v16  ;;  %v3536_v12 = vpack.c.bf16 %v3528_v38, %v3526_v29  ;;  %4058 = vmatpush.bf16.msrb.mxu3 %v5718_v36  ;;  %v5698_v58 = vor.u32 %v6049_v25, %v5695_v53  ;;  %v5693_v29 = vld [vmem:[%s9797_s5 + $0x90] sm:$0xf]  ;;  %v6050_v38 = vld [vmem:[%s9797_s5 + $0x94] sm:$0xf0]  ;;  %v5687_v36 = vld [vmem:[%s9797_s5 + $0x88] sm:$0xf0] }
 0x761   :  { %v3478_v39 = vsel %vm3477_vm14, %v9270_v11, %v3474_v50  ;;  %v5647_v11 = vld [vmem:[%s9797_s5 + $0x38] sm:$0xf0]  ;;  %4086 = vmatpush.bf16.msra.mxu0 %v5658_v19  ;;  %4115 = vmatpush.bf16.msra.mxu2 %v5714_v9  ;;  %v5694_v3 = vor.u32 %v6050_v38, %v5693_v29  ;;  %v5629_v50 = vld [vmem:[%s9797_s5 + $0x10] sm:$0xf]  ;;  %v5690_v61 = vor.u32 %v6047_v55, %v5687_v36  ;;  %v5621_v19 = vld [vmem:[%s9797_s5] sm:$0xf] }
 0x762   :  { %3719 = vmatmul.bf16.gmra.mxu1 %v3535_v13  ;;  %5613 = vmatmul.msk.bf16.gmra.mxu3 %vm68_vm0, %v3536_v12  ;;  %v3492_v52 = vmul.f32 %v3478_v39, %v9094_v46  ;;  %v3491_v35 = vmul.f32 %v3478_v39, %v9091_v63  ;;  %v5650_v60 = vor.u32 %v6037_v28, %v5647_v11  ;;  %v5701_v46 = vld [vmem:[%s9797_s5 + $0xa0] sm:$0xf]  ;;  %v6052_v63 = vld [vmem:[%s9797_s5 + $0xa4] sm:$0xf0]  ;;  %v5623_v28 = vld [vmem:[%s9797_s5 + $0x8] sm:$0xf0] }
 0x763   :  { %3775 = vmatmul.bf16.gmra.mxu0 %v3535_v13  ;;  %5617 = vmatmul.msk.bf16.gmra.mxu2 %vm68_vm0, %v3536_v12  ;;  %v5702_v7 = vor.u32 %v6052_v63, %v5701_v46  ;;  %v5634_v13 = vor.u32 %v6033_v44, %v5631_v21  ;;  %v5630_v12 = vor.u32 %v6034_v30, %v5629_v50  ;;  %v6048_v39 = vld [vmem:[%s9797_s5 + $0x84] sm:$0xf0] }
 0x764   :  { %v3510_v42 = vmul.f32 %v9197_v49, %v3491_v35  ;;  %v3511_v6 = vmul.f32 %v9199_v26, %v3492_v52  ;;  %4059 = vmatpush.bf16.msrb.mxu3 %v5710_v32  ;;  %4031 = vmatpush.bf16.msrb.mxu1 %v5646_v1  ;;  %v6035_v49 = vld [vmem:[%s9797_s5 + $0x24] sm:$0xf]  ;;  %v5639_v26 = vld [vmem:[%s9797_s5 + $0x28] sm:$0xf0]  ;;  %v5686_v54 = vor.u32 %v6048_v39, %v5685_v59  ;;  %v3563_v52 = vld [vmem:[%s9798_s9] sm:$0x3] }
 0x765   :  { %4087 = vmatpush.bf16.msra.mxu0 %v5650_v60  ;;  %4116 = vmatpush.bf16.msra.mxu2 %v5706_v57  ;;  %v5622_v11 = vor.u32 %v6032_v10, %v5621_v19  ;;  %v5626_v14 = vor.u32 %v6031_v8, %v5623_v28  ;;  %v9477_v32 = vperm.slane %v3563_v52, 0  ;;  %v9479_v5 = vperm.slane %v3563_v52, 1 }
 0x766   :  { %v3529_v23 = vadd.f32 %v9207_v37, %v3510_v42  ;;  %v3530_v62 = vadd.f32 %v9209_v18, %v3511_v6  ;;  %v5637_v37 = vld [vmem:[%s9797_s5 + $0x20] sm:$0xf]  ;;  %v5642_v18 = vor.u32 %v6035_v49, %v5639_v26 }
 0x767   :  { %v5638_v16 = vor.u32 %v6036_v41, %v5637_v37 }
 0x768   :  { %4060 = vmatpush.bf16.msrb.mxu3 %v5702_v7  ;;  %v3537_v51 = vpack.c.bf16 %v3529_v23, %v3529_v23  ;;  %v3538_v0 = vpack.c.bf16 %v3530_v62, %v3530_v62 }
 0x769   :  { %4088 = vmatpush.bf16.msra.mxu0 %v5642_v18  ;;  %4032 = vmatpush.bf16.msrb.mxu1 %v5638_v16 }
 0x76a   :  { %4117 = vmatpush.bf16.msra.mxu2 %v5698_v58 }
 0x76c   :  { %4061 = vmatpush.bf16.msrb.mxu3 %v5694_v3 }
 0x76d   :  { %4089 = vmatpush.bf16.msra.mxu0 %v5634_v13  ;;  %4033 = vmatpush.bf16.msrb.mxu1 %v5630_v12 }
 0x76e   :  { %4118 = vmatpush.bf16.msra.mxu2 %v5690_v61 }
 0x770   :  { %4062 = vmatpush.bf16.msrb.mxu3 %v5686_v54 }
 0x771   :  { %4034 = vmatpush.bf16.msrb.mxu1 %v5622_v11  ;;  %4090 = vmatpush.bf16.msra.mxu0 %v5626_v14 }
 0x772   :  { %3724 = vmatmul.bf16.gmra.mxu1 %v3537_v51  ;;  %5614 = vmatmul.msk.bf16.gmra.mxu3 %vm68_vm0, %v3538_v0 }
 0x773   :  { %3780 = vmatmul.bf16.gmra.mxu0 %v3537_v51  ;;  %5618 = vmatmul.msk.bf16.gmra.mxu2 %vm68_vm0, %v3538_v0 }
 0x7bf   :  { %v3710_v15 = vpop.f32.mrf.mxu1 }
 0x7c0   :  { %v3766_v9 = vpop.f32.mrf.mxu0  ;;  %v3711_v46 = vadd.f32 %v3710_v15, %v9477_v32 }
 0x7c1   :  { %v3767_v63 = vadd.f32 %v3766_v9, %v9479_v5 }
 0x7c5   :  { %v3738_v35 = vpop.f32.mrf.mxu3 }
 0x7c6   :  { %v3794_v48 = vpop.f32.mrf.mxu2  ;;  %v3739_v57 = vadd.f32 %v3738_v35, %v3711_v46 }
 0x7c7   :  { %v3712_v60 = vpop.f32.mrf.mxu1  ;;  %v3795_v6 = vadd.f32 %v3794_v48, %v3767_v63 }
 0x7c8   :  { %v3768_v1 = vpop.f32.mrf.mxu0  ;;  %v3713_v42 = vadd.f32 %v3712_v60, %v9477_v32  ;;  %v3813_v26 = vmax.f32 %v3739_v57, 0.0 }
 0x7c9   :  { %v3769_v7 = vadd.f32 %v3768_v1, %v9479_v5  ;;  %v3814_v41 = vmax.f32 %v3795_v6, 0.0 }
 0x7cd   :  { %v3740_v23 = vpop.f32.mrf.mxu3 }
 0x7ce   :  { %v3741_v62 = vadd.f32 %v3740_v23, %v3713_v42  ;;  %v3796_v51 = vpop.f32.mrf.mxu2 }
 0x7cf   :  { %v3797_v0 = vadd.f32 %v3796_v51, %v3769_v7  ;;  %v3715_v49 = vpop.f32.mrf.mxu1 }
 0x7d0   :  { %v3815_v37 = vmax.f32 %v3741_v62, 0.0  ;;  %v3771_v18 = vpop.f32.mrf.mxu0  ;;  %v3716_v3 = vadd.f32 %v3715_v49, %v9477_v32 }
 0x7d1   :  { %v3816_v25 = vmax.f32 %v3797_v0, 0.0  ;;  %v3772_v21 = vadd.f32 %v3771_v18, %v9479_v5 }
 0x7d2   :  { %v3827_v53 = vpack.c.bf16 %v3815_v37, %v3813_v26 }
 0x7d3   :  { %v3828_v16 = vpack.c.bf16 %v3816_v25, %v3814_v41 }
 0x7d4   :  { %4035 = vmatmul.bf16.vlgmr.msrb.gmra.mxu1 %v3827_v53  ;;  %4091 = vmatmul.bf16.vlgmr.msra.gmra.mxu0 %v3827_v53 }
 0x7d5   :  { %4063 = vmatmul.bf16.vlgmr.msrb.gmra.mxu3 %v3828_v16  ;;  %4119 = vmatmul.bf16.vlgmr.msra.gmra.mxu2 %v3828_v16  ;;  %v3743_v58 = vpop.f32.mrf.mxu3 }
 0x7d6   :  { %v3799_v29 = vpop.f32.mrf.mxu2  ;;  %v3744_v50 = vadd.f32 %v3743_v58, %v3716_v3 }
 0x7d7   :  { %v3717_v38 = vpop.f32.mrf.mxu1  ;;  %v3800_v13 = vadd.f32 %v3799_v29, %v3772_v21 }
 0x7d8   :  { %v3773_v44 = vpop.f32.mrf.mxu0  ;;  %v3718_v30 = vadd.f32 %v3717_v38, %v9477_v32  ;;  %v3817_v19 = vmax.f32 %v3744_v50, 0.0 }
 0x7d9   :  { %v3774_v12 = vadd.f32 %v3773_v44, %v9479_v5  ;;  %v3818_v8 = vmax.f32 %v3800_v13, 0.0 }
 0x7dd   :  { %v3745_v55 = vpop.f32.mrf.mxu3 }
 0x7de   :  { %v3746_v36 = vadd.f32 %v3745_v55, %v3718_v30  ;;  %v3801_v61 = vpop.f32.mrf.mxu2 }
 0x7df   :  { %v3802_v59 = vadd.f32 %v3801_v61, %v3774_v12  ;;  %v3720_v39 = vpop.f32.mrf.mxu1 }
 0x7e0   :  { %v3819_v54 = vmax.f32 %v3746_v36, 0.0  ;;  %v3776_v10 = vpop.f32.mrf.mxu0  ;;  %v3721_v48 = vadd.f32 %v3720_v39, %v9477_v32 }
 0x7e1   :  { %v3820_v28 = vmax.f32 %v3802_v59, 0.0  ;;  %v3777_v60 = vadd.f32 %v3776_v10, %v9479_v5 }
 0x7e2   :  { %v3829_v11 = vpack.c.bf16 %v3819_v54, %v3817_v19 }
 0x7e3   :  { %v3830_v14 = vpack.c.bf16 %v3820_v28, %v3818_v8 }
 0x7e4   :  { %4040 = vmatmul.bf16.gmra.mxu1 %v3829_v11  ;;  %4096 = vmatmul.bf16.gmra.mxu0 %v3829_v11 }
 0x7e5   :  { %4068 = vmatmul.bf16.gmra.mxu3 %v3830_v14  ;;  %4124 = vmatmul.bf16.gmra.mxu2 %v3830_v14  ;;  %v3748_v15 = vpop.f32.mrf.mxu3 }
 0x7e6   :  { %v3804_v9 = vpop.f32.mrf.mxu2  ;;  %v3749_v1 = vadd.f32 %v3748_v15, %v3721_v48 }
 0x7e7   :  { %v3722_v52 = vpop.f32.mrf.mxu1  ;;  %v3805_v63 = vadd.f32 %v3804_v9, %v3777_v60 }
 0x7e8   :  { %v3778_v35 = vpop.f32.mrf.mxu0  ;;  %v3723_v46 = vadd.f32 %v3722_v52, %v9477_v32  ;;  %v3821_v51 = vmax.f32 %v3749_v1, 0.0 }
 0x7e9   :  { %v3779_v57 = vadd.f32 %v3778_v35, %v9479_v5  ;;  %v3822_v26 = vmax.f32 %v3805_v63, 0.0 }
 0x7ed   :  { %v3750_v42 = vpop.f32.mrf.mxu3 }
 0x7ee   :  { %v3751_v6 = vadd.f32 %v3750_v42, %v3723_v46  ;;  %v3806_v7 = vpop.f32.mrf.mxu2 }
 0x7ef   :  { %v3807_v23 = vadd.f32 %v3806_v7, %v3779_v57  ;;  %v3725_v62 = vpop.f32.mrf.mxu1 }
 0x7f0   :  { %v3823_v0 = vmax.f32 %v3751_v6, 0.0  ;;  %v3781_v49 = vpop.f32.mrf.mxu0  ;;  %v3726_v58 = vadd.f32 %v3725_v62, %v9477_v32  ;;  %v4606_v32 = vld [vmem:[%s9792_s8 + $0x7] ss:$8 sm:$0x3] }
 0x7f1   :  { %v3824_v37 = vmax.f32 %v3807_v23, 0.0  ;;  %v3782_v38 = vadd.f32 %v3781_v49, %v9479_v5  ;;  %v9498_v8 = vperm.slane %v4606_v32, 0  ;;  %v9500_v28 = vperm.slane %v4606_v32, 1 }
 0x7f2   :  { %v3831_v18 = vpack.c.bf16 %v3823_v0, %v3821_v51 }
 0x7f3   :  { %v3832_v41 = vpack.c.bf16 %v3824_v37, %v3822_v26 }
 0x7f4   :  { %4045 = vmatmul.bf16.gmra.mxu1 %v3831_v18  ;;  %4101 = vmatmul.bf16.gmra.mxu0 %v3831_v18 }
 0x7f5   :  { %4073 = vmatmul.bf16.gmra.mxu3 %v3832_v41  ;;  %4129 = vmatmul.bf16.gmra.mxu2 %v3832_v41  ;;  %v3753_v25 = vpop.f32.mrf.mxu3 }
 0x7f6   :  { %v3809_v53 = vpop.f32.mrf.mxu2  ;;  %v3754_v44 = vadd.f32 %v3753_v25, %v3726_v58 }
 0x7f7   :  { %v3727_v16 = vpop.f32.mrf.mxu1  ;;  %v3810_v3 = vadd.f32 %v3809_v53, %v3782_v38 }
 0x7f8   :  { %v3783_v29 = vpop.f32.mrf.mxu0  ;;  %v3825_v50 = vmax.f32 %v3754_v44, 0.0 }
 0x7f9   :  { %v3826_v13 = vmax.f32 %v3810_v3, 0.0 }
 0x7fa   :  { %v3833_v12 = vpack.c.bf16 %v3825_v50, %v3825_v50 }
 0x7fb   :  { %v3834_v55 = vpack.c.bf16 %v3826_v13, %v3826_v13 }
 0x7fd   :  { %v3755_v21 = vpop.f32.mrf.mxu3 }
 0x7fe   :  { %v3811_v30 = vpop.f32.mrf.mxu2 }
 0x804   :  { %4050 = vmatmul.bf16.gmra.mxu1 %v3833_v12  ;;  %4106 = vmatmul.bf16.gmra.mxu0 %v3833_v12 }
 0x805   :  { %4078 = vmatmul.bf16.gmra.mxu3 %v3834_v55  ;;  %4134 = vmatmul.bf16.gmra.mxu2 %v3834_v55 }
 0x851   :  { %v4036_v36 = vpop.f32.mrf.mxu1  ;;  %v4092_v61 = vpop.f32.mrf.mxu0 }
 0x858   :  { %v4064_v59 = vpop.f32.mrf.mxu3  ;;  %v4120_v5 = vpop.f32.mrf.mxu2 }
 0x859   :  { %v4065_v39 = vadd.f32 %v4064_v59, %v4036_v36  ;;  %v4121_v19 = vadd.f32 %v4120_v5, %v4092_v61  ;;  %v4038_v54 = vpop.f32.mrf.mxu1  ;;  %v4094_v10 = vpop.f32.mrf.mxu0 }
 0x85b   :  { %v4139_v11 = vadd.f32 %v4065_v39, %v8850_v20  ;;  %v4140_v14 = vadd.f32 %v4121_v19, %v8847_v31 }
 0x85d   :  { %v9505_v15 = vadd.f32 %v9498_v8, %v4139_v11  ;;  %v9508_v9 = vadd.f32 %v9500_v28, %v4140_v14 }
 0x85f   :  { %v4172_v52 = vsel %vm68_vm0, %v9508_v9, 0.0 }
 0x860   :  { %v4066_v35 = vpop.f32.mrf.mxu3  ;;  %v4122_v48 = vpop.f32.mrf.mxu2  ;;  %v4173_v60 = vadd.f32 %v4172_v52, %v9505_v15 }
 0x861   :  { %v4067_v1 = vadd.f32 %v4066_v35, %v4038_v54  ;;  %v4123_v46 = vadd.f32 %v4122_v48, %v4094_v10  ;;  %v4097_v63 = vpop.f32.mrf.mxu0  ;;  %v4041_v57 = vpop.f32.mrf.mxu1 }
 0x862   :  { %4174 = vadd.xlane.f32.xlu0 %v4173_v60 }
 0x863   :  { %v4141_v31 = vadd.f32 %v4067_v1, %v8866_v22  ;;  %v4142_v20 = vadd.f32 %v4123_v46, %v8863_v47 }
 0x865   :  { %v9516_v42 = vadd.f32 %v9498_v8, %v4141_v31  ;;  %v9519_v6 = vadd.f32 %v9500_v28, %v4142_v20 }
 0x867   :  { %v4176_v7 = vsel %vm68_vm0, %v9519_v6, 0.0 }
 0x868   :  { %v4069_v23 = vpop.f32.mrf.mxu3  ;;  %v4125_v62 = vpop.f32.mrf.mxu2  ;;  %v4177_v51 = vadd.f32 %v4176_v7, %v9516_v42 }
 0x869   :  { %v4070_v0 = vadd.f32 %v4069_v23, %v4041_v57  ;;  %v4126_v49 = vadd.f32 %v4125_v62, %v4097_v63  ;;  %v4099_v26 = vpop.f32.mrf.mxu0  ;;  %v4043_v37 = vpop.f32.mrf.mxu1 }
 0x86a   :  { %4178 = vadd.xlane.f32.xlu1 %v4177_v51 }
 0x86b   :  { %v4143_v47 = vadd.f32 %v4070_v0, %v8887_v4  ;;  %v4144_v22 = vadd.f32 %v4126_v49, %v8884_v56 }
 0x86d   :  { %v9527_v18 = vadd.f32 %v9498_v8, %v4143_v47  ;;  %v9530_v41 = vadd.f32 %v9500_v28, %v4144_v22 }
 0x86f   :  { %v4180_v25 = vsel %vm68_vm0, %v9530_v41, 0.0 }
 0x870   :  { %v4071_v53 = vpop.f32.mrf.mxu3  ;;  %v4127_v16 = vpop.f32.mrf.mxu2  ;;  %v4181_v58 = vadd.f32 %v4180_v25, %v9527_v18 }
 0x871   :  { %v4072_v29 = vadd.f32 %v4071_v53, %v4043_v37  ;;  %v4128_v38 = vadd.f32 %v4127_v16, %v4099_v26  ;;  %v4046_v44 = vpop.f32.mrf.mxu1  ;;  %v4102_v3 = vpop.f32.mrf.mxu0 }
 0x872   :  { %4182 = vadd.xlane.f32.xlu2 %v4181_v58 }
 0x873   :  { %v4145_v56 = vadd.f32 %v4072_v29, %v8903_v33  ;;  %v4146_v4 = vadd.f32 %v4128_v38, %v8900_v43 }
 0x875   :  { %v9538_v21 = vadd.f32 %v9498_v8, %v4145_v56  ;;  %v9541_v50 = vadd.f32 %v9500_v28, %v4146_v4 }
 0x877   :  { %v4184_v30 = vsel %vm68_vm0, %v9541_v50, 0.0 }
 0x878   :  { %v4074_v13 = vpop.f32.mrf.mxu3  ;;  %v4130_v12 = vpop.f32.mrf.mxu2  ;;  %v4185_v55 = vadd.f32 %v4184_v30, %v9538_v21 }
 0x879   :  { %v4075_v36 = vadd.f32 %v4074_v13, %v4046_v44  ;;  %v4131_v61 = vadd.f32 %v4130_v12, %v4102_v3  ;;  %v4048_v32 = vpop.f32.mrf.mxu1  ;;  %v4104_v59 = vpop.f32.mrf.mxu0 }
 0x87a   :  { %4186 = vadd.xlane.f32.xlu0 %v4185_v55 }
 0x87b   :  { %v4147_v43 = vadd.f32 %v4075_v36, %v8925_v27  ;;  %v4148_v33 = vadd.f32 %v4131_v61, %v8922_v2 }
 0x87d   :  { %v9549_v5 = vadd.f32 %v9498_v8, %v4147_v43  ;;  %v9552_v39 = vadd.f32 %v9500_v28, %v4148_v33  ;;  %v6069_v33 = vld [vmem:[%s9799_s6 + $0x30] sm:$0xff] }
 0x87f   :  { %v4188_v19 = vsel %vm68_vm0, %v9552_v39, 0.0 }
 0x880   :  { %v4076_v54 = vpop.f32.mrf.mxu3  ;;  %v4132_v10 = vpop.f32.mrf.mxu2  ;;  %v4189_v11 = vadd.f32 %v4188_v19, %v9549_v5  ;;  %v6073_v19 = vld [vmem:[%s9799_s6 + $0x50] sm:$0xff] }
 0x881   :  { %v4077_v14 = vadd.f32 %v4076_v54, %v4048_v32  ;;  %v4133_v52 = vadd.f32 %v4132_v10, %v4104_v59  ;;  %v4107_v35 = vpop.f32.mrf.mxu0  ;;  %v4051_v48 = vpop.f32.mrf.mxu1 }
 0x882   :  { %4190 = vadd.xlane.f32.xlu1 %v4189_v11 }
 0x883   :  { %v4149_v2 = vadd.f32 %v4077_v14, %v8941_v40  ;;  %v4150_v27 = vadd.f32 %v4133_v52, %v8938_v34  ;;  %v6068_v14 = vld [vmem:[%s9799_s6 + $0x28] sm:$0xff] }
 0x885   :  { %v9560_v60 = vadd.f32 %v9498_v8, %v4149_v2  ;;  %v9563_v1 = vadd.f32 %v9500_v28, %v4150_v27 }
 0x887   :  { %v4192_v46 = vsel %vm68_vm0, %v9563_v1, 0.0 }
 0x888   :  { %v4079_v63 = vpop.f32.mrf.mxu3  ;;  %v4135_v57 = vpop.f32.mrf.mxu2  ;;  %v4193_v31 = vadd.f32 %v4192_v46, %v9560_v60 }
 0x889   :  { %v4080_v20 = vadd.f32 %v4079_v63, %v4051_v48  ;;  %v4136_v7 = vadd.f32 %v4135_v57, %v4107_v35  ;;  %v4109_v23 = vpop.f32.mrf.mxu0  ;;  %v4053_v62 = vpop.f32.mrf.mxu1 }
 0x88a   :  { %4194 = vadd.xlane.f32.xlu2 %v4193_v31 }
 0x88b   :  { %v4151_v34 = vadd.f32 %v4080_v20, %v8958_v45  ;;  %v4152_v40 = vadd.f32 %v4136_v7, %v8955_v24 }
 0x88d   :  { %v9571_v51 = vadd.f32 %v9498_v8, %v4151_v34  ;;  %v9574_v0 = vadd.f32 %v9500_v28, %v4152_v40 }
 0x88f   :  { %v4196_v49 = vsel %vm68_vm0, %v9574_v0, 0.0 }
 0x890   :  { %v4081_v26 = vpop.f32.mrf.mxu3  ;;  %v4137_v37 = vpop.f32.mrf.mxu2  ;;  %v4197_v47 = vadd.f32 %v4196_v49, %v9571_v51 }
 0x892   :  { %4198 = vadd.xlane.f32.xlu0 %v4197_v47 }
 0x8d5   :  { %v4175_v22 = vpop.xlane.xlu0 %4174 }
 0x8d6   :  { %v4200_v25 = vmul.f32 %v4175_v22, %v9823_v17  ;;  %v6067_v22 = vld [vmem:[%s9799_s6 + $0x20] sm:$0xff] }
 0x8d8   :  { %v9581_v45 = vsub.f32 %v9505_v15, %v4200_v25  ;;  %v9584_v24 = vsub.f32 %v9508_v9, %v4200_v25 }
 0x8da   :  { %v4221_v8 = vmul.f32 %v9581_v45, %v9581_v45  ;;  %v4222_v28 = vmul.f32 %v9584_v24, %v9584_v24 }
 0x8dc   :  { %v4235_v53 = vsel %vm68_vm0, %v4222_v28, 0.0  ;;  %v6064_v28 = vld [vmem:[%s9799_s6 + $0x8] sm:$0xff] }
 0x8dd   :  { %v4179_v16 = vpop.xlane.xlu1 %4178  ;;  %v4236_v58 = vadd.f32 %v4235_v53, %v4221_v8  ;;  %v6072_v8 = vld [vmem:[%s9799_s6 + $0x48] sm:$0xff] }
 0x8de   :  { %v4201_v29 = vmul.f32 %v4179_v16, %v9823_v17 }
 0x8df   :  { %4237 = vadd.xlane.f32.xlu1 %v4236_v58  ;;  %v6071_v58 = vld [vmem:[%s9799_s6 + $0x40] sm:$0xff] }
 0x8e0   :  { %v9593_v38 = vsub.f32 %v9516_v42, %v4201_v29  ;;  %v9596_v15 = vsub.f32 %v9519_v6, %v4201_v29  ;;  %v6063_v29 = vld [vmem:[%s9799_s6] sm:$0xff] }
 0x8e2   :  { %v4223_v9 = vmul.f32 %v9593_v38, %v9593_v38  ;;  %v4224_v44 = vmul.f32 %v9596_v15, %v9596_v15 }
 0x8e4   :  { %v4239_v3 = vsel %vm68_vm0, %v4224_v44, 0.0 }
 0x8e5   :  { %v4183_v56 = vpop.xlane.xlu2 %4182  ;;  %v4240_v4 = vadd.f32 %v4239_v3, %v4223_v9 }
 0x8e6   :  { %v4202_v30 = vmul.f32 %v4183_v56, %v9823_v17 }
 0x8e7   :  { %4241 = vadd.xlane.f32.xlu2 %v4240_v4 }
 0x8e8   :  { %v9605_v13 = vsub.f32 %v9527_v18, %v4202_v30  ;;  %v9608_v42 = vsub.f32 %v9530_v41, %v4202_v30  ;;  %v6074_v18 = vld [vmem:[%s9799_s6 + $0x58] sm:$0xff] }
 0x8e9   :  { %v6070_v41 = vld [vmem:[%s9799_s6 + $0x38] sm:$0xff]  ;;  %4565 = vmatpush.bf16.msra.mxu3 %v6074_v18 }
 0x8ea   :  { %v4225_v6 = vmul.f32 %v9605_v13, %v9605_v13  ;;  %v4226_v12 = vmul.f32 %v9608_v42, %v9608_v42  ;;  %4533 = vmatpush.bf16.msra.mxu1 %v6070_v41 }
 0x8ec   :  { %v4243_v55 = vsel %vm68_vm0, %v4226_v12, 0.0 }
 0x8ed   :  { %v4187_v36 = vpop.xlane.xlu0 %4186  ;;  %v4244_v61 = vadd.f32 %v4243_v55, %v4225_v6  ;;  %4566 = vmatpush.bf16.msra.mxu3 %v6073_v19 }
 0x8ee   :  { %v4203_v32 = vmul.f32 %v4187_v36, %v9823_v17  ;;  %4534 = vmatpush.bf16.msra.mxu1 %v6069_v33  ;;  %v4603_v33 = vld [vmem:[%s9792_s8 + $0x4] ss:$8 sm:$0x3] }
 0x8ef   :  { %4245 = vadd.xlane.f32.xlu0 %v4244_v61 }
 0x8f0   :  { %v9623_v59 = vsub.f32 %v9538_v21, %v4203_v32  ;;  %v9626_v43 = vsub.f32 %v9541_v50, %v4203_v32 }
 0x8f1   :  { %4567 = vmatpush.bf16.msra.mxu3 %v6072_v8 }
 0x8f2   :  { %v4227_v54 = vmul.f32 %v9623_v59, %v9623_v59  ;;  %v4228_v21 = vmul.f32 %v9626_v43, %v9626_v43  ;;  %4535 = vmatpush.bf16.msra.mxu1 %v6068_v14 }
 0x8f4   :  { %v4247_v10 = vsel %vm68_vm0, %v4228_v21, 0.0  ;;  %v4604_v21 = vld [vmem:[%s9792_s8 + $0x5] ss:$8 sm:$0x3] }
 0x8f5   :  { %v4191_v50 = vpop.xlane.xlu1 %4190  ;;  %v4248_v11 = vadd.f32 %v4247_v10, %v4227_v54  ;;  %4568 = vmatpush.bf16.msra.mxu3 %v6071_v58  ;;  %v9708_v10 = vperm.slane %v4603_v33, 1 }
 0x8f6   :  { %v4204_v52 = vmul.f32 %v4191_v50, %v9823_v17  ;;  %4536 = vmatpush.bf16.msra.mxu1 %v6067_v22 }
 0x8f7   :  { %4249 = vadd.xlane.f32.xlu1 %v4248_v11 }
 0x8f8   :  { %v9644_v35 = vsub.f32 %v9549_v5, %v4204_v52  ;;  %v9647_v48 = vsub.f32 %v9552_v39, %v4204_v52  ;;  %v9711_v52 = vperm.slane %v4603_v33, 0 }
 0x8fa   :  { %v4229_v2 = vmul.f32 %v9644_v35, %v9644_v35  ;;  %v4230_v27 = vmul.f32 %v9647_v48, %v9647_v48 }
 0x8fc   :  { %v4251_v46 = vsel %vm68_vm0, %v4230_v27, 0.0 }
 0x8fd   :  { %v4195_v63 = vpop.xlane.xlu2 %4194  ;;  %v4252_v57 = vadd.f32 %v4251_v46, %v4229_v2 }
 0x8fe   :  { %v4205_v31 = vmul.f32 %v4195_v63, %v9823_v17 }
 0x8ff   :  { %4253 = vadd.xlane.f32.xlu2 %v4252_v57  ;;  %v9715_v57 = vperm.slane %v4604_v21, 1 }
 0x900   :  { %v9656_v5 = vsub.f32 %v9560_v60, %v4205_v31  ;;  %v9659_v39 = vsub.f32 %v9563_v1, %v4205_v31 }
 0x902   :  { %v4231_v20 = vmul.f32 %v9656_v5, %v9656_v5  ;;  %v4232_v7 = vmul.f32 %v9659_v39, %v9659_v39 }
 0x904   :  { %v4255_v23 = vsel %vm68_vm0, %v4232_v7, 0.0 }
 0x905   :  { %v4199_v62 = vpop.xlane.xlu0 %4198  ;;  %v4256_v34 = vadd.f32 %v4255_v23, %v4231_v20 }
 0x906   :  { %v4206_v40 = vmul.f32 %v4199_v62, %v9823_v17 }
 0x907   :  { %4257 = vadd.xlane.f32.xlu0 %v4256_v34 }
 0x908   :  { %v9668_v49 = vsub.f32 %v9571_v51, %v4206_v40  ;;  %v9671_v60 = vsub.f32 %v9574_v0, %v4206_v40  ;;  %v6066_v51 = vld [vmem:[%s9799_s6 + $0x18] sm:$0xff]  ;;  %v6065_v0 = vld [vmem:[%s9799_s6 + $0x10] sm:$0xff] }
 0x909   :  { %4537 = vmatpush.bf16.msra.mxu1 %v6066_v51 }
 0x90a   :  { %v4233_v1 = vmul.f32 %v9668_v49, %v9668_v49  ;;  %v4234_v26 = vmul.f32 %v9671_v60, %v9671_v60 }
 0x90c   :  { %v4259_v37 = vsel %vm68_vm0, %v4234_v26, 0.0 }
 0x90d   :  { %v4260_v47 = vadd.f32 %v4259_v37, %v4233_v1  ;;  %4538 = vmatpush.bf16.msra.mxu1 %v6065_v0 }
 0x90f   :  { %4261 = vadd.xlane.f32.xlu1 %v4260_v47 }
 0x911   :  { %4539 = vmatpush.bf16.msra.mxu1 %v6064_v28 }
 0x915   :  { %4540 = vmatpush.bf16.msra.mxu1 %v6063_v29 }
 0x952   :  { %v4238_v25 = vpop.xlane.xlu1 %4237 }
 0x953   :  { %v4263_v53 = vmul.f32 %v4238_v25, %v9823_v17 }
 0x955   :  { %v4270_v16 = vadd.f32 1e-05, %v4263_v53 }
 0x957   :  { %6233 = vrsqrt.f32 %v4270_v16  ;;  %vm4283_vm1 = vweird.f32 %v4270_v16 }
 0x95a   :  { %v4242_v9 = vpop.xlane.xlu2 %4241 }
 0x95b   :  { %v4264_v44 = vmul.f32 %v4242_v9, %v9823_v17 }
 0x95d   :  { %v6234_v3 = vpop.eup %6233  ;;  %v4271_v56 = vadd.f32 1e-05, %v4264_v44 }
 0x95e   :  { %v4278_v4 = vmul.f32 %v6234_v3, %v4270_v16  ;;  %vm4284_vm15 = vweird.f32 %v6234_v3 }
 0x95f   :  { %6235 = vrsqrt.f32 %v4271_v56  ;;  %vm4285_vm2 = vmor %vm4283_vm1, %vm4284_vm15  ;;  %vm4293_vm4 = vweird.f32 %v4271_v56 }
 0x960   :  { %v4279_v30 = vmul.f32 %v6234_v3, %v4278_v4 }
 0x962   :  { %v4280_v6 = vmul.f32 0.5, %v4279_v30  ;;  %v4246_v12 = vpop.xlane.xlu0 %4245 }
 0x963   :  { %v4265_v55 = vmul.f32 %v4246_v12, %v9823_v17 }
 0x964   :  { %v4281_v36 = vsub.f32 1.5, %v4280_v6 }
 0x965   :  { %v6236_v61 = vpop.eup %6235  ;;  %v4272_v32 = vadd.f32 1e-05, %v4265_v55 }
 0x966   :  { %v4282_v18 = vmul.f32 %v6234_v3, %v4281_v36  ;;  %v4288_v41 = vmul.f32 %v6236_v61, %v4271_v56  ;;  %vm4294_vm3 = vweird.f32 %v6236_v61 }
 0x967   :  { %6237 = vrsqrt.f32 %v4272_v32  ;;  %vm4295_vm5 = vmor %vm4293_vm4, %vm4294_vm3  ;;  %vm4303_vm7 = vweird.f32 %v4272_v32 }
 0x968   :  { %v4286_v19 = vsel %vm4285_vm2, %v6234_v3, %v4282_v18  ;;  %v4289_v54 = vmul.f32 %v6236_v61, %v4288_v41 }
 0x969   :  { %v4348_v50 = vmul.f32 %v4286_v19, %v9584_v24  ;;  %v4347_v2 = vmul.f32 %v4286_v19, %v9581_v45  ;;  %v9718_v24 = vperm.slane %v4604_v21, 0 }
 0x96a   :  { %v4290_v11 = vmul.f32 0.5, %v4289_v54  ;;  %v4250_v14 = vpop.xlane.xlu1 %4249 }
 0x96b   :  { %v4266_v27 = vmul.f32 %v4250_v14, %v9823_v17  ;;  %v4367_v20 = vmul.f32 %v9708_v10, %v4348_v50  ;;  %v4366_v62 = vmul.f32 %v9711_v52, %v4347_v2 }
 0x96c   :  { %v4291_v46 = vsub.f32 1.5, %v4290_v11 }
 0x96d   :  { %v6238_v63 = vpop.eup %6237  ;;  %v4273_v31 = vadd.f32 1e-05, %v4266_v27  ;;  %v4386_v26 = vadd.f32 %v9715_v57, %v4367_v20  ;;  %v4385_v22 = vadd.f32 %v9718_v24, %v4366_v62 }
 0x96e   :  { %v4292_v7 = vmul.f32 %v6236_v61, %v4291_v46  ;;  %v4298_v23 = vmul.f32 %v6238_v63, %v4272_v32  ;;  %vm4304_vm6 = vweird.f32 %v6238_v63 }
 0x96f   :  { %6239 = vrsqrt.f32 %v4273_v31  ;;  %v4400_v16 = vmax.f32 %v4386_v26, 0.0  ;;  %vm4305_vm8 = vmor %vm4303_vm7, %vm4304_vm6  ;;  %v4399_v44 = vmax.f32 %v4385_v22, 0.0  ;;  %vm4313_vm10 = vweird.f32 %v4273_v31 }
 0x970   :  { %v4296_v45 = vsel %vm4295_vm5, %v6236_v61, %v4292_v7  ;;  %v4299_v34 = vmul.f32 %v6238_v63, %v4298_v23 }
 0x971   :  { %v4349_v40 = vmul.f32 %v4296_v45, %v9593_v38  ;;  %v4350_v1 = vmul.f32 %v4296_v45, %v9596_v15 }
 0x972   :  { %v4300_v37 = vmul.f32 0.5, %v4299_v34  ;;  %v4254_v47 = vpop.xlane.xlu2 %4253 }
 0x973   :  { %v4368_v51 = vmul.f32 %v9711_v52, %v4349_v40  ;;  %v4369_v0 = vmul.f32 %v9708_v10, %v4350_v1  ;;  %v4267_v25 = vmul.f32 %v4254_v47, %v9823_v17 }
 0x974   :  { %v4301_v8 = vsub.f32 1.5, %v4300_v37 }
 0x975   :  { %v6240_v28 = vpop.eup %6239  ;;  %v4387_v53 = vadd.f32 %v9718_v24, %v4368_v51  ;;  %v4388_v38 = vadd.f32 %v9715_v57, %v4369_v0  ;;  %v4274_v15 = vadd.f32 1e-05, %v4267_v25 }
 0x976   :  { %v4302_v58 = vmul.f32 %v6238_v63, %v4301_v8  ;;  %v4308_v29 = vmul.f32 %v6240_v28, %v4273_v31  ;;  %vm4314_vm9 = vweird.f32 %v6240_v28 }
 0x977   :  { %v4402_v9 = vmax.f32 %v4388_v38, 0.0  ;;  %6241 = vrsqrt.f32 %v4274_v15  ;;  %v4401_v3 = vmax.f32 %v4387_v53, 0.0  ;;  %vm4315_vm11 = vmor %vm4313_vm10, %vm4314_vm9  ;;  %vm4323_vm13 = vweird.f32 %v4274_v15 }
 0x978   :  { %v4306_v56 = vsel %vm4305_vm8, %v6238_v63, %v4302_v58  ;;  %v4309_v4 = vmul.f32 %v6240_v28, %v4308_v29 }
 0x979   :  { %v4414_v30 = vpack.c.bf16 %v4402_v9, %v4400_v16  ;;  %v4413_v6 = vpack.c.bf16 %v4401_v3, %v4399_v44  ;;  %v4351_v12 = vmul.f32 %v4306_v56, %v9605_v13  ;;  %v4352_v61 = vmul.f32 %v4306_v56, %v9608_v42 }
 0x97a   :  { %v4310_v55 = vmul.f32 0.5, %v4309_v4  ;;  %v4258_v36 = vpop.xlane.xlu0 %4257 }
 0x97b   :  { %v4268_v18 = vmul.f32 %v4258_v36, %v9823_v17  ;;  %4541 = vmatmul.bf16.vlgmr.msra.gmra.mxu1 %v4413_v6  ;;  %5795 = vmatmul.msk.bf16.vlgmr.msra.gmra.mxu3 %vm68_vm0, %v4414_v30  ;;  %v4370_v21 = vmul.f32 %v9711_v52, %v4351_v12  ;;  %v4371_v13 = vmul.f32 %v9708_v10, %v4352_v61 }
 0x97c   :  { %v4311_v32 = vsub.f32 1.5, %v4310_v55 }
 0x97d   :  { %v6242_v41 = vpop.eup %6241  ;;  %v4275_v33 = vadd.f32 1e-05, %v4268_v18  ;;  %v4389_v46 = vadd.f32 %v9718_v24, %v4370_v21  ;;  %v4390_v7 = vadd.f32 %v9715_v57, %v4371_v13 }
 0x97e   :  { %v4312_v19 = vmul.f32 %v6240_v28, %v4311_v32  ;;  %v4318_v54 = vmul.f32 %v6242_v41, %v4274_v15  ;;  %vm4324_vm12 = vweird.f32 %v6242_v41 }
 0x97f   :  { %6243 = vrsqrt.f32 %v4275_v33  ;;  %v4403_v1 = vmax.f32 %v4389_v46, 0.0  ;;  %vm4325_vm14 = vmor %vm4323_vm13, %vm4324_vm12  ;;  %vm4333_vm1 = vweird.f32 %v4275_v33 }
 0x980   :  { %v4316_v50 = vsel %vm4315_vm11, %v6240_v28, %v4312_v19  ;;  %v4319_v42 = vmul.f32 %v6242_v41, %v4318_v54 }
 0x981   :  { %v4353_v11 = vmul.f32 %v4316_v50, %v9623_v59  ;;  %v4354_v14 = vmul.f32 %v4316_v50, %v9626_v43 }
 0x982   :  { %v4320_v2 = vmul.f32 0.5, %v4319_v42  ;;  %v4262_v27 = vpop.xlane.xlu1 %4261 }
 0x983   :  { %v4373_v63 = vmul.f32 %v9708_v10, %v4354_v14  ;;  %v4269_v31 = vmul.f32 %v4262_v27, %v9823_v17  ;;  %v4372_v20 = vmul.f32 %v9711_v52, %v4353_v11  ;;  %v4404_v17 = vmax.f32 %v4390_v7, 0.0 }
 0x984   :  { %v4321_v23 = vsub.f32 1.5, %v4320_v2 }
 0x985   :  { %v6244_v62 = vpop.eup %6243  ;;  %v4276_v45 = vadd.f32 1e-05, %v4269_v31  ;;  %v4391_v59 = vadd.f32 %v9718_v24, %v4372_v20  ;;  %v4392_v43 = vadd.f32 %v9715_v57, %v4373_v63 }
 0x986   :  { %v4322_v34 = vmul.f32 %v6242_v41, %v4321_v23  ;;  %v4328_v40 = vmul.f32 %v6244_v62, %v4275_v33  ;;  %vm4334_vm15 = vweird.f32 %v6244_v62 }
 0x987   :  { %6245 = vrsqrt.f32 %v4276_v45  ;;  %v4405_v26 = vmax.f32 %v4391_v59, 0.0  ;;  %v4406_v37 = vmax.f32 %v4392_v43, 0.0  ;;  %vm4335_vm2 = vmor %vm4333_vm1, %vm4334_vm15  ;;  %vm4343_vm4 = vweird.f32 %v4276_v45 }
 0x988   :  { %v4326_v47 = vsel %vm4325_vm14, %v6242_v41, %v4322_v34  ;;  %v4329_v22 = vmul.f32 %v6244_v62, %v4328_v40 }
 0x989   :  { %v4415_v51 = vpack.c.bf16 %v4405_v26, %v4403_v1  ;;  %v4416_v0 = vpack.c.bf16 %v4406_v37, %v4404_v17  ;;  %v4355_v8 = vmul.f32 %v4326_v47, %v9644_v35  ;;  %v4356_v28 = vmul.f32 %v4326_v47, %v9647_v48 }
 0x98a   :  { %v4330_v25 = vmul.f32 0.5, %v4329_v22 }
 0x98b   :  { %4546 = vmatmul.bf16.gmra.mxu1 %v4415_v51  ;;  %5796 = vmatmul.msk.bf16.gmra.mxu3 %vm68_vm0, %v4416_v0  ;;  %v4375_v58 = vmul.f32 %v9708_v10, %v4356_v28  ;;  %v4374_v29 = vmul.f32 %v9711_v52, %v4355_v8 }
 0x98c   :  { %v4331_v53 = vsub.f32 1.5, %v4330_v25 }
 0x98d   :  { %v6246_v38 = vpop.eup %6245  ;;  %v4393_v30 = vadd.f32 %v9718_v24, %v4374_v29  ;;  %v4394_v6 = vadd.f32 %v9715_v57, %v4375_v58 }
 0x98e   :  { %v4332_v15 = vmul.f32 %v6244_v62, %v4331_v53  ;;  %v4338_v16 = vmul.f32 %v6246_v38, %v4276_v45  ;;  %vm4344_vm3 = vweird.f32 %v6246_v38 }
 0x98f   :  { %vm4345_vm5 = vmor %vm4343_vm4, %vm4344_vm3  ;;  %v4408_v18 = vmax.f32 %v4394_v6, 0.0 }
 0x990   :  { %v4336_v9 = vsel %vm4335_vm2, %v6244_v62, %v4332_v15  ;;  %v4339_v44 = vmul.f32 %v6246_v38, %v4338_v16 }
 0x991   :  { %v4357_v35 = vmul.f32 %v4336_v9, %v9656_v5  ;;  %v4358_v48 = vmul.f32 %v4336_v9, %v9659_v39  ;;  %v4407_v5 = vmax.f32 %v4393_v30, 0.0 }
 0x992   :  { %v4340_v3 = vmul.f32 0.5, %v4339_v44 }
 0x993   :  { %v4377_v56 = vmul.f32 %v9708_v10, %v4358_v48  ;;  %v4376_v4 = vmul.f32 %v9711_v52, %v4357_v35 }
 0x994   :  { %v4341_v12 = vsub.f32 1.5, %v4340_v3 }
 0x995   :  { %v4395_v55 = vadd.f32 %v9718_v24, %v4376_v4  ;;  %v4396_v36 = vadd.f32 %v9715_v57, %v4377_v56 }
 0x996   :  { %v4342_v61 = vmul.f32 %v6246_v38, %v4341_v12 }
 0x997   :  { %v4409_v39 = vmax.f32 %v4395_v55, 0.0  ;;  %v4410_v32 = vmax.f32 %v4396_v36, 0.0 }
 0x998   :  { %v4346_v41 = vsel %vm4345_vm5, %v6246_v38, %v4342_v61 }
 0x999   :  { %v4360_v33 = vmul.f32 %v4346_v41, %v9671_v60  ;;  %v4417_v19 = vpack.c.bf16 %v4409_v39, %v4407_v5  ;;  %v4418_v54 = vpack.c.bf16 %v4410_v32, %v4408_v18  ;;  %v4359_v21 = vmul.f32 %v4346_v41, %v9668_v49  ;;  %v6090_v49 = vld [vmem:[%s9800_s10] ss:$0 sm:$0xff] }
 0x99b   :  { %4551 = vmatmul.bf16.gmra.mxu1 %v4417_v19  ;;  %5797 = vmatmul.msk.bf16.gmra.mxu3 %vm68_vm0, %v4418_v54  ;;  %v4378_v13 = vmul.f32 %v9711_v52, %v4359_v21  ;;  %v4379_v50 = vmul.f32 %v9708_v10, %v4360_v33 }
 0x99d   :  { %v4397_v42 = vadd.f32 %v9718_v24, %v4378_v13  ;;  %v4398_v11 = vadd.f32 %v9715_v57, %v4379_v50 }
 0x99f   :  { %v4411_v14 = vmax.f32 %v4397_v42, 0.0  ;;  %v4412_v2 = vmax.f32 %v4398_v11, 0.0 }
 0x9a1   :  { %v4419_v27 = vpack.c.bf16 %v4411_v14, %v4411_v14  ;;  %v4420_v46 = vpack.c.bf16 %v4412_v2, %v4412_v2 }
 0x9ab   :  { %4556 = vmatmul.bf16.gmra.mxu1 %v4419_v27  ;;  %5798 = vmatmul.msk.bf16.gmra.mxu3 %vm68_vm0, %v4420_v46 }
 0x9f8   :  { %v4542_v60 = vpop.f32.mrf.mxu1 }
 0x9f9   :  { %v4543_v63 = vadd.f32 %v6090_v49, %v4542_v60 }
 0x9fe   :  { %v4570_v52 = vpop.f32.mrf.mxu3 }
 0x9ff   :  { %v4571_v31 = vadd.f32 %v4570_v52, %v4543_v63 }
 0xa00   :  { %v4544_v10 = vpop.f32.mrf.mxu1 }
 0xa01   :  { %4589 = vst [vmem:[%s9801_s11] sm:$0xff] %v4571_v31  ;;  %v4545_v57 = vadd.f32 %v6090_v49, %v4544_v10 }
 0xa06   :  { %v4572_v24 = vpop.f32.mrf.mxu3 }
 0xa07   :  { %v4573_v20 = vadd.f32 %v4572_v24, %v4545_v57 }
 0xa08   :  { %v4547_v7 = vpop.f32.mrf.mxu1 }
 0xa09   :  { %4590 = vst [vmem:[%s9801_s11 + $0x8] sm:$0xff] %v4573_v20  ;;  %v4548_v23 = vadd.f32 %v6090_v49, %v4547_v7 }
 0xa0e   :  { %v4575_v62 = vpop.f32.mrf.mxu3 }
 0xa0f   :  { %v4576_v45 = vadd.f32 %v4575_v62, %v4548_v23 }
 0xa10   :  { %v4549_v59 = vpop.f32.mrf.mxu1 }
 0xa11   :  { %4591 = vst [vmem:[%s9801_s11 + $0x10] sm:$0xff] %v4576_v45  ;;  %v4550_v43 = vadd.f32 %v6090_v49, %v4549_v59 }
 0xa16   :  { %v4577_v34 = vpop.f32.mrf.mxu3 }
 0xa17   :  { %v4578_v40 = vadd.f32 %v4577_v34, %v4550_v43 }
 0xa18   :  { %v4552_v1 = vpop.f32.mrf.mxu1 }
 0xa19   :  { %4592 = vst [vmem:[%s9801_s11 + $0x18] sm:$0xff] %v4578_v40  ;;  %v4553_v26 = vadd.f32 %v6090_v49, %v4552_v1 }
 0xa1e   :  { %v4580_v17 = vpop.f32.mrf.mxu3 }
 0xa1f   :  { %v4581_v37 = vadd.f32 %v4580_v17, %v4553_v26 }
 0xa20   :  { %v4554_v47 = vpop.f32.mrf.mxu1 }
 0xa21   :  { %4593 = vst [vmem:[%s9801_s11 + $0x20] sm:$0xff] %v4581_v37  ;;  %v4555_v22 = vadd.f32 %v6090_v49, %v4554_v47 }
 0xa26   :  { %v4582_v51 = vpop.f32.mrf.mxu3 }
 0xa27   :  { %v4583_v0 = vadd.f32 %v4582_v51, %v4555_v22 }
 0xa28   :  { %v4557_v25 = vpop.f32.mrf.mxu1 }
 0xa29   :  { %4594 = vst [vmem:[%s9801_s11 + $0x28] sm:$0xff] %v4583_v0  ;;  %v4558_v8 = vadd.f32 %v6090_v49, %v4557_v25 }
 0xa2e   :  { %v4585_v28 = vpop.f32.mrf.mxu3 }
 0xa2f   :  { %v4586_v53 = vadd.f32 %v4585_v28, %v4558_v8 }
 0xa30   :  { %v4559_v38 = vpop.f32.mrf.mxu1 }
 0xa31   :  { %4595 = vst [vmem:[%s9801_s11 + $0x30] sm:$0xff] %v4586_v53 }
 0xa36   :  { %v4587_v15 = vpop.f32.mrf.mxu3 }

</bundles_post_ra>
